<compile_context>
chip_gen: v5e
topology: v5e:2x2
jax: 0.10.0
libtpu: 0.0.40
codegen_flags: <defaults>
</compile_context>

<pallas_src>
from functools import partial

import jax
import jax.numpy as jnp
from jax import lax
from jax.experimental import pallas as pl
from jax.experimental.pallas import tpu as pltpu

MAXLEN = 32          # stands in for config.maxlen; also the input sequence length
BANKS = 16
N_HIGHWAY = 4
BN_EPS = 1e-5

VMEM = pltpu.MemorySpace.VMEM


# --------------------------------------------------------------------------
# Kernel 1: embedding + prenet + fused conv banks + maxpool + projections +
#           residual + highway blocks.   One grid step per batch element.
# --------------------------------------------------------------------------

def _pad_time(x, left, right, fill_row):
    """Pad along the time (sublane) axis with copies of `fill_row` (1, C)."""
    parts = []
    c = x.shape[1]
    if left:
        parts.append(jnp.broadcast_to(fill_row, (left, c)))
    parts.append(x)
    if right:
        parts.append(jnp.broadcast_to(fill_row, (right, c)))
    return jnp.concatenate(parts, axis=0) if len(parts) > 1 else x


def _encoder_kernel(ids_ref, emb_ref, pw1_ref, pb1_ref, pw2_ref, pb2_ref,
                    bw_ref, bb_ref, p1w_ref, p1b_ref, p2w_ref, p2b_ref,
                    sh2_ref, hw_ref, hb_ref, out_ref, *, n_highway):
    f32 = jnp.float32
    L = ids_ref.shape[0]
    vocab = emb_ref.shape[0]
    U = pw2_ref.shape[1]
    C = bb_ref.shape[1]            # banks * U
    kmax = bw_ref.shape[0]

    # ---- embedding via one-hot matmul (padding_idx row of the table is zero) ----
    onehot = (ids_ref[...] ==
              lax.broadcasted_iota(jnp.int32, (L, vocab), 1)).astype(f32)   # (L, vocab)
    emb = jnp.dot(onehot, emb_ref[...], preferred_element_type=f32)         # (L, D)

    # ---- prenet (Dropout = identity in eval mode) ----
    h = jnp.maximum(jnp.dot(emb, pw1_ref[...], preferred_element_type=f32)
                    + pb1_ref[...], 0.0)
    pre = jnp.maximum(jnp.dot(h, pw2_ref[...], preferred_element_type=f32)
                      + pb2_ref[...], 0.0)                                  # (L, U)

    # ---- 16 conv banks fused: per-tap matmuls vs (kmax, U, banks*U) weights ----
    # SAME padding aligned at common offset (kmax-1)//2; BN1 folded in; ReLU.
    pad_l, pad_r = (kmax - 1) // 2, kmax // 2
    zero_u = jnp.zeros((1, U), f32)
    xp = _pad_time(pre, pad_l, pad_r, zero_u)                               # (L+kmax-1, U)
    acc = jnp.broadcast_to(bb_ref[...], (L, C))
    for j in range(kmax):
        acc = acc + jnp.dot(xp[j:j + L, :], bw_ref[j], preferred_element_type=f32)
    y = jnp.maximum(acc, 0.0)                                               # (L, banks*U)

    # ---- MaxPool1d(k=2, s=1) -> length L-1, then pad back to maxlen (== L) ----
    mp = jnp.maximum(y[:-1, :], y[1:, :])
    pad_mp = L - (L - 1)
    xin = _pad_time(mp, pad_mp // 2, pad_mp - pad_mp // 2,
                    jnp.zeros((1, C), f32))                                 # (L, C)

    # ---- projection 1 (VALID k=5, BN2 folded), pad with BN shift, ReLU ----
    Lo = L - 4
    sh2 = sh2_ref[...]                                                      # (1, U)
    a1 = jnp.broadcast_to(p1b_ref[...], (Lo, U))
    for i in range(5):
        a1 = a1 + jnp.dot(xin[i:i + Lo, :], p1w_ref[i], preferred_element_type=f32)
    pad_p = L - Lo
    h1 = jnp.maximum(_pad_time(a1, pad_p // 2, pad_p - pad_p // 2, sh2), 0.0)  # (L, U)

    # ---- projection 2 (VALID k=5, BN2 folded), pad with BN shift, ReLU ----
    a2 = jnp.broadcast_to(p2b_ref[...], (Lo, U))
    for i in range(5):
        a2 = a2 + jnp.dot(h1[i:i + Lo, :], p2w_ref[i], preferred_element_type=f32)
    h2 = jnp.maximum(_pad_time(a2, pad_p // 2, pad_p - pad_p // 2, sh2), 0.0)  # (L, U)

    # ---- residual + highway blocks (shared linear for H and T, as in reference) ----
    enc = h2 + pre
    hw = hw_ref[...]
    hb = hb_ref[...]
    for _ in range(n_highway):
        lin = jnp.dot(enc, hw, preferred_element_type=f32) + hb
        Hg = jnp.maximum(lin, 0.0)
        Tg = jax.nn.sigmoid(lin)
        enc = Hg * Tg + enc * (1.0 - Tg)

    out_ref[...] = enc


def encoder_forward(fp, x_ids):
    B, L = x_ids.shape
    assert L == MAXLEN, "sequence length must equal maxlen (residual add requires it)"
    vocab, D = fp["emb"].shape
    U = D // 2
    C = fp["bank_bf"].shape[1]
    kmax = fp["bank_wt"].shape[0]

    ids3 = x_ids.astype(jnp.int32).reshape(B, L, 1)
    c2 = lambda b: (0, 0)
    c3 = lambda b: (0, 0, 0)

    return pl.pallas_call(
        partial(_encoder_kernel, n_highway=N_HIGHWAY),
        out_shape=jax.ShapeDtypeStruct((B, MAXLEN, U), jnp.float32),
        grid=(B,),
        in_specs=[
            pl.BlockSpec((None, L, 1), lambda b: (b, 0, 0)),   # token ids
            pl.BlockSpec((vocab, D), c2),                      # embedding table
            pl.BlockSpec((D, D), c2), pl.BlockSpec((1, D), c2),     # prenet 1
            pl.BlockSpec((D, U), c2), pl.BlockSpec((1, U), c2),     # prenet 2
            pl.BlockSpec((kmax, U, C), c3),                    # fused bank weights (BN1 folded)
            pl.BlockSpec((1, C), c2),                          # fused bank bias
            pl.BlockSpec((5, C, U), c3), pl.BlockSpec((1, U), c2),  # proj1 (BN2 folded)
            pl.BlockSpec((5, U, U), c3), pl.BlockSpec((1, U), c2),  # proj2 (BN2 folded)
            pl.BlockSpec((1, U), c2),                          # BN2 shift (pad fill)
            pl.BlockSpec((U, U), c2), pl.BlockSpec((1, U), c2),     # highway linear
        ],
        out_specs=pl.BlockSpec((None, MAXLEN, U), lambda b: (b, 0, 0)),
        compiler_params=pltpu.CompilerParams(dimension_semantics=("parallel",)),
    )(ids3, fp["emb"], fp["pre_w1"], fp["pre_b1"], fp["pre_w2"], fp["pre_b2"],
      fp["bank_wt"], fp["bank_bf"], fp["p1_wt"], fp["p1_bf"], fp["p2_wt"], fp["p2_bf"],
      fp["shift2"], fp["hn_w"], fp["hn_b"])


# --------------------------------------------------------------------------
# Kernel 2: bidirectional GRU (time axis = data batch, batch = maxlen, as the
#           reference module implies via nn.GRU's default seq-first layout)
#           with the concat + readout fused into the recurrence loops.
# --------------------------------------------------------------------------

def _gru_readout_kernel(enc_ref, h0_ref, wif_ref, whf_ref, bif_ref, bhf_ref,
                        wib_ref, whb_ref, bib_ref, bhb_ref, wro_ref, out_ref):
    f32 = jnp.float32
    T = enc_ref.shape[0]           # = data batch B (nn.GRU default seq-first)
    U = h0_ref.shape[-1]

    def cell(x, hprev, wih, whh, bih, bhh):
        gx = jnp.dot(x, wih, preferred_element_type=f32) + bih
        gh = jnp.dot(hprev, whh, preferred_element_type=f32) + bhh
        r = jax.nn.sigmoid(gx[:, :U] + gh[:, :U])
        z = jax.nn.sigmoid(gx[:, U:2 * U] + gh[:, U:2 * U])
        n = jnp.tanh(gx[:, 2 * U:] + r * gh[:, 2 * U:])
        return (1.0 - z) * n + z * hprev

    wif = wif_ref[...]; whf = whf_ref[...]; bif = bif_ref[...]; bhf = bhf_ref[...]
    wib = wib_ref[...]; whb = whb_ref[...]; bib = bib_ref[...]; bhb = bhb_ref[...]
    wro = wro_ref[...]                       # (2U, hanzi)
    wro_f, wro_b = wro[:U, :], wro[U:, :]

    # Forward direction: keep only the forward half of the readout per step.
    hf = h0_ref[0]
    fwd_read = [None] * T
    for t in range(T):
        hf = cell(enc_ref[t], hf, wif, whf, bif, bhf)
        fwd_read[t] = jnp.dot(hf, wro_f, preferred_element_type=f32)

    # Backward direction: add its readout half and store immediately.
    hb = h0_ref[1]
    for t in range(T - 1, -1, -1):
        hb = cell(enc_ref[t], hb, wib, whb, bib, bhb)
        out_ref[t] = fwd_read[t] + jnp.dot(hb, wro_b, preferred_element_type=f32)


def gru_readout_forward(fp, enc):
    B, Lm, _ = enc.shape
    hanzi = fp["readout_w"].shape[1]
    return pl.pallas_call(
        _gru_readout_kernel,
        out_shape=jax.ShapeDtypeStruct((B, Lm, hanzi), jnp.float32),
        in_specs=[pl.BlockSpec(memory_space=VMEM)] * 11,
        out_specs=pl.BlockSpec(memory_space=VMEM),
    )(enc, fp["h0"],
      fp["gru_f"]["wih_t"], fp["gru_f"]["whh_t"], fp["gru_f"]["bih"], fp["gru_f"]["bhh"],
      fp["gru_r"]["wih_t"], fp["gru_r"]["whh_t"], fp["gru_r"]["bih"], fp["gru_r"]["bhh"],
      fp["readout_w"])


def my_input_forward(fused_params, x_ids):
    enc = encoder_forward(fused_params, x_ids)       # (B, MAXLEN, U)
    return gru_readout_forward(fused_params, enc)    # (B, MAXLEN, hanzi)


# --------------------------------------------------------------------------
# Parameter init (PyTorch-equivalent tensors) and one-time fusion/fold prep.
# --------------------------------------------------------------------------

def init_params(key, vocab_size, hanzi_size, word_dim, banks=BANKS):
    U = word_dim // 2
    keys = iter(jax.random.split(key, 64))

    def nrm(shape, scale=0.1):
        return (scale * jax.random.normal(next(keys), shape)).astype(jnp.float32)

    emb = nrm((vocab_size, word_dim), 1.0)
    emb = emb.at[1].set(0.0)                                   # padding_idx=1

    bank_w = [nrm((U, U, 1))] + [nrm((U, U, k)) for k in range(2, banks + 1)]
    bank_b = [None] + [nrm((U,)) for _ in range(2, banks + 1)]

    def bn(n):  # (gamma, beta, running_mean, running_var)
        return (1.0 + nrm((n,)), nrm((n,)), nrm((n,)), 1.0 + jnp.abs(nrm((n,))))

    return dict(
        emb=emb,
        pre_w1=nrm((word_dim, word_dim)), pre_b1=nrm((word_dim,)),
        pre_w2=nrm((word_dim, U)), pre_b2=nrm((U,)),
        bank_w=bank_w, bank_b=bank_b,
        bn1=bn(banks * U), bn2=bn(U),
        proj1_w=nrm((U, banks * U, 5)), proj1_b=nrm((U,)),
        proj2_w=nrm((U, U, 5)), proj2_b=nrm((U,)),
        hn_w=nrm((U, U)), hn_b=nrm((U,)),
        gru_f=dict(wih_t=nrm((U, 3 * U)), whh_t=nrm((U, 3 * U)),
                   bih=nrm((3 * U,)), bhh=nrm((3 * U,))),
        gru_r=dict(wih_t=nrm((U, 3 * U)), whh_t=nrm((U, 3 * U)),
                   bih=nrm((3 * U,)), bhh=nrm((3 * U,))),
        h0=jax.random.normal(next(keys), (2, MAXLEN, U)).astype(jnp.float32),
        readout_w=nrm((2 * U, hanzi_size)),
    )


def fuse_params(params, word_dim, banks=BANKS, eps=BN_EPS):
    """One-time prep: fold eval-mode BN into conv weights, build per-tap weight
    stacks for the fused bank/projection convs, reshape biases to (1, N)."""
    U = word_dim // 2
    kmax = banks

    g1, be1, m1, v1 = params["bn1"]
    inv1 = g1 / jnp.sqrt(v1 + eps)
    shift1 = be1 - m1 * inv1
    g2, be2, m2, v2 = params["bn2"]
    inv2 = g2 / jnp.sqrt(v2 + eps)
    shift2 = be2 - m2 * inv2

    # conv banks -> (kmax, U, banks*U) per-tap weights, SAME-aligned at common
    # offset (kmax-1)//2, with BN1 folded into weights and bias.
    wtap = jnp.zeros((kmax, U, banks * U), jnp.float32)
    ball = jnp.zeros((banks * U,), jnp.float32)
    for kb in range(banks):
        k = kb + 1
        w = params["bank_w"][kb].astype(jnp.float32)           # (Cout, Cin, k)
        off = (kmax - 1) // 2 - (k - 1) // 2
        for i in range(k):
            wtap = wtap.at[off + i, :, kb * U:(kb + 1) * U].set(w[:, :, i].T)
        if params["bank_b"][kb] is not None:
            ball = ball.at[kb * U:(kb + 1) * U].set(params["bank_b"][kb])
    bank_wt = wtap * inv1[None, None, :]
    bank_bf = (ball * inv1 + shift1).reshape(1, -1)

    p1_wt = jnp.transpose(params["proj1_w"], (2, 1, 0)) * inv2[None, None, :]  # (5, C, U)
    p1_bf = (params["proj1_b"] * inv2 + shift2).reshape(1, -1)
    p2_wt = jnp.transpose(params["proj2_w"], (2, 1, 0)) * inv2[None, None, :]  # (5, U, U)
    p2_bf = (params["proj2_b"] * inv2 + shift2).reshape(1, -1)

    r1 = lambda a: a.reshape(1, -1).astype(jnp.float32)
    gru = lambda gp: dict(wih_t=gp["wih_t"], whh_t=gp["whh_t"],
                          bih=r1(gp["bih"]), bhh=r1(gp["bhh"]))

    return dict(
        emb=params["emb"].astype(jnp.float32),
        pre_w1=params["pre_w1"], pre_b1=r1(params["pre_b1"]),
        pre_w2=params["pre_w2"], pre_b2=r1(params["pre_b2"]),
        bank_wt=bank_wt, bank_bf=bank_bf,
        p1_wt=p1_wt, p1_bf=p1_bf, p2_wt=p2_wt, p2_bf=p2_bf,
        shift2=shift2.reshape(1, -1),
        hn_w=params["hn_w"], hn_b=r1(params["hn_b"]),
        gru_f=gru(params["gru_f"]), gru_r=gru(params["gru_r"]),
        h0=params["h0"].astype(jnp.float32),
        readout_w=params["readout_w"],
    )


if __name__ == "__main__":
    vocab_size, hanzi_size, word_dim = 20, 12, 32
    batch = 2

    key = jax.random.PRNGKey(0)
    kp, kx = jax.random.split(key)
    params = init_params(kp, vocab_size, hanzi_size, word_dim)
    fused = fuse_params(params, word_dim)                      # one-time weight prep
    x = jax.random.randint(kx, (batch, MAXLEN), 0, vocab_size, dtype=jnp.int32)

    fwd = jax.jit(my_input_forward)
    out = jax.block_until_ready(fwd(fused, x))

    assert out.shape == (batch, MAXLEN, hanzi_size), out.shape
    assert bool(jnp.all(jnp.isfinite(out)))
    print("KERNEL_OK")
</pallas_src>

<mosaic_0001>
module attributes {stable_mosaic.version = 11 : i64} {
  func.func @_encoder_kernel(%arg0: i32, %arg1: memref<1x32x1xi32, #tpu.memory_space<vmem>>, %arg2: memref<20x32xf32, #tpu.memory_space<vmem>>, %arg3: memref<32x32xf32, #tpu.memory_space<vmem>>, %arg4: memref<1x32xf32, #tpu.memory_space<vmem>>, %arg5: memref<32x16xf32, #tpu.memory_space<vmem>>, %arg6: memref<1x16xf32, #tpu.memory_space<vmem>>, %arg7: memref<16x16x256xf32, #tpu.memory_space<vmem>>, %arg8: memref<1x256xf32, #tpu.memory_space<vmem>>, %arg9: memref<5x256x16xf32, #tpu.memory_space<vmem>>, %arg10: memref<1x16xf32, #tpu.memory_space<vmem>>, %arg11: memref<5x16x16xf32, #tpu.memory_space<vmem>>, %arg12: memref<1x16xf32, #tpu.memory_space<vmem>>, %arg13: memref<1x16xf32, #tpu.memory_space<vmem>>, %arg14: memref<16x16xf32, #tpu.memory_space<vmem>>, %arg15: memref<1x16xf32, #tpu.memory_space<vmem>>, %arg16: memref<1x32x16xf32, #tpu.memory_space<vmem>>) attributes {dimension_semantics = [#tpu.dimension_semantics<parallel>], iteration_bounds = array<i64: 2>, scalar_prefetch = 0 : i64, scratch_operands = 0 : i64, tpu.core_type = #tpu.core_type<tc>, window_params = [{transform_indices = @transform_0, window_bounds = array<i64: 1, 32, 1>}, {pipeline_mode = #tpu.pipeline_mode<synchronous>, transform_indices = @transform_1, window_bounds = array<i64: 20, 32>}, {pipeline_mode = #tpu.pipeline_mode<synchronous>, transform_indices = @transform_2, window_bounds = array<i64: 32, 32>}, {pipeline_mode = #tpu.pipeline_mode<synchronous>, transform_indices = @transform_3, window_bounds = array<i64: 1, 32>}, {pipeline_mode = #tpu.pipeline_mode<synchronous>, transform_indices = @transform_4, window_bounds = array<i64: 32, 16>}, {pipeline_mode = #tpu.pipeline_mode<synchronous>, transform_indices = @transform_5, window_bounds = array<i64: 1, 16>}, {pipeline_mode = #tpu.pipeline_mode<synchronous>, transform_indices = @transform_6, window_bounds = array<i64: 16, 16, 256>}, {pipeline_mode = #tpu.pipeline_mode<synchronous>, transform_indices = @transform_7, window_bounds = array<i64: 1, 256>}, {pipeline_mode = #tpu.pipeline_mode<synchronous>, transform_indices = @transform_8, window_bounds = array<i64: 5, 256, 16>}, {pipeline_mode = #tpu.pipeline_mode<synchronous>, transform_indices = @transform_9, window_bounds = array<i64: 1, 16>}, {pipeline_mode = #tpu.pipeline_mode<synchronous>, transform_indices = @transform_10, window_bounds = array<i64: 5, 16, 16>}, {pipeline_mode = #tpu.pipeline_mode<synchronous>, transform_indices = @transform_11, window_bounds = array<i64: 1, 16>}, {pipeline_mode = #tpu.pipeline_mode<synchronous>, transform_indices = @transform_12, window_bounds = array<i64: 1, 16>}, {pipeline_mode = #tpu.pipeline_mode<synchronous>, transform_indices = @transform_13, window_bounds = array<i64: 16, 16>}, {pipeline_mode = #tpu.pipeline_mode<synchronous>, transform_indices = @transform_14, window_bounds = array<i64: 1, 16>}, {transform_indices = @transform_15, window_bounds = array<i64: 1, 32, 16>}]} {
    %c0 = arith.constant 0 : index
    %c0_0 = arith.constant 0 : index
    %c0_1 = arith.constant 0 : index
    %0 = vector.load %arg1[%c0, %c0_0, %c0_1] : memref<1x32x1xi32, #tpu.memory_space<vmem>>, vector<1x32x1xi32>
    %1 = vector.shape_cast %0 : vector<1x32x1xi32> to vector<32x1xi32>
    %2 = tpu.iota {dimensions = array<i32: 1>} : vector<32x20xi32>
    %3 = vector.broadcast %1 : vector<32x1xi32> to vector<32x20xi32>
    %4 = arith.cmpi eq, %3, %2 : vector<32x20xi32>
    %5 = arith.extui %4 : vector<32x20xi1> to vector<32x20xi32>
    %6 = arith.sitofp %5 : vector<32x20xi32> to vector<32x20xf32>
    %c0_2 = arith.constant 0 : index
    %c0_3 = arith.constant 0 : index
    %7 = vector.load %arg2[%c0_2, %c0_3] : memref<20x32xf32, #tpu.memory_space<vmem>>, vector<20x32xf32>
    %cst = arith.constant dense<0.000000e+00> : vector<32x32xf32>
    %8 = tpu.matmul %6, %7, %cst {dimension_numbers = #tpu.dot_dimension_numbers<[1], [0], [0], [1], [0, 0, 1, 1], [], []>} : vector<32x20xf32>, vector<20x32xf32>, vector<32x32xf32> -> vector<32x32xf32>
    %c0_4 = arith.constant 0 : index
    %c0_5 = arith.constant 0 : index
    %9 = vector.load %arg3[%c0_4, %c0_5] : memref<32x32xf32, #tpu.memory_space<vmem>>, vector<32x32xf32>
    %cst_6 = arith.constant dense<0.000000e+00> : vector<32x32xf32>
    %10 = tpu.matmul %8, %9, %cst_6 {dimension_numbers = #tpu.dot_dimension_numbers<[1], [0], [0], [1], [0, 0, 1, 1], [], []>} : vector<32x32xf32>, vector<32x32xf32>, vector<32x32xf32> -> vector<32x32xf32>
    %c0_7 = arith.constant 0 : index
    %c0_8 = arith.constant 0 : index
    %11 = vector.load %arg4[%c0_7, %c0_8] : memref<1x32xf32, #tpu.memory_space<vmem>>, vector<1x32xf32>
    %12 = vector.broadcast %11 : vector<1x32xf32> to vector<32x32xf32>
    %13 = arith.addf %10, %12 : vector<32x32xf32>
    %cst_9 = arith.constant 0.000000e+00 : f32
    %14 = vector.broadcast %cst_9 : f32 to vector<32x32xf32>
    %15 = arith.maximumf %13, %14 : vector<32x32xf32>
    %c0_10 = arith.constant 0 : index
    %c0_11 = arith.constant 0 : index
    %16 = vector.load %arg5[%c0_10, %c0_11] : memref<32x16xf32, #tpu.memory_space<vmem>>, vector<32x16xf32>
    %cst_12 = arith.constant dense<0.000000e+00> : vector<32x16xf32>
    %17 = tpu.matmul %15, %16, %cst_12 {dimension_numbers = #tpu.dot_dimension_numbers<[1], [0], [0], [1], [0, 0, 1, 1], [], []>} : vector<32x32xf32>, vector<32x16xf32>, vector<32x16xf32> -> vector<32x16xf32>
    %c0_13 = arith.constant 0 : index
    %c0_14 = arith.constant 0 : index
    %18 = vector.load %arg6[%c0_13, %c0_14] : memref<1x16xf32, #tpu.memory_space<vmem>>, vector<1x16xf32>
    %19 = vector.broadcast %18 : vector<1x16xf32> to vector<32x16xf32>
    %20 = arith.addf %17, %19 : vector<32x16xf32>
    %cst_15 = arith.constant 0.000000e+00 : f32
    %21 = vector.broadcast %cst_15 : f32 to vector<32x16xf32>
    %22 = arith.maximumf %20, %21 : vector<32x16xf32>
    %cst_16 = arith.constant 0.000000e+00 : f32
    %23 = vector.broadcast %cst_16 : f32 to vector<1x16xf32>
    %24 = vector.shape_cast %23 : vector<1x16xf32> to vector<1x16xf32>
    %25 = vector.broadcast %24 : vector<1x16xf32> to vector<7x16xf32>
    %26 = vector.shape_cast %23 : vector<1x16xf32> to vector<1x16xf32>
    %27 = vector.broadcast %26 : vector<1x16xf32> to vector<8x16xf32>
    %28 = tpu.concatenate %25, %22, %27 in 0 : vector<7x16xf32>, vector<32x16xf32>, vector<8x16xf32> -> vector<47x16xf32>
    %c0_17 = arith.constant 0 : index
    %c0_18 = arith.constant 0 : index
    %29 = vector.load %arg8[%c0_17, %c0_18] : memref<1x256xf32, #tpu.memory_space<vmem>>, vector<1x256xf32>
    %30 = vector.shape_cast %29 : vector<1x256xf32> to vector<1x256xf32>
    %31 = vector.broadcast %30 : vector<1x256xf32> to vector<32x256xf32>
    %32 = vector.extract_strided_slice %28 {offsets = [0, 0], sizes = [32, 16], strides = [1, 1]} : vector<47x16xf32> to vector<32x16xf32>
    %c0_19 = arith.constant 0 : index
    %c0_20 = arith.constant 0 : index
    %c0_21 = arith.constant 0 : index
    %33 = vector.load %arg7[%c0_19, %c0_20, %c0_21] : memref<16x16x256xf32, #tpu.memory_space<vmem>>, vector<1x16x256xf32>
    %34 = vector.shape_cast %33 : vector<1x16x256xf32> to vector<16x256xf32>
    %cst_22 = arith.constant dense<0.000000e+00> : vector<32x256xf32>
    %35 = tpu.matmul %32, %34, %cst_22 {dimension_numbers = #tpu.dot_dimension_numbers<[1], [0], [0], [1], [0, 0, 1, 1], [], []>} : vector<32x16xf32>, vector<16x256xf32>, vector<32x256xf32> -> vector<32x256xf32>
    %36 = arith.addf %31, %35 : vector<32x256xf32>
    %37 = vector.extract_strided_slice %28 {offsets = [1, 0], sizes = [32, 16], strides = [1, 1]} : vector<47x16xf32> to vector<32x16xf32>
    %c1 = arith.constant 1 : index
    %c0_23 = arith.constant 0 : index
    %c0_24 = arith.constant 0 : index
    %38 = vector.load %arg7[%c1, %c0_23, %c0_24] : memref<16x16x256xf32, #tpu.memory_space<vmem>>, vector<1x16x256xf32>
    %39 = vector.shape_cast %38 : vector<1x16x256xf32> to vector<16x256xf32>
    %cst_25 = arith.constant dense<0.000000e+00> : vector<32x256xf32>
    %40 = tpu.matmul %37, %39, %cst_25 {dimension_numbers = #tpu.dot_dimension_numbers<[1], [0], [0], [1], [0, 0, 1, 1], [], []>} : vector<32x16xf32>, vector<16x256xf32>, vector<32x256xf32> -> vector<32x256xf32>
    %41 = arith.addf %36, %40 : vector<32x256xf32>
    %42 = vector.extract_strided_slice %28 {offsets = [2, 0], sizes = [32, 16], strides = [1, 1]} : vector<47x16xf32> to vector<32x16xf32>
    %c2 = arith.constant 2 : index
    %c0_26 = arith.constant 0 : index
    %c0_27 = arith.constant 0 : index
    %43 = vector.load %arg7[%c2, %c0_26, %c0_27] : memref<16x16x256xf32, #tpu.memory_space<vmem>>, vector<1x16x256xf32>
    %44 = vector.shape_cast %43 : vector<1x16x256xf32> to vector<16x256xf32>
    %cst_28 = arith.constant dense<0.000000e+00> : vector<32x256xf32>
    %45 = tpu.matmul %42, %44, %cst_28 {dimension_numbers = #tpu.dot_dimension_numbers<[1], [0], [0], [1], [0, 0, 1, 1], [], []>} : vector<32x16xf32>, vector<16x256xf32>, vector<32x256xf32> -> vector<32x256xf32>
    %46 = arith.addf %41, %45 : vector<32x256xf32>
    %47 = vector.extract_strided_slice %28 {offsets = [3, 0], sizes = [32, 16], strides = [1, 1]} : vector<47x16xf32> to vector<32x16xf32>
    %c3 = arith.constant 3 : index
    %c0_29 = arith.constant 0 : index
    %c0_30 = arith.constant 0 : index
    %48 = vector.load %arg7[%c3, %c0_29, %c0_30] : memref<16x16x256xf32, #tpu.memory_space<vmem>>, vector<1x16x256xf32>
    %49 = vector.shape_cast %48 : vector<1x16x256xf32> to vector<16x256xf32>
    %cst_31 = arith.constant dense<0.000000e+00> : vector<32x256xf32>
    %50 = tpu.matmul %47, %49, %cst_31 {dimension_numbers = #tpu.dot_dimension_numbers<[1], [0], [0], [1], [0, 0, 1, 1], [], []>} : vector<32x16xf32>, vector<16x256xf32>, vector<32x256xf32> -> vector<32x256xf32>
    %51 = arith.addf %46, %50 : vector<32x256xf32>
    %52 = vector.extract_strided_slice %28 {offsets = [4, 0], sizes = [32, 16], strides = [1, 1]} : vector<47x16xf32> to vector<32x16xf32>
    %c4 = arith.constant 4 : index
    %c0_32 = arith.constant 0 : index
    %c0_33 = arith.constant 0 : index
    %53 = vector.load %arg7[%c4, %c0_32, %c0_33] : memref<16x16x256xf32, #tpu.memory_space<vmem>>, vector<1x16x256xf32>
    %54 = vector.shape_cast %53 : vector<1x16x256xf32> to vector<16x256xf32>
    %cst_34 = arith.constant dense<0.000000e+00> : vector<32x256xf32>
    %55 = tpu.matmul %52, %54, %cst_34 {dimension_numbers = #tpu.dot_dimension_numbers<[1], [0], [0], [1], [0, 0, 1, 1], [], []>} : vector<32x16xf32>, vector<16x256xf32>, vector<32x256xf32> -> vector<32x256xf32>
    %56 = arith.addf %51, %55 : vector<32x256xf32>
    %57 = vector.extract_strided_slice %28 {offsets = [5, 0], sizes = [32, 16], strides = [1, 1]} : vector<47x16xf32> to vector<32x16xf32>
    %c5 = arith.constant 5 : index
    %c0_35 = arith.constant 0 : index
    %c0_36 = arith.constant 0 : index
    %58 = vector.load %arg7[%c5, %c0_35, %c0_36] : memref<16x16x256xf32, #tpu.memory_space<vmem>>, vector<1x16x256xf32>
    %59 = vector.shape_cast %58 : vector<1x16x256xf32> to vector<16x256xf32>
    %cst_37 = arith.constant dense<0.000000e+00> : vector<32x256xf32>
    %60 = tpu.matmul %57, %59, %cst_37 {dimension_numbers = #tpu.dot_dimension_numbers<[1], [0], [0], [1], [0, 0, 1, 1], [], []>} : vector<32x16xf32>, vector<16x256xf32>, vector<32x256xf32> -> vector<32x256xf32>
    %61 = arith.addf %56, %60 : vector<32x256xf32>
    %62 = vector.extract_strided_slice %28 {offsets = [6, 0], sizes = [32, 16], strides = [1, 1]} : vector<47x16xf32> to vector<32x16xf32>
    %c6 = arith.constant 6 : index
    %c0_38 = arith.constant 0 : index
    %c0_39 = arith.constant 0 : index
    %63 = vector.load %arg7[%c6, %c0_38, %c0_39] : memref<16x16x256xf32, #tpu.memory_space<vmem>>, vector<1x16x256xf32>
    %64 = vector.shape_cast %63 : vector<1x16x256xf32> to vector<16x256xf32>
    %cst_40 = arith.constant dense<0.000000e+00> : vector<32x256xf32>
    %65 = tpu.matmul %62, %64, %cst_40 {dimension_numbers = #tpu.dot_dimension_numbers<[1], [0], [0], [1], [0, 0, 1, 1], [], []>} : vector<32x16xf32>, vector<16x256xf32>, vector<32x256xf32> -> vector<32x256xf32>
    %66 = arith.addf %61, %65 : vector<32x256xf32>
    %67 = vector.extract_strided_slice %28 {offsets = [7, 0], sizes = [32, 16], strides = [1, 1]} : vector<47x16xf32> to vector<32x16xf32>
    %c7 = arith.constant 7 : index
    %c0_41 = arith.constant 0 : index
    %c0_42 = arith.constant 0 : index
    %68 = vector.load %arg7[%c7, %c0_41, %c0_42] : memref<16x16x256xf32, #tpu.memory_space<vmem>>, vector<1x16x256xf32>
    %69 = vector.shape_cast %68 : vector<1x16x256xf32> to vector<16x256xf32>
    %cst_43 = arith.constant dense<0.000000e+00> : vector<32x256xf32>
    %70 = tpu.matmul %67, %69, %cst_43 {dimension_numbers = #tpu.dot_dimension_numbers<[1], [0], [0], [1], [0, 0, 1, 1], [], []>} : vector<32x16xf32>, vector<16x256xf32>, vector<32x256xf32> -> vector<32x256xf32>
    %71 = arith.addf %66, %70 : vector<32x256xf32>
    %72 = vector.extract_strided_slice %28 {offsets = [8, 0], sizes = [32, 16], strides = [1, 1]} : vector<47x16xf32> to vector<32x16xf32>
    %c8 = arith.constant 8 : index
    %c0_44 = arith.constant 0 : index
    %c0_45 = arith.constant 0 : index
    %73 = vector.load %arg7[%c8, %c0_44, %c0_45] : memref<16x16x256xf32, #tpu.memory_space<vmem>>, vector<1x16x256xf32>
    %74 = vector.shape_cast %73 : vector<1x16x256xf32> to vector<16x256xf32>
    %cst_46 = arith.constant dense<0.000000e+00> : vector<32x256xf32>
    %75 = tpu.matmul %72, %74, %cst_46 {dimension_numbers = #tpu.dot_dimension_numbers<[1], [0], [0], [1], [0, 0, 1, 1], [], []>} : vector<32x16xf32>, vector<16x256xf32>, vector<32x256xf32> -> vector<32x256xf32>
    %76 = arith.addf %71, %75 : vector<32x256xf32>
    %77 = vector.extract_strided_slice %28 {offsets = [9, 0], sizes = [32, 16], strides = [1, 1]} : vector<47x16xf32> to vector<32x16xf32>
    %c9 = arith.constant 9 : index
    %c0_47 = arith.constant 0 : index
    %c0_48 = arith.constant 0 : index
    %78 = vector.load %arg7[%c9, %c0_47, %c0_48] : memref<16x16x256xf32, #tpu.memory_space<vmem>>, vector<1x16x256xf32>
    %79 = vector.shape_cast %78 : vector<1x16x256xf32> to vector<16x256xf32>
    %cst_49 = arith.constant dense<0.000000e+00> : vector<32x256xf32>
    %80 = tpu.matmul %77, %79, %cst_49 {dimension_numbers = #tpu.dot_dimension_numbers<[1], [0], [0], [1], [0, 0, 1, 1], [], []>} : vector<32x16xf32>, vector<16x256xf32>, vector<32x256xf32> -> vector<32x256xf32>
    %81 = arith.addf %76, %80 : vector<32x256xf32>
    %82 = vector.extract_strided_slice %28 {offsets = [10, 0], sizes = [32, 16], strides = [1, 1]} : vector<47x16xf32> to vector<32x16xf32>
    %c10 = arith.constant 10 : index
    %c0_50 = arith.constant 0 : index
    %c0_51 = arith.constant 0 : index
    %83 = vector.load %arg7[%c10, %c0_50, %c0_51] : memref<16x16x256xf32, #tpu.memory_space<vmem>>, vector<1x16x256xf32>
    %84 = vector.shape_cast %83 : vector<1x16x256xf32> to vector<16x256xf32>
    %cst_52 = arith.constant dense<0.000000e+00> : vector<32x256xf32>
    %85 = tpu.matmul %82, %84, %cst_52 {dimension_numbers = #tpu.dot_dimension_numbers<[1], [0], [0], [1], [0, 0, 1, 1], [], []>} : vector<32x16xf32>, vector<16x256xf32>, vector<32x256xf32> -> vector<32x256xf32>
    %86 = arith.addf %81, %85 : vector<32x256xf32>
    %87 = vector.extract_strided_slice %28 {offsets = [11, 0], sizes = [32, 16], strides = [1, 1]} : vector<47x16xf32> to vector<32x16xf32>
    %c11 = arith.constant 11 : index
    %c0_53 = arith.constant 0 : index
    %c0_54 = arith.constant 0 : index
    %88 = vector.load %arg7[%c11, %c0_53, %c0_54] : memref<16x16x256xf32, #tpu.memory_space<vmem>>, vector<1x16x256xf32>
    %89 = vector.shape_cast %88 : vector<1x16x256xf32> to vector<16x256xf32>
    %cst_55 = arith.constant dense<0.000000e+00> : vector<32x256xf32>
    %90 = tpu.matmul %87, %89, %cst_55 {dimension_numbers = #tpu.dot_dimension_numbers<[1], [0], [0], [1], [0, 0, 1, 1], [], []>} : vector<32x16xf32>, vector<16x256xf32>, vector<32x256xf32> -> vector<32x256xf32>
    %91 = arith.addf %86, %90 : vector<32x256xf32>
    %92 = vector.extract_strided_slice %28 {offsets = [12, 0], sizes = [32, 16], strides = [1, 1]} : vector<47x16xf32> to vector<32x16xf32>
    %c12 = arith.constant 12 : index
    %c0_56 = arith.constant 0 : index
    %c0_57 = arith.constant 0 : index
    %93 = vector.load %arg7[%c12, %c0_56, %c0_57] : memref<16x16x256xf32, #tpu.memory_space<vmem>>, vector<1x16x256xf32>
    %94 = vector.shape_cast %93 : vector<1x16x256xf32> to vector<16x256xf32>
    %cst_58 = arith.constant dense<0.000000e+00> : vector<32x256xf32>
    %95 = tpu.matmul %92, %94, %cst_58 {dimension_numbers = #tpu.dot_dimension_numbers<[1], [0], [0], [1], [0, 0, 1, 1], [], []>} : vector<32x16xf32>, vector<16x256xf32>, vector<32x256xf32> -> vector<32x256xf32>
    %96 = arith.addf %91, %95 : vector<32x256xf32>
    %97 = vector.extract_strided_slice %28 {offsets = [13, 0], sizes = [32, 16], strides = [1, 1]} : vector<47x16xf32> to vector<32x16xf32>
    %c13 = arith.constant 13 : index
    %c0_59 = arith.constant 0 : index
    %c0_60 = arith.constant 0 : index
    %98 = vector.load %arg7[%c13, %c0_59, %c0_60] : memref<16x16x256xf32, #tpu.memory_space<vmem>>, vector<1x16x256xf32>
    %99 = vector.shape_cast %98 : vector<1x16x256xf32> to vector<16x256xf32>
    %cst_61 = arith.constant dense<0.000000e+00> : vector<32x256xf32>
    %100 = tpu.matmul %97, %99, %cst_61 {dimension_numbers = #tpu.dot_dimension_numbers<[1], [0], [0], [1], [0, 0, 1, 1], [], []>} : vector<32x16xf32>, vector<16x256xf32>, vector<32x256xf32> -> vector<32x256xf32>
    %101 = arith.addf %96, %100 : vector<32x256xf32>
    %102 = vector.extract_strided_slice %28 {offsets = [14, 0], sizes = [32, 16], strides = [1, 1]} : vector<47x16xf32> to vector<32x16xf32>
    %c14 = arith.constant 14 : index
    %c0_62 = arith.constant 0 : index
    %c0_63 = arith.constant 0 : index
    %103 = vector.load %arg7[%c14, %c0_62, %c0_63] : memref<16x16x256xf32, #tpu.memory_space<vmem>>, vector<1x16x256xf32>
    %104 = vector.shape_cast %103 : vector<1x16x256xf32> to vector<16x256xf32>
    %cst_64 = arith.constant dense<0.000000e+00> : vector<32x256xf32>
    %105 = tpu.matmul %102, %104, %cst_64 {dimension_numbers = #tpu.dot_dimension_numbers<[1], [0], [0], [1], [0, 0, 1, 1], [], []>} : vector<32x16xf32>, vector<16x256xf32>, vector<32x256xf32> -> vector<32x256xf32>
    %106 = arith.addf %101, %105 : vector<32x256xf32>
    %107 = vector.extract_strided_slice %28 {offsets = [15, 0], sizes = [32, 16], strides = [1, 1]} : vector<47x16xf32> to vector<32x16xf32>
    %c15 = arith.constant 15 : index
    %c0_65 = arith.constant 0 : index
    %c0_66 = arith.constant 0 : index
    %108 = vector.load %arg7[%c15, %c0_65, %c0_66] : memref<16x16x256xf32, #tpu.memory_space<vmem>>, vector<1x16x256xf32>
    %109 = vector.shape_cast %108 : vector<1x16x256xf32> to vector<16x256xf32>
    %cst_67 = arith.constant dense<0.000000e+00> : vector<32x256xf32>
    %110 = tpu.matmul %107, %109, %cst_67 {dimension_numbers = #tpu.dot_dimension_numbers<[1], [0], [0], [1], [0, 0, 1, 1], [], []>} : vector<32x16xf32>, vector<16x256xf32>, vector<32x256xf32> -> vector<32x256xf32>
    %111 = arith.addf %106, %110 : vector<32x256xf32>
    %cst_68 = arith.constant 0.000000e+00 : f32
    %112 = vector.broadcast %cst_68 : f32 to vector<32x256xf32>
    %113 = arith.maximumf %111, %112 : vector<32x256xf32>
    %114 = vector.extract_strided_slice %113 {offsets = [0, 0], sizes = [31, 256], strides = [1, 1]} : vector<32x256xf32> to vector<31x256xf32>
    %115 = vector.extract_strided_slice %113 {offsets = [1, 0], sizes = [31, 256], strides = [1, 1]} : vector<32x256xf32> to vector<31x256xf32>
    %116 = arith.maximumf %114, %115 : vector<31x256xf32>
    %cst_69 = arith.constant 0.000000e+00 : f32
    %117 = vector.broadcast %cst_69 : f32 to vector<1x256xf32>
    %118 = tpu.concatenate %116, %117 in 0 : vector<31x256xf32>, vector<1x256xf32> -> vector<32x256xf32>
    %c0_70 = arith.constant 0 : index
    %c0_71 = arith.constant 0 : index
    %119 = vector.load %arg13[%c0_70, %c0_71] : memref<1x16xf32, #tpu.memory_space<vmem>>, vector<1x16xf32>
    %c0_72 = arith.constant 0 : index
    %c0_73 = arith.constant 0 : index
    %120 = vector.load %arg10[%c0_72, %c0_73] : memref<1x16xf32, #tpu.memory_space<vmem>>, vector<1x16xf32>
    %121 = vector.shape_cast %120 : vector<1x16xf32> to vector<1x16xf32>
    %122 = vector.broadcast %121 : vector<1x16xf32> to vector<28x16xf32>
    %123 = vector.extract_strided_slice %118 {offsets = [0, 0], sizes = [28, 256], strides = [1, 1]} : vector<32x256xf32> to vector<28x256xf32>
    %c0_74 = arith.constant 0 : index
    %c0_75 = arith.constant 0 : index
    %c0_76 = arith.constant 0 : index
    %124 = vector.load %arg9[%c0_74, %c0_75, %c0_76] : memref<5x256x16xf32, #tpu.memory_space<vmem>>, vector<1x256x16xf32>
    %125 = vector.shape_cast %124 : vector<1x256x16xf32> to vector<256x16xf32>
    %cst_77 = arith.constant dense<0.000000e+00> : vector<28x16xf32>
    %126 = tpu.matmul %123, %125, %cst_77 {dimension_numbers = #tpu.dot_dimension_numbers<[1], [0], [0], [1], [0, 0, 1, 1], [], []>} : vector<28x256xf32>, vector<256x16xf32>, vector<28x16xf32> -> vector<28x16xf32>
    %127 = arith.addf %122, %126 : vector<28x16xf32>
    %128 = vector.extract_strided_slice %118 {offsets = [1, 0], sizes = [28, 256], strides = [1, 1]} : vector<32x256xf32> to vector<28x256xf32>
    %c1_78 = arith.constant 1 : index
    %c0_79 = arith.constant 0 : index
    %c0_80 = arith.constant 0 : index
    %129 = vector.load %arg9[%c1_78, %c0_79, %c0_80] : memref<5x256x16xf32, #tpu.memory_space<vmem>>, vector<1x256x16xf32>
    %130 = vector.shape_cast %129 : vector<1x256x16xf32> to vector<256x16xf32>
    %cst_81 = arith.constant dense<0.000000e+00> : vector<28x16xf32>
    %131 = tpu.matmul %128, %130, %cst_81 {dimension_numbers = #tpu.dot_dimension_numbers<[1], [0], [0], [1], [0, 0, 1, 1], [], []>} : vector<28x256xf32>, vector<256x16xf32>, vector<28x16xf32> -> vector<28x16xf32>
    %132 = arith.addf %127, %131 : vector<28x16xf32>
    %133 = vector.extract_strided_slice %118 {offsets = [2, 0], sizes = [28, 256], strides = [1, 1]} : vector<32x256xf32> to vector<28x256xf32>
    %c2_82 = arith.constant 2 : index
    %c0_83 = arith.constant 0 : index
    %c0_84 = arith.constant 0 : index
    %134 = vector.load %arg9[%c2_82, %c0_83, %c0_84] : memref<5x256x16xf32, #tpu.memory_space<vmem>>, vector<1x256x16xf32>
    %135 = vector.shape_cast %134 : vector<1x256x16xf32> to vector<256x16xf32>
    %cst_85 = arith.constant dense<0.000000e+00> : vector<28x16xf32>
    %136 = tpu.matmul %133, %135, %cst_85 {dimension_numbers = #tpu.dot_dimension_numbers<[1], [0], [0], [1], [0, 0, 1, 1], [], []>} : vector<28x256xf32>, vector<256x16xf32>, vector<28x16xf32> -> vector<28x16xf32>
    %137 = arith.addf %132, %136 : vector<28x16xf32>
    %138 = vector.extract_strided_slice %118 {offsets = [3, 0], sizes = [28, 256], strides = [1, 1]} : vector<32x256xf32> to vector<28x256xf32>
    %c3_86 = arith.constant 3 : index
    %c0_87 = arith.constant 0 : index
    %c0_88 = arith.constant 0 : index
    %139 = vector.load %arg9[%c3_86, %c0_87, %c0_88] : memref<5x256x16xf32, #tpu.memory_space<vmem>>, vector<1x256x16xf32>
    %140 = vector.shape_cast %139 : vector<1x256x16xf32> to vector<256x16xf32>
    %cst_89 = arith.constant dense<0.000000e+00> : vector<28x16xf32>
    %141 = tpu.matmul %138, %140, %cst_89 {dimension_numbers = #tpu.dot_dimension_numbers<[1], [0], [0], [1], [0, 0, 1, 1], [], []>} : vector<28x256xf32>, vector<256x16xf32>, vector<28x16xf32> -> vector<28x16xf32>
    %142 = arith.addf %137, %141 : vector<28x16xf32>
    %143 = vector.extract_strided_slice %118 {offsets = [4, 0], sizes = [28, 256], strides = [1, 1]} : vector<32x256xf32> to vector<28x256xf32>
    %c4_90 = arith.constant 4 : index
    %c0_91 = arith.constant 0 : index
    %c0_92 = arith.constant 0 : index
    %144 = vector.load %arg9[%c4_90, %c0_91, %c0_92] : memref<5x256x16xf32, #tpu.memory_space<vmem>>, vector<1x256x16xf32>
    %145 = vector.shape_cast %144 : vector<1x256x16xf32> to vector<256x16xf32>
    %cst_93 = arith.constant dense<0.000000e+00> : vector<28x16xf32>
    %146 = tpu.matmul %143, %145, %cst_93 {dimension_numbers = #tpu.dot_dimension_numbers<[1], [0], [0], [1], [0, 0, 1, 1], [], []>} : vector<28x256xf32>, vector<256x16xf32>, vector<28x16xf32> -> vector<28x16xf32>
    %147 = arith.addf %142, %146 : vector<28x16xf32>
    %148 = vector.shape_cast %119 : vector<1x16xf32> to vector<1x16xf32>
    %149 = vector.broadcast %148 : vector<1x16xf32> to vector<2x16xf32>
    %150 = vector.shape_cast %119 : vector<1x16xf32> to vector<1x16xf32>
    %151 = vector.broadcast %150 : vector<1x16xf32> to vector<2x16xf32>
    %152 = tpu.concatenate %149, %147, %151 in 0 : vector<2x16xf32>, vector<28x16xf32>, vector<2x16xf32> -> vector<32x16xf32>
    %cst_94 = arith.constant 0.000000e+00 : f32
    %153 = vector.broadcast %cst_94 : f32 to vector<32x16xf32>
    %154 = arith.maximumf %152, %153 : vector<32x16xf32>
    %c0_95 = arith.constant 0 : index
    %c0_96 = arith.constant 0 : index
    %155 = vector.load %arg12[%c0_95, %c0_96] : memref<1x16xf32, #tpu.memory_space<vmem>>, vector<1x16xf32>
    %156 = vector.shape_cast %155 : vector<1x16xf32> to vector<1x16xf32>
    %157 = vector.broadcast %156 : vector<1x16xf32> to vector<28x16xf32>
    %158 = vector.extract_strided_slice %154 {offsets = [0, 0], sizes = [28, 16], strides = [1, 1]} : vector<32x16xf32> to vector<28x16xf32>
    %c0_97 = arith.constant 0 : index
    %c0_98 = arith.constant 0 : index
    %c0_99 = arith.constant 0 : index
    %159 = vector.load %arg11[%c0_97, %c0_98, %c0_99] : memref<5x16x16xf32, #tpu.memory_space<vmem>>, vector<1x16x16xf32>
    %160 = vector.shape_cast %159 : vector<1x16x16xf32> to vector<16x16xf32>
    %cst_100 = arith.constant dense<0.000000e+00> : vector<28x16xf32>
    %161 = tpu.matmul %158, %160, %cst_100 {dimension_numbers = #tpu.dot_dimension_numbers<[1], [0], [0], [1], [0, 0, 1, 1], [], []>} : vector<28x16xf32>, vector<16x16xf32>, vector<28x16xf32> -> vector<28x16xf32>
    %162 = arith.addf %157, %161 : vector<28x16xf32>
    %163 = vector.extract_strided_slice %154 {offsets = [1, 0], sizes = [28, 16], strides = [1, 1]} : vector<32x16xf32> to vector<28x16xf32>
    %c1_101 = arith.constant 1 : index
    %c0_102 = arith.constant 0 : index
    %c0_103 = arith.constant 0 : index
    %164 = vector.load %arg11[%c1_101, %c0_102, %c0_103] : memref<5x16x16xf32, #tpu.memory_space<vmem>>, vector<1x16x16xf32>
    %165 = vector.shape_cast %164 : vector<1x16x16xf32> to vector<16x16xf32>
    %cst_104 = arith.constant dense<0.000000e+00> : vector<28x16xf32>
    %166 = tpu.matmul %163, %165, %cst_104 {dimension_numbers = #tpu.dot_dimension_numbers<[1], [0], [0], [1], [0, 0, 1, 1], [], []>} : vector<28x16xf32>, vector<16x16xf32>, vector<28x16xf32> -> vector<28x16xf32>
    %167 = arith.addf %162, %166 : vector<28x16xf32>
    %168 = vector.extract_strided_slice %154 {offsets = [2, 0], sizes = [28, 16], strides = [1, 1]} : vector<32x16xf32> to vector<28x16xf32>
    %c2_105 = arith.constant 2 : index
    %c0_106 = arith.constant 0 : index
    %c0_107 = arith.constant 0 : index
    %169 = vector.load %arg11[%c2_105, %c0_106, %c0_107] : memref<5x16x16xf32, #tpu.memory_space<vmem>>, vector<1x16x16xf32>
    %170 = vector.shape_cast %169 : vector<1x16x16xf32> to vector<16x16xf32>
    %cst_108 = arith.constant dense<0.000000e+00> : vector<28x16xf32>
    %171 = tpu.matmul %168, %170, %cst_108 {dimension_numbers = #tpu.dot_dimension_numbers<[1], [0], [0], [1], [0, 0, 1, 1], [], []>} : vector<28x16xf32>, vector<16x16xf32>, vector<28x16xf32> -> vector<28x16xf32>
    %172 = arith.addf %167, %171 : vector<28x16xf32>
    %173 = vector.extract_strided_slice %154 {offsets = [3, 0], sizes = [28, 16], strides = [1, 1]} : vector<32x16xf32> to vector<28x16xf32>
    %c3_109 = arith.constant 3 : index
    %c0_110 = arith.constant 0 : index
    %c0_111 = arith.constant 0 : index
    %174 = vector.load %arg11[%c3_109, %c0_110, %c0_111] : memref<5x16x16xf32, #tpu.memory_space<vmem>>, vector<1x16x16xf32>
    %175 = vector.shape_cast %174 : vector<1x16x16xf32> to vector<16x16xf32>
    %cst_112 = arith.constant dense<0.000000e+00> : vector<28x16xf32>
    %176 = tpu.matmul %173, %175, %cst_112 {dimension_numbers = #tpu.dot_dimension_numbers<[1], [0], [0], [1], [0, 0, 1, 1], [], []>} : vector<28x16xf32>, vector<16x16xf32>, vector<28x16xf32> -> vector<28x16xf32>
    %177 = arith.addf %172, %176 : vector<28x16xf32>
    %178 = vector.extract_strided_slice %154 {offsets = [4, 0], sizes = [28, 16], strides = [1, 1]} : vector<32x16xf32> to vector<28x16xf32>
    %c4_113 = arith.constant 4 : index
    %c0_114 = arith.constant 0 : index
    %c0_115 = arith.constant 0 : index
    %179 = vector.load %arg11[%c4_113, %c0_114, %c0_115] : memref<5x16x16xf32, #tpu.memory_space<vmem>>, vector<1x16x16xf32>
    %180 = vector.shape_cast %179 : vector<1x16x16xf32> to vector<16x16xf32>
    %cst_116 = arith.constant dense<0.000000e+00> : vector<28x16xf32>
    %181 = tpu.matmul %178, %180, %cst_116 {dimension_numbers = #tpu.dot_dimension_numbers<[1], [0], [0], [1], [0, 0, 1, 1], [], []>} : vector<28x16xf32>, vector<16x16xf32>, vector<28x16xf32> -> vector<28x16xf32>
    %182 = arith.addf %177, %181 : vector<28x16xf32>
    %183 = vector.shape_cast %119 : vector<1x16xf32> to vector<1x16xf32>
    %184 = vector.broadcast %183 : vector<1x16xf32> to vector<2x16xf32>
    %185 = vector.shape_cast %119 : vector<1x16xf32> to vector<1x16xf32>
    %186 = vector.broadcast %185 : vector<1x16xf32> to vector<2x16xf32>
    %187 = tpu.concatenate %184, %182, %186 in 0 : vector<2x16xf32>, vector<28x16xf32>, vector<2x16xf32> -> vector<32x16xf32>
    %cst_117 = arith.constant 0.000000e+00 : f32
    %188 = vector.broadcast %cst_117 : f32 to vector<32x16xf32>
    %189 = arith.maximumf %187, %188 : vector<32x16xf32>
    %190 = arith.addf %189, %22 : vector<32x16xf32>
    %c0_118 = arith.constant 0 : index
    %c0_119 = arith.constant 0 : index
    %191 = vector.load %arg14[%c0_118, %c0_119] : memref<16x16xf32, #tpu.memory_space<vmem>>, vector<16x16xf32>
    %c0_120 = arith.constant 0 : index
    %c0_121 = arith.constant 0 : index
    %192 = vector.load %arg15[%c0_120, %c0_121] : memref<1x16xf32, #tpu.memory_space<vmem>>, vector<1x16xf32>
    %cst_122 = arith.constant dense<0.000000e+00> : vector<32x16xf32>
    %193 = tpu.matmul %190, %191, %cst_122 {dimension_numbers = #tpu.dot_dimension_numbers<[1], [0], [0], [1], [0, 0, 1, 1], [], []>} : vector<32x16xf32>, vector<16x16xf32>, vector<32x16xf32> -> vector<32x16xf32>
    %194 = vector.broadcast %192 : vector<1x16xf32> to vector<32x16xf32>
    %195 = arith.addf %193, %194 : vector<32x16xf32>
    %cst_123 = arith.constant 0.000000e+00 : f32
    %196 = vector.broadcast %cst_123 : f32 to vector<32x16xf32>
    %197 = arith.maximumf %195, %196 : vector<32x16xf32>
    %198 = arith.negf %195 : vector<32x16xf32>
    %199 = math.exp %198 : vector<32x16xf32>
    %cst_124 = arith.constant 1.000000e+00 : f32
    %200 = vector.broadcast %cst_124 : f32 to vector<32x16xf32>
    %201 = arith.addf %200, %199 : vector<32x16xf32>
    %202 = arith.divf %200, %201 : vector<32x16xf32>
    %203 = arith.mulf %197, %202 : vector<32x16xf32>
    %cst_125 = arith.constant 1.000000e+00 : f32
    %204 = vector.broadcast %cst_125 : f32 to vector<32x16xf32>
    %205 = arith.subf %204, %202 : vector<32x16xf32>
    %206 = arith.mulf %190, %205 : vector<32x16xf32>
    %207 = arith.addf %203, %206 : vector<32x16xf32>
    %cst_126 = arith.constant dense<0.000000e+00> : vector<32x16xf32>
    %208 = tpu.matmul %207, %191, %cst_126 {dimension_numbers = #tpu.dot_dimension_numbers<[1], [0], [0], [1], [0, 0, 1, 1], [], []>} : vector<32x16xf32>, vector<16x16xf32>, vector<32x16xf32> -> vector<32x16xf32>
    %209 = vector.broadcast %192 : vector<1x16xf32> to vector<32x16xf32>
    %210 = arith.addf %208, %209 : vector<32x16xf32>
    %cst_127 = arith.constant 0.000000e+00 : f32
    %211 = vector.broadcast %cst_127 : f32 to vector<32x16xf32>
    %212 = arith.maximumf %210, %211 : vector<32x16xf32>
    %213 = arith.negf %210 : vector<32x16xf32>
    %214 = math.exp %213 : vector<32x16xf32>
    %cst_128 = arith.constant 1.000000e+00 : f32
    %215 = vector.broadcast %cst_128 : f32 to vector<32x16xf32>
    %216 = arith.addf %215, %214 : vector<32x16xf32>
    %217 = arith.divf %215, %216 : vector<32x16xf32>
    %218 = arith.mulf %212, %217 : vector<32x16xf32>
    %cst_129 = arith.constant 1.000000e+00 : f32
    %219 = vector.broadcast %cst_129 : f32 to vector<32x16xf32>
    %220 = arith.subf %219, %217 : vector<32x16xf32>
    %221 = arith.mulf %207, %220 : vector<32x16xf32>
    %222 = arith.addf %218, %221 : vector<32x16xf32>
    %cst_130 = arith.constant dense<0.000000e+00> : vector<32x16xf32>
    %223 = tpu.matmul %222, %191, %cst_130 {dimension_numbers = #tpu.dot_dimension_numbers<[1], [0], [0], [1], [0, 0, 1, 1], [], []>} : vector<32x16xf32>, vector<16x16xf32>, vector<32x16xf32> -> vector<32x16xf32>
    %224 = vector.broadcast %192 : vector<1x16xf32> to vector<32x16xf32>
    %225 = arith.addf %223, %224 : vector<32x16xf32>
    %cst_131 = arith.constant 0.000000e+00 : f32
    %226 = vector.broadcast %cst_131 : f32 to vector<32x16xf32>
    %227 = arith.maximumf %225, %226 : vector<32x16xf32>
    %228 = arith.negf %225 : vector<32x16xf32>
    %229 = math.exp %228 : vector<32x16xf32>
    %cst_132 = arith.constant 1.000000e+00 : f32
    %230 = vector.broadcast %cst_132 : f32 to vector<32x16xf32>
    %231 = arith.addf %230, %229 : vector<32x16xf32>
    %232 = arith.divf %230, %231 : vector<32x16xf32>
    %233 = arith.mulf %227, %232 : vector<32x16xf32>
    %cst_133 = arith.constant 1.000000e+00 : f32
    %234 = vector.broadcast %cst_133 : f32 to vector<32x16xf32>
    %235 = arith.subf %234, %232 : vector<32x16xf32>
    %236 = arith.mulf %222, %235 : vector<32x16xf32>
    %237 = arith.addf %233, %236 : vector<32x16xf32>
    %cst_134 = arith.constant dense<0.000000e+00> : vector<32x16xf32>
    %238 = tpu.matmul %237, %191, %cst_134 {dimension_numbers = #tpu.dot_dimension_numbers<[1], [0], [0], [1], [0, 0, 1, 1], [], []>} : vector<32x16xf32>, vector<16x16xf32>, vector<32x16xf32> -> vector<32x16xf32>
    %239 = vector.broadcast %192 : vector<1x16xf32> to vector<32x16xf32>
    %240 = arith.addf %238, %239 : vector<32x16xf32>
    %cst_135 = arith.constant 0.000000e+00 : f32
    %241 = vector.broadcast %cst_135 : f32 to vector<32x16xf32>
    %242 = arith.maximumf %240, %241 : vector<32x16xf32>
    %243 = arith.negf %240 : vector<32x16xf32>
    %244 = math.exp %243 : vector<32x16xf32>
    %cst_136 = arith.constant 1.000000e+00 : f32
    %245 = vector.broadcast %cst_136 : f32 to vector<32x16xf32>
    %246 = arith.addf %245, %244 : vector<32x16xf32>
    %247 = arith.divf %245, %246 : vector<32x16xf32>
    %248 = arith.mulf %242, %247 : vector<32x16xf32>
    %cst_137 = arith.constant 1.000000e+00 : f32
    %249 = vector.broadcast %cst_137 : f32 to vector<32x16xf32>
    %250 = arith.subf %249, %247 : vector<32x16xf32>
    %251 = arith.mulf %237, %250 : vector<32x16xf32>
    %252 = arith.addf %248, %251 : vector<32x16xf32>
    %c0_138 = arith.constant 0 : index
    %c0_139 = arith.constant 0 : index
    %c0_140 = arith.constant 0 : index
    %253 = vector.load %arg16[%c0_138, %c0_139, %c0_140] : memref<1x32x16xf32, #tpu.memory_space<vmem>>, vector<1x32x16xf32>
    %254 = vector.shape_cast %253 : vector<1x32x16xf32> to vector<32x16xf32>
    %255 = vector.shape_cast %252 : vector<32x16xf32> to vector<1x32x16xf32>
    tpu.vector_store %arg16[%c0_138, %c0_139, %c0_140], %255 {strides = array<i32>} : memref<1x32x16xf32, #tpu.memory_space<vmem>>, vector<1x32x16xf32>,
    return
  }
  func.func @transform_0(%arg0: i32) -> (i32, i32, i32) {
    %c0_i32 = arith.constant 0 : i32
    %c0_i32_0 = arith.constant 0 : i32
    %c0_i32_1 = arith.constant 0 : i32
    return %arg0, %c0_i32, %c0_i32_0 : i32, i32, i32
  }
  func.func @transform_1(%arg0: i32) -> (i32, i32) {
    %c0_i32 = arith.constant 0 : i32
    %c0_i32_0 = arith.constant 0 : i32
    %c0_i32_1 = arith.constant 0 : i32
    return %c0_i32, %c0_i32_0 : i32, i32
  }
  func.func @transform_2(%arg0: i32) -> (i32, i32) {
    %c0_i32 = arith.constant 0 : i32
    %c0_i32_0 = arith.constant 0 : i32
    %c0_i32_1 = arith.constant 0 : i32
    return %c0_i32, %c0_i32_0 : i32, i32
  }
  func.func @transform_3(%arg0: i32) -> (i32, i32) {
    %c0_i32 = arith.constant 0 : i32
    %c0_i32_0 = arith.constant 0 : i32
    %c0_i32_1 = arith.constant 0 : i32
    return %c0_i32, %c0_i32_0 : i32, i32
  }
  func.func @transform_4(%arg0: i32) -> (i32, i32) {
    %c0_i32 = arith.constant 0 : i32
    %c0_i32_0 = arith.constant 0 : i32
    %c0_i32_1 = arith.constant 0 : i32
    return %c0_i32, %c0_i32_0 : i32, i32
  }
  func.func @transform_5(%arg0: i32) -> (i32, i32) {
    %c0_i32 = arith.constant 0 : i32
    %c0_i32_0 = arith.constant 0 : i32
    %c0_i32_1 = arith.constant 0 : i32
    return %c0_i32, %c0_i32_0 : i32, i32
  }
  func.func @transform_6(%arg0: i32) -> (i32, i32, i32) {
    %c0_i32 = arith.constant 0 : i32
    %c0_i32_0 = arith.constant 0 : i32
    %c0_i32_1 = arith.constant 0 : i32
    %c0_i32_2 = arith.constant 0 : i32
    return %c0_i32, %c0_i32_0, %c0_i32_1 : i32, i32, i32
  }
  func.func @transform_7(%arg0: i32) -> (i32, i32) {
    %c0_i32 = arith.constant 0 : i32
    %c0_i32_0 = arith.constant 0 : i32
    %c0_i32_1 = arith.constant 0 : i32
    return %c0_i32, %c0_i32_0 : i32, i32
  }
  func.func @transform_8(%arg0: i32) -> (i32, i32, i32) {
    %c0_i32 = arith.constant 0 : i32
    %c0_i32_0 = arith.constant 0 : i32
    %c0_i32_1 = arith.constant 0 : i32
    %c0_i32_2 = arith.constant 0 : i32
    return %c0_i32, %c0_i32_0, %c0_i32_1 : i32, i32, i32
  }
  func.func @transform_9(%arg0: i32) -> (i32, i32) {
    %c0_i32 = arith.constant 0 : i32
    %c0_i32_0 = arith.constant 0 : i32
    %c0_i32_1 = arith.constant 0 : i32
    return %c0_i32, %c0_i32_0 : i32, i32
  }
  func.func @transform_10(%arg0: i32) -> (i32, i32, i32) {
    %c0_i32 = arith.constant 0 : i32
    %c0_i32_0 = arith.constant 0 : i32
    %c0_i32_1 = arith.constant 0 : i32
    %c0_i32_2 = arith.constant 0 : i32
    return %c0_i32, %c0_i32_0, %c0_i32_1 : i32, i32, i32
  }
  func.func @transform_11(%arg0: i32) -> (i32, i32) {
    %c0_i32 = arith.constant 0 : i32
    %c0_i32_0 = arith.constant 0 : i32
    %c0_i32_1 = arith.constant 0 : i32
    return %c0_i32, %c0_i32_0 : i32, i32
  }
  func.func @transform_12(%arg0: i32) -> (i32, i32) {
    %c0_i32 = arith.constant 0 : i32
    %c0_i32_0 = arith.constant 0 : i32
    %c0_i32_1 = arith.constant 0 : i32
    return %c0_i32, %c0_i32_0 : i32, i32
  }
  func.func @transform_13(%arg0: i32) -> (i32, i32) {
    %c0_i32 = arith.constant 0 : i32
    %c0_i32_0 = arith.constant 0 : i32
    %c0_i32_1 = arith.constant 0 : i32
    return %c0_i32, %c0_i32_0 : i32, i32
  }
  func.func @transform_14(%arg0: i32) -> (i32, i32) {
    %c0_i32 = arith.constant 0 : i32
    %c0_i32_0 = arith.constant 0 : i32
    %c0_i32_1 = arith.constant 0 : i32
    return %c0_i32, %c0_i32_0 : i32, i32
  }
  func.func @transform_15(%arg0: i32) -> (i32, i32, i32) {
    %c0_i32 = arith.constant 0 : i32
    %c0_i32_0 = arith.constant 0 : i32
    %c0_i32_1 = arith.constant 0 : i32
    return %arg0, %c0_i32, %c0_i32_0 : i32, i32, i32
  }
}

module attributes {stable_mosaic.version = 11 : i64} {
  func.func @_gru_readout_kernel(%arg0: memref<2x32x16xf32, #tpu.memory_space<vmem>>, %arg1: memref<2x32x16xf32, #tpu.memory_space<vmem>>, %arg2: memref<16x48xf32, #tpu.memory_space<vmem>>, %arg3: memref<16x48xf32, #tpu.memory_space<vmem>>, %arg4: memref<1x48xf32, #tpu.memory_space<vmem>>, %arg5: memref<1x48xf32, #tpu.memory_space<vmem>>, %arg6: memref<16x48xf32, #tpu.memory_space<vmem>>, %arg7: memref<16x48xf32, #tpu.memory_space<vmem>>, %arg8: memref<1x48xf32, #tpu.memory_space<vmem>>, %arg9: memref<1x48xf32, #tpu.memory_space<vmem>>, %arg10: memref<32x12xf32, #tpu.memory_space<vmem>>, %arg11: memref<2x32x12xf32, #tpu.memory_space<vmem>>) attributes {dimension_semantics = [], scalar_prefetch = 0 : i64, scratch_operands = 0 : i64, tpu.core_type = #tpu.core_type<tc>} {
    %c0 = arith.constant 0 : index
    %c0_0 = arith.constant 0 : index
    %0 = vector.load %arg2[%c0, %c0_0] : memref<16x48xf32, #tpu.memory_space<vmem>>, vector<16x48xf32>
    %c0_1 = arith.constant 0 : index
    %c0_2 = arith.constant 0 : index
    %1 = vector.load %arg3[%c0_1, %c0_2] : memref<16x48xf32, #tpu.memory_space<vmem>>, vector<16x48xf32>
    %c0_3 = arith.constant 0 : index
    %c0_4 = arith.constant 0 : index
    %2 = vector.load %arg4[%c0_3, %c0_4] : memref<1x48xf32, #tpu.memory_space<vmem>>, vector<1x48xf32>
    %c0_5 = arith.constant 0 : index
    %c0_6 = arith.constant 0 : index
    %3 = vector.load %arg5[%c0_5, %c0_6] : memref<1x48xf32, #tpu.memory_space<vmem>>, vector<1x48xf32>
    %c0_7 = arith.constant 0 : index
    %c0_8 = arith.constant 0 : index
    %4 = vector.load %arg6[%c0_7, %c0_8] : memref<16x48xf32, #tpu.memory_space<vmem>>, vector<16x48xf32>
    %c0_9 = arith.constant 0 : index
    %c0_10 = arith.constant 0 : index
    %5 = vector.load %arg7[%c0_9, %c0_10] : memref<16x48xf32, #tpu.memory_space<vmem>>, vector<16x48xf32>
    %c0_11 = arith.constant 0 : index
    %c0_12 = arith.constant 0 : index
    %6 = vector.load %arg8[%c0_11, %c0_12] : memref<1x48xf32, #tpu.memory_space<vmem>>, vector<1x48xf32>
    %c0_13 = arith.constant 0 : index
    %c0_14 = arith.constant 0 : index
    %7 = vector.load %arg9[%c0_13, %c0_14] : memref<1x48xf32, #tpu.memory_space<vmem>>, vector<1x48xf32>
    %c0_15 = arith.constant 0 : index
    %c0_16 = arith.constant 0 : index
    %8 = vector.load %arg10[%c0_15, %c0_16] : memref<32x12xf32, #tpu.memory_space<vmem>>, vector<32x12xf32>
    %9 = vector.extract_strided_slice %8 {offsets = [0, 0], sizes = [16, 12], strides = [1, 1]} : vector<32x12xf32> to vector<16x12xf32>
    %10 = vector.extract_strided_slice %8 {offsets = [16, 0], sizes = [16, 12], strides = [1, 1]} : vector<32x12xf32> to vector<16x12xf32>
    %c0_17 = arith.constant 0 : index
    %c0_18 = arith.constant 0 : index
    %c0_19 = arith.constant 0 : index
    %11 = vector.load %arg1[%c0_17, %c0_18, %c0_19] : memref<2x32x16xf32, #tpu.memory_space<vmem>>, vector<1x32x16xf32>
    %12 = vector.shape_cast %11 : vector<1x32x16xf32> to vector<32x16xf32>
    %c0_20 = arith.constant 0 : index
    %c0_21 = arith.constant 0 : index
    %c0_22 = arith.constant 0 : index
    %13 = vector.load %arg0[%c0_20, %c0_21, %c0_22] : memref<2x32x16xf32, #tpu.memory_space<vmem>>, vector<1x32x16xf32>
    %14 = vector.shape_cast %13 : vector<1x32x16xf32> to vector<32x16xf32>
    %cst = arith.constant dense<0.000000e+00> : vector<32x48xf32>
    %15 = tpu.matmul %14, %0, %cst {dimension_numbers = #tpu.dot_dimension_numbers<[1], [0], [0], [1], [0, 0, 1, 1], [], []>} : vector<32x16xf32>, vector<16x48xf32>, vector<32x48xf32> -> vector<32x48xf32>
    %16 = vector.broadcast %2 : vector<1x48xf32> to vector<32x48xf32>
    %17 = arith.addf %15, %16 : vector<32x48xf32>
    %cst_23 = arith.constant dense<0.000000e+00> : vector<32x48xf32>
    %18 = tpu.matmul %12, %1, %cst_23 {dimension_numbers = #tpu.dot_dimension_numbers<[1], [0], [0], [1], [0, 0, 1, 1], [], []>} : vector<32x16xf32>, vector<16x48xf32>, vector<32x48xf32> -> vector<32x48xf32>
    %19 = vector.broadcast %3 : vector<1x48xf32> to vector<32x48xf32>
    %20 = arith.addf %18, %19 : vector<32x48xf32>
    %21 = vector.extract_strided_slice %17 {offsets = [0, 0], sizes = [32, 16], strides = [1, 1]} : vector<32x48xf32> to vector<32x16xf32>
    %22 = vector.extract_strided_slice %20 {offsets = [0, 0], sizes = [32, 16], strides = [1, 1]} : vector<32x48xf32> to vector<32x16xf32>
    %23 = arith.addf %21, %22 : vector<32x16xf32>
    %24 = arith.negf %23 : vector<32x16xf32>
    %25 = math.exp %24 : vector<32x16xf32>
    %cst_24 = arith.constant 1.000000e+00 : f32
    %26 = vector.broadcast %cst_24 : f32 to vector<32x16xf32>
    %27 = arith.addf %26, %25 : vector<32x16xf32>
    %28 = arith.divf %26, %27 : vector<32x16xf32>
    %29 = vector.extract_strided_slice %17 {offsets = [0, 16], sizes = [32, 16], strides = [1, 1]} : vector<32x48xf32> to vector<32x16xf32>
    %30 = vector.extract_strided_slice %20 {offsets = [0, 16], sizes = [32, 16], strides = [1, 1]} : vector<32x48xf32> to vector<32x16xf32>
    %31 = arith.addf %29, %30 : vector<32x16xf32>
    %32 = arith.negf %31 : vector<32x16xf32>
    %33 = math.exp %32 : vector<32x16xf32>
    %cst_25 = arith.constant 1.000000e+00 : f32
    %34 = vector.broadcast %cst_25 : f32 to vector<32x16xf32>
    %35 = arith.addf %34, %33 : vector<32x16xf32>
    %36 = arith.divf %34, %35 : vector<32x16xf32>
    %37 = vector.extract_strided_slice %17 {offsets = [0, 32], sizes = [32, 16], strides = [1, 1]} : vector<32x48xf32> to vector<32x16xf32>
    %38 = vector.extract_strided_slice %20 {offsets = [0, 32], sizes = [32, 16], strides = [1, 1]} : vector<32x48xf32> to vector<32x16xf32>
    %39 = arith.mulf %28, %38 : vector<32x16xf32>
    %40 = arith.addf %37, %39 : vector<32x16xf32>
    %41 = math.tanh %40 : vector<32x16xf32>
    %cst_26 = arith.constant 1.000000e+00 : f32
    %42 = vector.broadcast %cst_26 : f32 to vector<32x16xf32>
    %43 = arith.subf %42, %36 : vector<32x16xf32>
    %44 = arith.mulf %43, %41 : vector<32x16xf32>
    %45 = arith.mulf %36, %12 : vector<32x16xf32>
    %46 = arith.addf %44, %45 : vector<32x16xf32>
    %cst_27 = arith.constant dense<0.000000e+00> : vector<32x12xf32>
    %47 = tpu.matmul %46, %9, %cst_27 {dimension_numbers = #tpu.dot_dimension_numbers<[1], [0], [0], [1], [0, 0, 1, 1], [], []>} : vector<32x16xf32>, vector<16x12xf32>, vector<32x12xf32> -> vector<32x12xf32>
    %c1 = arith.constant 1 : index
    %c0_28 = arith.constant 0 : index
    %c0_29 = arith.constant 0 : index
    %48 = vector.load %arg0[%c1, %c0_28, %c0_29] : memref<2x32x16xf32, #tpu.memory_space<vmem>>, vector<1x32x16xf32>
    %49 = vector.shape_cast %48 : vector<1x32x16xf32> to vector<32x16xf32>
    %cst_30 = arith.constant dense<0.000000e+00> : vector<32x48xf32>
    %50 = tpu.matmul %49, %0, %cst_30 {dimension_numbers = #tpu.dot_dimension_numbers<[1], [0], [0], [1], [0, 0, 1, 1], [], []>} : vector<32x16xf32>, vector<16x48xf32>, vector<32x48xf32> -> vector<32x48xf32>
    %51 = vector.broadcast %2 : vector<1x48xf32> to vector<32x48xf32>
    %52 = arith.addf %50, %51 : vector<32x48xf32>
    %cst_31 = arith.constant dense<0.000000e+00> : vector<32x48xf32>
    %53 = tpu.matmul %46, %1, %cst_31 {dimension_numbers = #tpu.dot_dimension_numbers<[1], [0], [0], [1], [0, 0, 1, 1], [], []>} : vector<32x16xf32>, vector<16x48xf32>, vector<32x48xf32> -> vector<32x48xf32>
    %54 = vector.broadcast %3 : vector<1x48xf32> to vector<32x48xf32>
    %55 = arith.addf %53, %54 : vector<32x48xf32>
    %56 = vector.extract_strided_slice %52 {offsets = [0, 0], sizes = [32, 16], strides = [1, 1]} : vector<32x48xf32> to vector<32x16xf32>
    %57 = vector.extract_strided_slice %55 {offsets = [0, 0], sizes = [32, 16], strides = [1, 1]} : vector<32x48xf32> to vector<32x16xf32>
    %58 = arith.addf %56, %57 : vector<32x16xf32>
    %59 = arith.negf %58 : vector<32x16xf32>
    %60 = math.exp %59 : vector<32x16xf32>
    %cst_32 = arith.constant 1.000000e+00 : f32
    %61 = vector.broadcast %cst_32 : f32 to vector<32x16xf32>
    %62 = arith.addf %61, %60 : vector<32x16xf32>
    %63 = arith.divf %61, %62 : vector<32x16xf32>
    %64 = vector.extract_strided_slice %52 {offsets = [0, 16], sizes = [32, 16], strides = [1, 1]} : vector<32x48xf32> to vector<32x16xf32>
    %65 = vector.extract_strided_slice %55 {offsets = [0, 16], sizes = [32, 16], strides = [1, 1]} : vector<32x48xf32> to vector<32x16xf32>
    %66 = arith.addf %64, %65 : vector<32x16xf32>
    %67 = arith.negf %66 : vector<32x16xf32>
    %68 = math.exp %67 : vector<32x16xf32>
    %cst_33 = arith.constant 1.000000e+00 : f32
    %69 = vector.broadcast %cst_33 : f32 to vector<32x16xf32>
    %70 = arith.addf %69, %68 : vector<32x16xf32>
    %71 = arith.divf %69, %70 : vector<32x16xf32>
    %72 = vector.extract_strided_slice %52 {offsets = [0, 32], sizes = [32, 16], strides = [1, 1]} : vector<32x48xf32> to vector<32x16xf32>
    %73 = vector.extract_strided_slice %55 {offsets = [0, 32], sizes = [32, 16], strides = [1, 1]} : vector<32x48xf32> to vector<32x16xf32>
    %74 = arith.mulf %63, %73 : vector<32x16xf32>
    %75 = arith.addf %72, %74 : vector<32x16xf32>
    %76 = math.tanh %75 : vector<32x16xf32>
    %cst_34 = arith.constant 1.000000e+00 : f32
    %77 = vector.broadcast %cst_34 : f32 to vector<32x16xf32>
    %78 = arith.subf %77, %71 : vector<32x16xf32>
    %79 = arith.mulf %78, %76 : vector<32x16xf32>
    %80 = arith.mulf %71, %46 : vector<32x16xf32>
    %81 = arith.addf %79, %80 : vector<32x16xf32>
    %cst_35 = arith.constant dense<0.000000e+00> : vector<32x12xf32>
    %82 = tpu.matmul %81, %9, %cst_35 {dimension_numbers = #tpu.dot_dimension_numbers<[1], [0], [0], [1], [0, 0, 1, 1], [], []>} : vector<32x16xf32>, vector<16x12xf32>, vector<32x12xf32> -> vector<32x12xf32>
    %c1_36 = arith.constant 1 : index
    %c0_37 = arith.constant 0 : index
    %c0_38 = arith.constant 0 : index
    %83 = vector.load %arg1[%c1_36, %c0_37, %c0_38] : memref<2x32x16xf32, #tpu.memory_space<vmem>>, vector<1x32x16xf32>
    %84 = vector.shape_cast %83 : vector<1x32x16xf32> to vector<32x16xf32>
    %c1_39 = arith.constant 1 : index
    %c0_40 = arith.constant 0 : index
    %c0_41 = arith.constant 0 : index
    %85 = vector.load %arg0[%c1_39, %c0_40, %c0_41] : memref<2x32x16xf32, #tpu.memory_space<vmem>>, vector<1x32x16xf32>
    %86 = vector.shape_cast %85 : vector<1x32x16xf32> to vector<32x16xf32>
    %cst_42 = arith.constant dense<0.000000e+00> : vector<32x48xf32>
    %87 = tpu.matmul %86, %4, %cst_42 {dimension_numbers = #tpu.dot_dimension_numbers<[1], [0], [0], [1], [0, 0, 1, 1], [], []>} : vector<32x16xf32>, vector<16x48xf32>, vector<32x48xf32> -> vector<32x48xf32>
    %88 = vector.broadcast %6 : vector<1x48xf32> to vector<32x48xf32>
    %89 = arith.addf %87, %88 : vector<32x48xf32>
    %cst_43 = arith.constant dense<0.000000e+00> : vector<32x48xf32>
    %90 = tpu.matmul %84, %5, %cst_43 {dimension_numbers = #tpu.dot_dimension_numbers<[1], [0], [0], [1], [0, 0, 1, 1], [], []>} : vector<32x16xf32>, vector<16x48xf32>, vector<32x48xf32> -> vector<32x48xf32>
    %91 = vector.broadcast %7 : vector<1x48xf32> to vector<32x48xf32>
    %92 = arith.addf %90, %91 : vector<32x48xf32>
    %93 = vector.extract_strided_slice %89 {offsets = [0, 0], sizes = [32, 16], strides = [1, 1]} : vector<32x48xf32> to vector<32x16xf32>
    %94 = vector.extract_strided_slice %92 {offsets = [0, 0], sizes = [32, 16], strides = [1, 1]} : vector<32x48xf32> to vector<32x16xf32>
    %95 = arith.addf %93, %94 : vector<32x16xf32>
    %96 = arith.negf %95 : vector<32x16xf32>
    %97 = math.exp %96 : vector<32x16xf32>
    %cst_44 = arith.constant 1.000000e+00 : f32
    %98 = vector.broadcast %cst_44 : f32 to vector<32x16xf32>
    %99 = arith.addf %98, %97 : vector<32x16xf32>
    %100 = arith.divf %98, %99 : vector<32x16xf32>
    %101 = vector.extract_strided_slice %89 {offsets = [0, 16], sizes = [32, 16], strides = [1, 1]} : vector<32x48xf32> to vector<32x16xf32>
    %102 = vector.extract_strided_slice %92 {offsets = [0, 16], sizes = [32, 16], strides = [1, 1]} : vector<32x48xf32> to vector<32x16xf32>
    %103 = arith.addf %101, %102 : vector<32x16xf32>
    %104 = arith.negf %103 : vector<32x16xf32>
    %105 = math.exp %104 : vector<32x16xf32>
    %cst_45 = arith.constant 1.000000e+00 : f32
    %106 = vector.broadcast %cst_45 : f32 to vector<32x16xf32>
    %107 = arith.addf %106, %105 : vector<32x16xf32>
    %108 = arith.divf %106, %107 : vector<32x16xf32>
    %109 = vector.extract_strided_slice %89 {offsets = [0, 32], sizes = [32, 16], strides = [1, 1]} : vector<32x48xf32> to vector<32x16xf32>
    %110 = vector.extract_strided_slice %92 {offsets = [0, 32], sizes = [32, 16], strides = [1, 1]} : vector<32x48xf32> to vector<32x16xf32>
    %111 = arith.mulf %100, %110 : vector<32x16xf32>
    %112 = arith.addf %109, %111 : vector<32x16xf32>
    %113 = math.tanh %112 : vector<32x16xf32>
    %cst_46 = arith.constant 1.000000e+00 : f32
    %114 = vector.broadcast %cst_46 : f32 to vector<32x16xf32>
    %115 = arith.subf %114, %108 : vector<32x16xf32>
    %116 = arith.mulf %115, %113 : vector<32x16xf32>
    %117 = arith.mulf %108, %84 : vector<32x16xf32>
    %118 = arith.addf %116, %117 : vector<32x16xf32>
    %cst_47 = arith.constant dense<0.000000e+00> : vector<32x12xf32>
    %119 = tpu.matmul %118, %10, %cst_47 {dimension_numbers = #tpu.dot_dimension_numbers<[1], [0], [0], [1], [0, 0, 1, 1], [], []>} : vector<32x16xf32>, vector<16x12xf32>, vector<32x12xf32> -> vector<32x12xf32>
    %120 = arith.addf %82, %119 : vector<32x12xf32>
    %c1_48 = arith.constant 1 : index
    %c0_49 = arith.constant 0 : index
    %c0_50 = arith.constant 0 : index
    %121 = vector.load %arg11[%c1_48, %c0_49, %c0_50] : memref<2x32x12xf32, #tpu.memory_space<vmem>>, vector<1x32x12xf32>
    %122 = vector.shape_cast %121 : vector<1x32x12xf32> to vector<32x12xf32>
    %123 = vector.shape_cast %120 : vector<32x12xf32> to vector<1x32x12xf32>
    tpu.vector_store %arg11[%c1_48, %c0_49, %c0_50], %123 {strides = array<i32>} : memref<2x32x12xf32, #tpu.memory_space<vmem>>, vector<1x32x12xf32>,
    %c0_51 = arith.constant 0 : index
    %c0_52 = arith.constant 0 : index
    %c0_53 = arith.constant 0 : index
    %124 = vector.load %arg0[%c0_51, %c0_52, %c0_53] : memref<2x32x16xf32, #tpu.memory_space<vmem>>, vector<1x32x16xf32>
    %125 = vector.shape_cast %124 : vector<1x32x16xf32> to vector<32x16xf32>
    %cst_54 = arith.constant dense<0.000000e+00> : vector<32x48xf32>
    %126 = tpu.matmul %125, %4, %cst_54 {dimension_numbers = #tpu.dot_dimension_numbers<[1], [0], [0], [1], [0, 0, 1, 1], [], []>} : vector<32x16xf32>, vector<16x48xf32>, vector<32x48xf32> -> vector<32x48xf32>
    %127 = vector.broadcast %6 : vector<1x48xf32> to vector<32x48xf32>
    %128 = arith.addf %126, %127 : vector<32x48xf32>
    %cst_55 = arith.constant dense<0.000000e+00> : vector<32x48xf32>
    %129 = tpu.matmul %118, %5, %cst_55 {dimension_numbers = #tpu.dot_dimension_numbers<[1], [0], [0], [1], [0, 0, 1, 1], [], []>} : vector<32x16xf32>, vector<16x48xf32>, vector<32x48xf32> -> vector<32x48xf32>
    %130 = vector.broadcast %7 : vector<1x48xf32> to vector<32x48xf32>
    %131 = arith.addf %129, %130 : vector<32x48xf32>
    %132 = vector.extract_strided_slice %128 {offsets = [0, 0], sizes = [32, 16], strides = [1, 1]} : vector<32x48xf32> to vector<32x16xf32>
    %133 = vector.extract_strided_slice %131 {offsets = [0, 0], sizes = [32, 16], strides = [1, 1]} : vector<32x48xf32> to vector<32x16xf32>
    %134 = arith.addf %132, %133 : vector<32x16xf32>
    %135 = arith.negf %134 : vector<32x16xf32>
    %136 = math.exp %135 : vector<32x16xf32>
    %cst_56 = arith.constant 1.000000e+00 : f32
    %137 = vector.broadcast %cst_56 : f32 to vector<32x16xf32>
    %138 = arith.addf %137, %136 : vector<32x16xf32>
    %139 = arith.divf %137, %138 : vector<32x16xf32>
    %140 = vector.extract_strided_slice %128 {offsets = [0, 16], sizes = [32, 16], strides = [1, 1]} : vector<32x48xf32> to vector<32x16xf32>
    %141 = vector.extract_strided_slice %131 {offsets = [0, 16], sizes = [32, 16], strides = [1, 1]} : vector<32x48xf32> to vector<32x16xf32>
    %142 = arith.addf %140, %141 : vector<32x16xf32>
    %143 = arith.negf %142 : vector<32x16xf32>
    %144 = math.exp %143 : vector<32x16xf32>
    %cst_57 = arith.constant 1.000000e+00 : f32
    %145 = vector.broadcast %cst_57 : f32 to vector<32x16xf32>
    %146 = arith.addf %145, %144 : vector<32x16xf32>
    %147 = arith.divf %145, %146 : vector<32x16xf32>
    %148 = vector.extract_strided_slice %128 {offsets = [0, 32], sizes = [32, 16], strides = [1, 1]} : vector<32x48xf32> to vector<32x16xf32>
    %149 = vector.extract_strided_slice %131 {offsets = [0, 32], sizes = [32, 16], strides = [1, 1]} : vector<32x48xf32> to vector<32x16xf32>
    %150 = arith.mulf %139, %149 : vector<32x16xf32>
    %151 = arith.addf %148, %150 : vector<32x16xf32>
    %152 = math.tanh %151 : vector<32x16xf32>
    %cst_58 = arith.constant 1.000000e+00 : f32
    %153 = vector.broadcast %cst_58 : f32 to vector<32x16xf32>
    %154 = arith.subf %153, %147 : vector<32x16xf32>
    %155 = arith.mulf %154, %152 : vector<32x16xf32>
    %156 = arith.mulf %147, %118 : vector<32x16xf32>
    %157 = arith.addf %155, %156 : vector<32x16xf32>
    %cst_59 = arith.constant dense<0.000000e+00> : vector<32x12xf32>
    %158 = tpu.matmul %157, %10, %cst_59 {dimension_numbers = #tpu.dot_dimension_numbers<[1], [0], [0], [1], [0, 0, 1, 1], [], []>} : vector<32x16xf32>, vector<16x12xf32>, vector<32x12xf32> -> vector<32x12xf32>
    %159 = arith.addf %47, %158 : vector<32x12xf32>
    %c0_60 = arith.constant 0 : index
    %c0_61 = arith.constant 0 : index
    %c0_62 = arith.constant 0 : index
    %160 = vector.load %arg11[%c0_60, %c0_61, %c0_62] : memref<2x32x12xf32, #tpu.memory_space<vmem>>, vector<1x32x12xf32>
    %161 = vector.shape_cast %160 : vector<1x32x12xf32> to vector<32x12xf32>
    %162 = vector.shape_cast %159 : vector<32x12xf32> to vector<1x32x12xf32>
    tpu.vector_store %arg11[%c0_60, %c0_61, %c0_62], %162 {strides = array<i32>} : memref<2x32x12xf32, #tpu.memory_space<vmem>>, vector<1x32x12xf32>,
    return
  }
}

</mosaic_0001>

<bundles_post_ra>
// kernel: my_input_forward.3
= control target key start
LH: loop header
LB: loop body
LE: loop exit
PB: predicated region body
PF: predicated region fallthrough
CT: control target
= control target key end

     0   :  { %vm65_vm0 = vcmask 130048   ;;  %s1421_s24 = smov 32   ;;  %s1423_s25 = smov 112   ;;  %s2073_s2 = inlined_call_operand.vmem [shape: f32[16,48], index: 2, kind: input, shape index: {}]   ;;  %s2074_s3 = inlined_call_operand.vmem [shape: f32[16,48], index: 3, kind: input, shape index: {}]   ;;  %s2075_s0 = inlined_call_operand.vmem [shape: f32[2,32,16], index: 0, kind: input, shape index: {}]   ;;  %s2076_s1 = inlined_call_operand.vmem [shape: f32[2,32,16], index: 1, kind: input, shape index: {}]   ;;  %s2077_s7 = inlined_call_operand.vmem [shape: f32[16,48], index: 7, kind: input, shape index: {}]   ;;  %s2078_s4 = inlined_call_operand.vmem [shape: f32[1,48], index: 4, kind: input, shape index: {}]   ;;  %s2079_s5 = inlined_call_operand.vmem [shape: f32[1,48], index: 5, kind: input, shape index: {}]   ;;  %s2080_s6 = inlined_call_operand.vmem [shape: f32[16,48], index: 6, kind: input, shape index: {}]   ;;  %s2081_s9 = inlined_call_operand.vmem [shape: f32[1,48], index: 9, kind: input, shape index: {}]   ;;  %s2082_s8 = inlined_call_operand.vmem [shape: f32[1,48], index: 8, kind: input, shape index: {}]   ;;  %s2083_s10 = inlined_call_operand.vmem [shape: f32[32,12], index: 10, kind: input, shape index: {}]   ;;  %s2084_s11 = inlined_call_operand.vmem [shape: f32[2,32,12], index: 11, kind: output, shape index: {}]  }
   0x1   :  { %v39_v0 = vld [vmem:[%s2073_s2 + $0x8] sm:$0xff]  ;;  %v38_v2 = vld [vmem:[%s2073_s2] sm:$0xff]  ;;  %v1537_v13 = vld [vmem:[%s2076_s1 + $0x10] sm:$0xff] }
   0x2   :  { %v41_v1 = vld [vmem:[%s2074_s3 + $0x8] sm:$0xff]  ;;  %92 = vmatpush.msra.mxu0 %v39_v0  ;;  %v40_v3 = vld [vmem:[%s2074_s3] sm:$0xff]  ;;  %350 = vmatpush.msra.mxu2 %v39_v0  ;;  %v60_v14 = vld [vmem:[%s2075_s0 + $0x10] sm:$0xff] }
   0x3   :  { %136 = vmatpush.msra.mxu1 %v41_v1  ;;  %v58_v4 = vld [vmem:[%s2075_s0] sm:$0xff]  ;;  %399 = vmatpush.msra.mxu3 %v41_v1  ;;  %v47_v6 = vld [vmem:[%s2077_s7 + $0x8] sm:$0xff]  ;;  %v1552_v16 = vld [vmem:[%s2076_s1 + $0x18] sm:$0xff] }
   0x4   :  { %v1502_v5 = vld [vmem:[%s2076_s1] sm:$0xff]  ;;  %93 = vmatpush.msra.mxu0 %v38_v2  ;;  %351 = vmatpush.msra.mxu2 %v38_v2  ;;  %v59_v8 = vld [vmem:[%s2075_s0 + $0x8] sm:$0xff]  ;;  %v61_v17 = vld [vmem:[%s2075_s0 + $0x18] sm:$0xff] }
   0x5   :  { %137 = vmatpush.msra.mxu1 %v40_v3  ;;  %1239 = vmatmul.msk.f32.vlgmr.msra.gmra.mxu0 %vm65_vm0, %v58_v4  ;;  %v46_v7 = vld [vmem:[%s2077_s7] sm:$0xff]  ;;  %v1519_v9 = vld [vmem:[%s2076_s1 + $0x8] sm:$0xff]  ;;  %v1253_v18 = vld [vmem:[%s2075_s0 + $0x30] sm:$0xff] }
   0x6   :  { %1243 = vmatmul.msk.f32.vlgmr.msra.gmra.mxu1 %vm65_vm0, %v1502_v5  ;;  %400 = vmatpush.msra.mxu3 %v40_v3  ;;  %v45_v10 = vld [vmem:[%s2080_s6 + $0x8] sm:$0xff]  ;;  %v44_v11 = vld [vmem:[%s2080_s6] sm:$0xff]  ;;  %v1254_v20 = vld [vmem:[%s2075_s0 + $0x38] sm:$0xff]  ;;  %s1422_s6 = smov 16  }
   0x7   :  { %636 = vmatpush.msrb.mxu1 %v47_v6  ;;  %592 = vmatpush.msrb.mxu0 %v45_v10  ;;  %v1251_v12 = vld [vmem:[%s2075_s0 + $0x20] sm:$0xff]  ;;  %v1252_v15 = vld [vmem:[%s2075_s0 + $0x28] sm:$0xff]  ;;  %v1587_v22 = vld [vmem:[%s2076_s1 + $0x30] sm:$0xff] }
   0x8   :  { %1255 = vmatmul.msk.f32.vlgmr.msra.gmra.mxu2 %vm65_vm0, %v1251_v12  ;;  %v1567_v19 = vld [vmem:[%s2076_s1 + $0x20] sm:$0xff]  ;;  %v1579_v21 = vld [vmem:[%s2076_s1 + $0x28] sm:$0xff]  ;;  %v1595_v23 = vld [vmem:[%s2076_s1 + $0x38] sm:$0xff]  ;;  %s1420_s1 = smov 96  }
   0x9   :  { %637 = vmatpush.msrb.mxu1 %v46_v7  ;;  %593 = vmatpush.msrb.mxu0 %v44_v11  ;;  %v1607_v24 = vld [vmem:[%s2079_s5] ss:$0 sm:$0xff] }
   0xa   :  { %v1620_v33 = vld [vmem:[%s2081_s9] ss:$0 sm:$0xff] }
   0xb   :  { %982 = vmatpush.msra.mxu1 %v47_v6  ;;  %953 = vmatpush.msra.mxu0 %v45_v10  ;;  %v1629_v40 = vld [vmem:[%s2078_s4] ss:$0 sm:$0xff] }
   0xc   :  { %v1646_v52 = vld [vmem:[%s2082_s8] ss:$0 sm:$0xff] }
   0xd   :  { %983 = vmatpush.msra.mxu1 %v46_v7  ;;  %1240 = vmatmul.msk.f32.gmra.mxu0 %vm65_vm0, %v59_v8 }
   0xe   :  { %1244 = vmatmul.msk.f32.gmra.mxu1 %vm65_vm0, %v1519_v9  ;;  %954 = vmatpush.msra.mxu0 %v44_v11 }
  0x10   :  { %1256 = vmatmul.msk.f32.gmra.mxu2 %vm65_vm0, %v1252_v15 }
  0x15   :  { %1241 = vmatmul.msk.f32.gmra.mxu0 %vm65_vm0, %v60_v14 }
  0x16   :  { %1245 = vmatmul.msk.f32.gmra.mxu1 %vm65_vm0, %v1537_v13 }
  0x18   :  { %1257 = vmatmul.msk.f32.gmra.mxu2 %vm65_vm0, %v1253_v18 }
  0x1d   :  { %1242 = vmatmul.msk.f32.gmra.mxu0 %vm65_vm0, %v61_v17 }
  0x1e   :  { %1246 = vmatmul.msk.f32.gmra.mxu1 %vm65_vm0, %v1552_v16 }
  0x20   :  { %1258 = vmatmul.msk.f32.gmra.mxu2 %vm65_vm0, %v1254_v20 }
  0x25   :  { %1271 = vmatmul.msk.f32.vlgmr.msrb.gmra.mxu0 %vm65_vm0, %v1251_v12 }
  0x26   :  { %1275 = vmatmul.msk.f32.vlgmr.msrb.gmra.mxu1 %vm65_vm0, %v1567_v19 }
  0x2d   :  { %1272 = vmatmul.msk.f32.gmra.mxu0 %vm65_vm0, %v1252_v15 }
  0x2e   :  { %1276 = vmatmul.msk.f32.gmra.mxu1 %vm65_vm0, %v1579_v21 }
  0x35   :  { %1273 = vmatmul.msk.f32.gmra.mxu0 %vm65_vm0, %v1253_v18 }
  0x36   :  { %1277 = vmatmul.msk.f32.gmra.mxu1 %vm65_vm0, %v1587_v22 }
  0x3d   :  { %1274 = vmatmul.msk.f32.gmra.mxu0 %vm65_vm0, %v1254_v20 }
  0x3e   :  { %1278 = vmatmul.msk.f32.gmra.mxu1 %vm65_vm0, %v1595_v23 }
  0x45   :  { %1295 = vmatmul.msk.f32.vlgmr.msra.gmra.mxu0 %vm65_vm0, %v58_v4 }
  0x4d   :  { %1296 = vmatmul.msk.f32.gmra.mxu0 %vm65_vm0, %v59_v8 }
  0x55   :  { %1297 = vmatmul.msk.f32.gmra.mxu0 %vm65_vm0, %v60_v14 }
  0x5d   :  { %1298 = vmatmul.msk.f32.gmra.mxu0 %vm65_vm0, %v61_v17 }
  0x82   :  { %v95_v38 = vpop.f32.mrf.mxu0 }
  0x83   :  { %v139_v25 = vpop.f32.mrf.mxu1  ;;  %v1632_v41 = vadd.f32 %v1629_v40, %v95_v38 }
  0x84   :  { %v140_v26 = vadd.f32 %v1607_v24, %v139_v25 }
  0x86   :  { %235 = vrot.lane.b32.xlu0 %v140_v26, %s1420_s1  ;;  %v151_v43 = vadd.f32 %v140_v26, %v1632_v41 }
  0x88   :  { %v1247_v45 = vmul.f32 -1.442695, %v151_v43 }
  0x8a   :  { %v98_v39 = vpop.f32.mrf.mxu0  ;;  %1323 = vpow2.f32 %v1247_v45 }
  0x8b   :  { %v142_v27 = vpop.f32.mrf.mxu1  ;;  %v1636_v44 = vadd.f32 %v1629_v40, %v98_v39 }
  0x8c   :  { %v143_v28 = vadd.f32 %v1607_v24, %v142_v27 }
  0x8e   :  { %237 = vrot.lane.b32.xlu0 %v143_v28, %s1420_s1  ;;  %v152_v46 = vadd.f32 %v143_v28, %v1636_v44 }
  0x90   :  { %v1248_v48 = vmul.f32 -1.442695, %v152_v46  ;;  %v1324_v50 = vpop.eup %1323 }
  0x91   :  { %v167_v53 = vadd.f32 1.0, %v1324_v50 }
  0x92   :  { %v101_v42 = vpop.f32.mrf.mxu0  ;;  %1325 = vpow2.f32 %v1248_v48 }
  0x93   :  { %v145_v29 = vpop.f32.mrf.mxu1  ;;  %v1640_v49 = vadd.f32 %v1629_v40, %v101_v42  ;;  %1327 = vrcp.f32 %v167_v53  ;;  %v182_v27 = vand.u32 2147483648, %v167_v53  ;;  %vm176_vm2 = vweird.f32 %v167_v53 }
  0x94   :  { %v146_v30 = vadd.f32 %v1607_v24, %v145_v29  ;;  %v180_v29 = vand.u32 2147483647, %v167_v53 }
  0x96   :  { %239 = vrot.lane.b32.xlu1 %v146_v30, %s1420_s1  ;;  %v153_v51 = vadd.f32 %v146_v30, %v1640_v49  ;;  %vm181_vm4 = vcmp.eq.f32.partialorder %v180_v29, 8.507059e+37 }
  0x98   :  { %v1249_v55 = vmul.f32 -1.442695, %v153_v51  ;;  %v1326_v58 = vpop.eup %1325 }
  0x99   :  { %v168_v60 = vadd.f32 1.0, %v1326_v58  ;;  %v1328_v62 = vpop.eup %1327 }
  0x9a   :  { %v104_v47 = vpop.f32.mrf.mxu0  ;;  %1329 = vpow2.f32 %v1249_v55  ;;  %v172_v2 = vmul.f32 %v1328_v62, %v167_v53  ;;  %vm177_vm1 = vweird.f32 %v1328_v62 }
  0x9b   :  { %v148_v31 = vpop.f32.mrf.mxu1  ;;  %v1649_v56 = vadd.f32 %v1629_v40, %v104_v47  ;;  %1331 = vrcp.f32 %v168_v60  ;;  %vm178_vm3 = vmor %vm176_vm2, %vm177_vm1  ;;  %v197_v43 = vand.u32 2147483648, %v168_v60  ;;  %vm191_vm6 = vweird.f32 %v168_v60 }
  0x9c   :  { %v149_v32 = vadd.f32 %v1607_v24, %v148_v31  ;;  %v173_v7 = vsub.f32 1.0, %v172_v2  ;;  %v195_v46 = vand.u32 2147483647, %v168_v60 }
  0x9d   :  { %v198_v55 = vor.u32 1.1754944e-38, %v197_v43 }
  0x9e   :  { %241 = vrot.lane.b32.xlu1 %v149_v32, %s1420_s1  ;;  %v154_v59 = vadd.f32 %v149_v32, %v1649_v56  ;;  %v174_v14 = vmul.f32 %v1328_v62, %v173_v7  ;;  %vm196_vm8 = vcmp.eq.f32.partialorder %v195_v46, 8.507059e+37 }
  0xa0   :  { %v1250_v63 = vmul.f32 -1.442695, %v154_v59  ;;  %v1330_v1 = vpop.eup %1329  ;;  %v175_v26 = vadd.f32 %v1328_v62, %v174_v14 }
  0xa1   :  { %v1656_v3 = vadd.f32 1.0, %v1330_v1  ;;  %v1332_v6 = vpop.eup %1331 }
  0xa2   :  { %v595_v54 = vpop.f32.mrf.mxu0  ;;  %1333 = vpow2.f32 %v1250_v63  ;;  %v187_v11 = vmul.f32 %v1332_v6, %v168_v60  ;;  %v179_v32 = vsel %vm178_vm3, %v1328_v62, %v175_v26  ;;  %vm192_vm5 = vweird.f32 %v1332_v6 }
  0xa3   :  { %v639_v34 = vpop.f32.mrf.mxu1  ;;  %v1652_v57 = vadd.f32 %v1646_v52, %v595_v54  ;;  %vm193_vm7 = vmor %vm191_vm6, %vm192_vm5  ;;  %vm206_vm9 = vweird.f32 %v1656_v3  ;;  %v212_v59 = vand.u32 2147483648, %v1656_v3  ;;  %v210_v63 = vand.u32 2147483647, %v1656_v3 }
  0xa4   :  { %v640_v35 = vadd.f32 %v1620_v33, %v639_v34  ;;  %v188_v20 = vsub.f32 1.0, %v187_v11  ;;  %v183_v34 = vor.u32 1.1754944e-38, %v182_v27 }
  0xa5   :  { %vm211_vm12 = vcmp.eq.f32.partialorder %v210_v63, 8.507059e+37 }
  0xa6   :  { %735 = vrot.lane.b32.xlu2 %v640_v35, %s1420_s1  ;;  %v651_v61 = vadd.f32 %v640_v35, %v1652_v57  ;;  %v189_v30 = vmul.f32 %v1332_v6, %v188_v20 }
  0xa8   :  { %v1279_v0 = vmul.f32 -1.442695, %v651_v61  ;;  %v1334_v10 = vpop.eup %1333 }
  0xa9   :  { %v1662_v15 = vadd.f32 1.0, %v1334_v10 }
  0xaa   :  { %1335 = vpow2.f32 %v1279_v0  ;;  %v598_v4 = vpop.f32.mrf.mxu0 }
  0xab   :  { %v642_v36 = vpop.f32.mrf.mxu1  ;;  %1337 = vrcp.f32 %v1656_v3  ;;  %v1660_v8 = vadd.f32 %v1646_v52, %v598_v4  ;;  %vm221_vm13 = vweird.f32 %v1662_v15  ;;  %v227_v26 = vand.u32 2147483648, %v1662_v15 }
  0xac   :  { %v643_v37 = vadd.f32 %v1620_v33, %v642_v36  ;;  %1339 = vrcp.f32 %v1662_v15  ;;  %v1673_v36 = vsel %vm181_vm4, %v183_v34, %v179_v32 }
  0xae   :  { %737 = vrot.lane.b32.xlu0 %v643_v37, %s1420_s1  ;;  %v652_v17 = vadd.f32 %v643_v37, %v1660_v8  ;;  %v190_v37 = vadd.f32 %v1332_v6, %v189_v30 }
  0xb0   :  { %v1336_v12 = vpop.eup %1335  ;;  %v1280_v28 = vmul.f32 -1.442695, %v652_v17  ;;  %v194_v48 = vsel %vm193_vm7, %v1332_v6, %v190_v37  ;;  %v213_v6 = vor.u32 1.1754944e-38, %v212_v59 }
  0xb1   :  { %v1665_v18 = vadd.f32 1.0, %v1336_v12  ;;  %v1667_v25 = vpop.eup %1337  ;;  %v1688_v58 = vsel %vm196_vm8, %v198_v55, %v194_v48 }
  0xb2   :  { %v202_v31 = vmul.f32 %v1667_v25, %v1656_v3  ;;  %v1675_v39 = vpop.eup %1339  ;;  %vm207_vm10 = vweird.f32 %v1667_v25  ;;  %v601_v63 = vpop.f32.mrf.mxu0 }
  0xb3   :  { %1341 = vrcp.f32 %v1665_v18  ;;  %v645_v47 = vpop.f32.mrf.mxu1  ;;  %v217_v51 = vmul.f32 %v1675_v39, %v1662_v15  ;;  %vm208_vm11 = vmor %vm206_vm9, %vm207_vm10  ;;  %vm222_vm14 = vweird.f32 %v1675_v39  ;;  %vm676_vm15 = vweird.f32 %v1665_v18 }
  0xb4   :  { %1343 = vpow2.f32 %v1280_v28  ;;  %v203_v38 = vsub.f32 1.0, %v202_v31  ;;  %v1696_v1 = vadd.f32 %v1620_v33, %v645_v47  ;;  %v682_v14 = vand.u32 2147483648, %v1665_v18  ;;  %vm1720_vm2 = vmor %vm221_vm13, %vm222_vm14 }
  0xb5   :  { %v218_v0 = vsub.f32 1.0, %v217_v51  ;;  %v680_v29 = vand.u32 2147483647, %v1665_v18 }
  0xb6   :  { %v204_v50 = vmul.f32 %v1667_v25, %v203_v38  ;;  %v683_v34 = vor.u32 1.1754944e-38, %v682_v14 }
  0xb7   :  { %v219_v3 = vmul.f32 %v1675_v39, %v218_v0  ;;  %vm681_vm4 = vcmp.eq.f32.partialorder %v680_v29, 8.507059e+37 }
  0xb8   :  { %v205_v62 = vadd.f32 %v1667_v25, %v204_v50 }
  0xb9   :  { %v1678_v45 = vpop.eup %1341  ;;  %v220_v20 = vadd.f32 %v1675_v39, %v219_v3 }
  0xba   :  { %v1344_v53 = vpop.eup %1343  ;;  %v672_v54 = vmul.f32 %v1678_v45, %v1665_v18  ;;  %v209_v7 = vsel %vm208_vm11, %v1667_v25, %v205_v62  ;;  %vm677_vm1 = vweird.f32 %v1678_v45  ;;  %v225_v25 = vand.u32 2147483647, %v1662_v15 }
  0xbb   :  { %v1691_v60 = vadd.f32 1.0, %v1344_v53  ;;  %v648_v11 = vpop.f32.mrf.mxu1  ;;  %v1710_v12 = vsel %vm211_vm12, %v213_v6, %v209_v7  ;;  %vm678_vm3 = vmor %vm676_vm15, %vm677_vm1  ;;  %v224_v15 = vsel %vm1720_vm2, %v1675_v39, %v220_v20  ;;  %v604_v6 = vpop.f32.mrf.mxu0 }
  0xbc   :  { %v673_v2 = vsub.f32 1.0, %v672_v54  ;;  %v649_v27 = vadd.f32 %v1620_v33, %v648_v11  ;;  %vm226_vm5 = vcmp.eq.f32.partialorder %v225_v25, 8.507059e+37 }
  0xbd   :  { %1345 = vrcp.f32 %v1691_v60  ;;  %vm691_vm6 = vweird.f32 %v1691_v60  ;;  %v695_v53 = vand.u32 2147483647, %v1691_v60 }
  0xbe   :  { %v674_v10 = vmul.f32 %v1678_v45, %v673_v2 }
  0xbf   :  { %vm696_vm9 = vcmp.eq.f32.partialorder %v695_v53, 8.507059e+37 }
  0xc0   :  { %v675_v28 = vadd.f32 %v1678_v45, %v674_v10 }
  0xc2   :  { %v679_v18 = vsel %vm678_vm3, %v1678_v45, %v675_v28  ;;  %v697_v45 = vand.u32 2147483648, %v1691_v60 }
  0xc3   :  { %v1346_v32 = vpop.eup %1345 }
  0xc4   :  { %v687_v37 = vmul.f32 %v1346_v32, %v1691_v60  ;;  %vm692_vm7 = vweird.f32 %v1346_v32  ;;  %v698_v54 = vor.u32 1.1754944e-38, %v697_v45  ;;  %v1751_v60 = vadd.f32 %v1646_v52, %v601_v63 }
  0xc5   :  { %vm693_vm8 = vmor %vm691_vm6, %vm692_vm7 }
  0xc6   :  { %v688_v50 = vsub.f32 1.0, %v687_v37 }
  0xc8   :  { %v689_v39 = vmul.f32 %v1346_v32, %v688_v50 }
  0xca   :  { %v690_v51 = vadd.f32 %v1346_v32, %v689_v39 }
  0xcc   :  { %v694_v55 = vsel %vm693_vm8, %v1346_v32, %v690_v51 }
  0xf8   :  { %v236_v35 = vpop.permute.xlu0 %235 }
  0xf9   :  { %v247_v42 = vmul.f32 %v236_v35, %v1673_v36  ;;  %v228_v35 = vor.u32 1.1754944e-38, %v227_v26 }
  0xfb   :  { %255 = vrot.lane.b32.xlu2 %v247_v42, %s1421_s24  ;;  %v1731_v42 = vsel %vm681_vm4, %v683_v34, %v679_v18  ;;  %v1733_v46 = vsel %vm226_vm5, %v228_v35, %v224_v15 }
 0x100   :  { %v238_v61 = vpop.permute.xlu0 %237  ;;  %v736_v38 = vpop.permute.xlu2 %735 }
 0x101   :  { %v248_v4 = vmul.f32 %v238_v61, %v1688_v58  ;;  %v747_v47 = vmul.f32 %v736_v38, %v1731_v42  ;;  %v1744_v61 = vsel %vm696_vm9, %v698_v54, %v694_v55 }
 0x103   :  { %257 = vrot.lane.b32.xlu1 %v248_v4, %s1421_s24  ;;  %739 = vrot.lane.b32.xlu2 %v1696_v1, %s1420_s1 }
 0x108   :  { %v240_v17 = vpop.permute.xlu1 %239 }
 0x109   :  { %v249_v30 = vmul.f32 %v240_v17, %v1710_v12 }
 0x10b   :  { %259 = vrot.lane.b32.xlu0 %v249_v30, %s1421_s24  ;;  %741 = vrot.lane.b32.xlu1 %v649_v27, %s1420_s1 }
 0x110   :  { %v242_v43 = vpop.permute.xlu1 %241 }
 0x111   :  { %v250_v48 = vmul.f32 %v242_v43, %v1733_v46 }
 0x113   :  { %755 = vrot.lane.b32.xlu0 %v747_v47, %s1421_s24  ;;  %261 = vrot.lane.b32.xlu2 %v250_v48, %s1421_s24 }
 0x11b   :  { %299 = vrot.lane.b32.xlu0 %v1502_v5, %s1422_s6  ;;  %v653_v5 = vadd.f32 %v1696_v1, %v1751_v60 }
 0x11d   :  { %v1281_v0 = vmul.f32 -1.442695, %v653_v5 }
 0x11f   :  { %1347 = vpow2.f32 %v1281_v0 }
 0x120   :  { %v738_v59 = vpop.permute.xlu0 %737 }
 0x121   :  { %v748_v62 = vmul.f32 %v738_v59, %v1744_v61 }
 0x123   :  { %301 = vrot.lane.b32.xlu0 %v1519_v9, %s1422_s6  ;;  %757 = vrot.lane.b32.xlu1 %v748_v62, %s1421_s24  ;;  %v1758_v9 = vadd.f32 %v1646_v52, %v604_v6 }
 0x125   :  { %v1348_v2 = vpop.eup %1347  ;;  %v654_v10 = vadd.f32 %v649_v27, %v1758_v9 }
 0x126   :  { %v669_v4 = vadd.f32 1.0, %v1348_v2 }
 0x127   :  { %v1282_v14 = vmul.f32 -1.442695, %v654_v10 }
 0x128   :  { %1349 = vrcp.f32 %v669_v4  ;;  %vm706_vm10 = vweird.f32 %v669_v4  ;;  %v712_v1 = vand.u32 2147483648, %v669_v4  ;;  %v710_v26 = vand.u32 2147483647, %v669_v4 }
 0x129   :  { %1351 = vpow2.f32 %v1282_v14 }
 0x12a   :  { %v713_v28 = vor.u32 1.1754944e-38, %v712_v1  ;;  %vm711_vm13 = vcmp.eq.f32.partialorder %v710_v26, 8.507059e+37 }
 0x12b   :  { %303 = vrot.lane.b32.xlu0 %v1537_v13, %s1422_s6 }
 0x12e   :  { %v1350_v7 = vpop.eup %1349 }
 0x12f   :  { %v702_v3 = vmul.f32 %v1350_v7, %v669_v4  ;;  %vm707_vm11 = vweird.f32 %v1350_v7  ;;  %v1352_v29 = vpop.eup %1351 }
 0x130   :  { %vm708_vm12 = vmor %vm706_vm10, %vm707_vm11  ;;  %v670_v31 = vadd.f32 1.0, %v1352_v29 }
 0x131   :  { %v703_v11 = vsub.f32 1.0, %v702_v3 }
 0x132   :  { %vm721_vm14 = vweird.f32 %v670_v31  ;;  %v727_v43 = vand.u32 2147483648, %v670_v31  ;;  %v725_v50 = vand.u32 2147483647, %v670_v31 }
 0x133   :  { %v704_v17 = vmul.f32 %v1350_v7, %v703_v11 }
 0x134   :  { %v728_v39 = vor.u32 1.1754944e-38, %v727_v43  ;;  %vm726_vm2 = vcmp.eq.f32.partialorder %v725_v50, 8.507059e+37 }
 0x135   :  { %v705_v25 = vadd.f32 %v1350_v7, %v704_v17 }
 0x137   :  { %v709_v30 = vsel %vm708_vm12, %v1350_v7, %v705_v25  ;;  %v275_v7 = vsub.f32 1.0, %v1673_v36  ;;  %v277_v25 = vsub.f32 1.0, %v1710_v12 }
 0x138   :  { %v1762_v27 = vsel %vm711_vm13, %v713_v28, %v709_v30 }
 0x155   :  { %v256_v13 = vpop.permute.xlu2 %255 }
 0x156   :  { %v267_v20 = vadd.f32 %v256_v13, %v1632_v41 }
 0x158   :  { %1353 = vtanh.f32 %v267_v20 }
 0x159   :  { %1355 = vrcp.f32 %v670_v31 }
 0x15d   :  { %v740_v32 = vpop.permute.xlu2 %739 }
 0x15e   :  { %v1354_v34 = vpop.eup %1353  ;;  %v749_v15 = vmul.f32 %v740_v32, %v1762_v27  ;;  %v278_v32 = vsub.f32 1.0, %v1733_v46 }
 0x15f   :  { %283 = vrot.lane.b32.xlu2 %v1354_v34, %s1423_s25  ;;  %v1356_v41 = vpop.eup %1355 }
 0x160   :  { %759 = vrot.lane.b32.xlu1 %v749_v15, %s1421_s24  ;;  %v717_v35 = vmul.f32 %v1356_v41, %v670_v31  ;;  %vm722_vm15 = vweird.f32 %v1356_v41 }
 0x161   :  { %vm723_vm1 = vmor %vm721_vm14, %vm722_vm15 }
 0x162   :  { %v718_v18 = vsub.f32 1.0, %v717_v35 }
 0x164   :  { %v719_v37 = vmul.f32 %v1356_v41, %v718_v18  ;;  %v775_v18 = vsub.f32 1.0, %v1731_v42 }
 0x166   :  { %v720_v48 = vadd.f32 %v1356_v41, %v719_v37 }
 0x168   :  { %v724_v51 = vsel %vm723_vm1, %v1356_v41, %v720_v48  ;;  %v776_v48 = vsub.f32 1.0, %v1744_v61 }
 0x169   :  { %v1769_v55 = vsel %vm726_vm2, %v728_v39, %v724_v51 }
 0x16d   :  { %v262_v45 = vpop.permute.xlu2 %261 }
 0x16e   :  { %v270_v53 = vadd.f32 %v262_v45, %v1649_v56 }
 0x175   :  { %v258_v38 = vpop.permute.xlu1 %257 }
 0x176   :  { %v268_v47 = vadd.f32 %v258_v38, %v1636_v44 }
 0x178   :  { %1357 = vtanh.f32 %v268_v47 }
 0x17d   :  { %v260_v54 = vpop.permute.xlu0 %259  ;;  %v742_v59 = vpop.permute.xlu1 %741 }
 0x17e   :  { %v1358_v62 = vpop.eup %1357  ;;  %v269_v63 = vadd.f32 %v260_v54, %v1640_v49  ;;  %v750_v5 = vmul.f32 %v742_v59, %v1769_v55  ;;  %v777_v59 = vsub.f32 1.0, %v1762_v27 }
 0x17f   :  { %285 = vrot.lane.b32.xlu2 %v1358_v62, %s1423_s25 }
 0x180   :  { %1359 = vtanh.f32 %v269_v63  ;;  %761 = vrot.lane.b32.xlu1 %v750_v5, %s1421_s24 }
 0x181   :  { %1361 = vtanh.f32 %v270_v53 }
 0x185   :  { %v756_v44 = vpop.permute.xlu0 %755 }
 0x186   :  { %v1360_v0 = vpop.eup %1359  ;;  %v767_v2 = vadd.f32 %v756_v44, %v1652_v57 }
 0x187   :  { %v1362_v56 = vpop.eup %1361  ;;  %287 = vrot.lane.b32.xlu2 %v1360_v0, %s1423_s25  ;;  %v53_v0 = vld [vmem:[%s2083_s10 + $0x18] sm:$0xff] }
 0x188   :  { %1363 = vtanh.f32 %v767_v2  ;;  %289 = vrot.lane.b32.xlu1 %v1362_v56, %s1423_s25  ;;  %v52_v2 = vld [vmem:[%s2083_s10 + $0x10] sm:$0xff]  ;;  %853 = vmatpush.msrb.mxu2 %v53_v0 }
 0x18a   :  { %854 = vmatpush.msrb.mxu2 %v52_v2 }
 0x18c   :  { %1187 = vmatpush.msra.mxu2 %v53_v0 }
 0x18e   :  { %v1364_v4 = vpop.eup %1363  ;;  %1188 = vmatpush.msra.mxu2 %v52_v2 }
 0x18f   :  { %783 = vrot.lane.b32.xlu0 %v1364_v4, %s1423_s25  ;;  %305 = vrot.lane.b32.xlu2 %v1552_v16, %s1422_s6  ;;  %v300_v16 = vpop.permute.xlu0 %299  ;;  %v778_v4 = vsub.f32 1.0, %v1769_v55 }
 0x190   :  { %799 = vrot.lane.b32.xlu1 %v1567_v19, %s1422_s6  ;;  %v311_v3 = vmul.f32 %v300_v16, %v1673_v36 }
 0x195   :  { %v758_v49 = vpop.permute.xlu1 %757 }
 0x196   :  { %v768_v6 = vadd.f32 %v758_v49, %v1660_v8 }
 0x197   :  { %v302_v14 = vpop.permute.xlu0 %301 }
 0x198   :  { %1365 = vtanh.f32 %v768_v6  ;;  %801 = vrot.lane.b32.xlu1 %v1579_v21, %s1422_s6  ;;  %v312_v17 = vmul.f32 %v302_v14, %v1688_v58 }
 0x19e   :  { %v1366_v57 = vpop.eup %1365 }
 0x19f   :  { %785 = vrot.lane.b32.xlu0 %v1366_v57, %s1423_s25  ;;  %v304_v36 = vpop.permute.xlu0 %303 }
 0x1a0   :  { %803 = vrot.lane.b32.xlu1 %v1587_v22, %s1422_s6  ;;  %v276_v22 = vsub.f32 1.0, %v1688_v58  ;;  %v313_v26 = vmul.f32 %v304_v36, %v1710_v12 }
 0x1a8   :  { %805 = vrot.lane.b32.xlu1 %v1595_v23, %s1422_s6 }
 0x1b9   :  { %v284_v19 = vpop.permute.xlu2 %283 }
 0x1ba   :  { %v295_v8 = vmul.f32 %v284_v19, %v275_v7 }
 0x1bc   :  { %v1793_v10 = vadd.f32 %v311_v3, %v295_v8 }
 0x1be   :  { %369 = vrot.lane.b32.xlu2 %v1793_v10, %s1423_s25 }
 0x1d2   :  { %v760_v21 = vpop.permute.xlu1 %759 }
 0x1d3   :  { %v769_v11 = vadd.f32 %v760_v21, %v1751_v60 }
 0x1d5   :  { %1367 = vtanh.f32 %v769_v11 }
 0x1d9   :  { %v286_v23 = vpop.permute.xlu2 %285 }
 0x1da   :  { %v296_v13 = vmul.f32 %v286_v23, %v276_v22  ;;  %v353_v23 = vpop.f32.mrf.mxu2 }
 0x1db   :  { %v1368_v1 = vpop.eup %1367 }
 0x1dc   :  { %v1800_v20 = vadd.f32 %v312_v17, %v296_v13  ;;  %787 = vrot.lane.b32.xlu0 %v1368_v1, %s1423_s25  ;;  %v1878_v17 = vadd.f32 %v1629_v40, %v353_v23 }
 0x1de   :  { %371 = vrot.lane.b32.xlu2 %v1800_v20, %s1423_s25 }
 0x1e1   :  { %v288_v60 = vpop.permute.xlu2 %287 }
 0x1e2   :  { %v297_v28 = vmul.f32 %v288_v60, %v277_v25  ;;  %v356_v25 = vpop.f32.mrf.mxu2 }
 0x1e4   :  { %v1807_v29 = vadd.f32 %v313_v26, %v297_v28  ;;  %v1887_v26 = vadd.f32 %v1629_v40, %v356_v25 }
 0x1e6   :  { %373 = vrot.lane.b32.xlu2 %v1807_v29, %s1423_s25 }
 0x1e9   :  { %v306_v31 = vpop.permute.xlu2 %305 }
 0x1ea   :  { %v314_v41 = vmul.f32 %v306_v31, %v1733_v46 }
 0x1f2   :  { %v762_v58 = vpop.permute.xlu1 %761 }
 0x1f3   :  { %v770_v30 = vadd.f32 %v762_v58, %v1758_v9 }
 0x1f5   :  { %1369 = vtanh.f32 %v770_v30 }
 0x1fa   :  { %v290_v34 = vpop.permute.xlu1 %289 }
 0x1fb   :  { %v1370_v15 = vpop.eup %1369  ;;  %v298_v35 = vmul.f32 %v290_v34, %v278_v32 }
 0x1fc   :  { %789 = vrot.lane.b32.xlu0 %v1370_v15, %s1423_s25 }
 0x1fd   :  { %v1815_v12 = vadd.f32 %v314_v41, %v298_v35 }
 0x1ff   :  { %375 = vrot.lane.b32.xlu2 %v1815_v12, %s1423_s25 }
 0x201   :  { %v784_v37 = vpop.permute.xlu0 %783 }
 0x202   :  { %v795_v9 = vmul.f32 %v784_v37, %v775_v18  ;;  %v800_v38 = vpop.permute.xlu1 %799  ;;  %v359_v37 = vpop.f32.mrf.mxu2 }
 0x203   :  { %v811_v43 = vmul.f32 %v800_v38, %v1731_v42 }
 0x205   :  { %v1821_v47 = vadd.f32 %v811_v43, %v795_v9  ;;  %v1898_v43 = vadd.f32 %v1629_v40, %v359_v37 }
 0x207   :  { %823 = vrot.lane.b32.xlu0 %v1821_v47, %s1423_s25 }
 0x20a   :  { %v802_v46 = vpop.permute.xlu1 %801 }
 0x20b   :  { %v812_v39 = vmul.f32 %v802_v46, %v1744_v61 }
 0x211   :  { %v786_v50 = vpop.permute.xlu0 %785 }
 0x212   :  { %v796_v45 = vmul.f32 %v786_v50, %v776_v48  ;;  %v804_v61 = vpop.permute.xlu1 %803 }
 0x213   :  { %v813_v63 = vmul.f32 %v804_v61, %v1762_v27 }
 0x214   :  { %v1827_v51 = vadd.f32 %v812_v39, %v796_v45 }
 0x216   :  { %825 = vrot.lane.b32.xlu1 %v1827_v51, %s1423_s25 }
 0x218   :  { %v1831_v53 = vpop.permute.xlu2 %369 }
 0x219   :  { %1259 = vmatmul.msk.f32.vlgmr.msra.gmra.mxu3 %vm65_vm0, %v1831_v53 }
 0x21a   :  { %v806_v27 = vpop.permute.xlu1 %805 }
 0x21b   :  { %v814_v6 = vmul.f32 %v806_v27, %v1769_v55 }
 0x238   :  { %v1835_v42 = vpop.permute.xlu2 %371 }
 0x239   :  { %1260 = vmatmul.msk.f32.gmra.mxu3 %vm65_vm0, %v1835_v42 }
 0x240   :  { %v1839_v54 = vpop.permute.xlu2 %373 }
 0x241   :  { %1261 = vmatmul.msk.f32.gmra.mxu3 %vm65_vm0, %v1839_v54 }
 0x24e   :  { %v788_v62 = vpop.permute.xlu0 %787 }
 0x24f   :  { %v797_v5 = vmul.f32 %v788_v62, %v777_v59 }
 0x251   :  { %v1845_v44 = vadd.f32 %v813_v63, %v797_v5 }
 0x253   :  { %827 = vrot.lane.b32.xlu2 %v1845_v44, %s1423_s25 }
 0x259   :  { %v1855_v56 = vpop.permute.xlu2 %375 }
 0x25a   :  { %1262 = vmatmul.msk.f32.gmra.mxu3 %vm65_vm0, %v1855_v56 }
 0x26e   :  { %v790_v49 = vpop.permute.xlu0 %789 }
 0x26f   :  { %v798_v57 = vmul.f32 %v790_v49, %v778_v4 }
 0x271   :  { %v1861_v16 = vadd.f32 %v814_v6, %v798_v57 }
 0x273   :  { %829 = vrot.lane.b32.xlu0 %v1861_v16, %s1423_s25 }
 0x279   :  { %v824_v7 = vpop.permute.xlu0 %823 }
 0x27a   :  { %1283 = vmatmul.msk.f32.vlgmr.msrb.gmra.mxu2 %vm65_vm0, %v824_v7  ;;  %1299 = vmatmul.msk.f32.vlgmr.msra.gmra.mxu1 %vm65_vm0, %v824_v7 }
 0x288   :  { %v826_v19 = vpop.permute.xlu1 %825 }
 0x289   :  { %1284 = vmatmul.msk.f32.gmra.mxu2 %vm65_vm0, %v826_v19  ;;  %1300 = vmatmul.msk.f32.gmra.mxu1 %vm65_vm0, %v826_v19 }
 0x29c   :  { %v402_v3 = vpop.f32.mrf.mxu3 }
 0x29d   :  { %v403_v8 = vadd.f32 %v1607_v24, %v402_v3 }
 0x29f   :  { %498 = vrot.lane.b32.xlu1 %v403_v8, %s1420_s1  ;;  %v414_v36 = vadd.f32 %v403_v8, %v1878_v17 }
 0x2a1   :  { %v1263_v60 = vmul.f32 -1.442695, %v414_v36 }
 0x2a3   :  { %1371 = vpow2.f32 %v1263_v60 }
 0x2a9   :  { %v1372_v30 = vpop.eup %1371 }
 0x2aa   :  { %v430_v31 = vadd.f32 1.0, %v1372_v30 }
 0x2ac   :  { %v445_v62 = vand.u32 2147483648, %v430_v31  ;;  %vm439_vm4 = vweird.f32 %v430_v31  ;;  %v443_v5 = vand.u32 2147483647, %v430_v31 }
 0x2ad   :  { %v828_v55 = vpop.permute.xlu2 %827 }
 0x2ae   :  { %1285 = vmatmul.msk.f32.gmra.mxu2 %vm65_vm0, %v828_v55  ;;  %1301 = vmatmul.msk.f32.gmra.mxu1 %vm65_vm0, %v828_v55  ;;  %v446_v27 = vor.u32 1.1754944e-38, %v445_v62  ;;  %vm444_vm6 = vcmp.eq.f32.partialorder %v443_v5, 8.507059e+37 }
 0x2bc   :  { %v405_v21 = vpop.f32.mrf.mxu3 }
 0x2bd   :  { %v406_v11 = vadd.f32 %v1607_v24, %v405_v21 }
 0x2bf   :  { %500 = vrot.lane.b32.xlu2 %v406_v11, %s1420_s1  ;;  %v415_v58 = vadd.f32 %v406_v11, %v1887_v26 }
 0x2c4   :  { %v408_v14 = vpop.f32.mrf.mxu3 }
 0x2c5   :  { %v409_v22 = vadd.f32 %v1607_v24, %v408_v14 }
 0x2c7   :  { %502 = vrot.lane.b32.xlu0 %v409_v22, %s1420_s1  ;;  %v416_v45 = vadd.f32 %v409_v22, %v1898_v43  ;;  %v362_v22 = vpop.f32.mrf.mxu2 }
 0x2c9   :  { %v1265_v63 = vmul.f32 -1.442695, %v416_v45 }
 0x2dd   :  { %v411_v13 = vpop.f32.mrf.mxu3 }
 0x2de   :  { %v1881_v1 = vadd.f32 %v1607_v24, %v411_v13  ;;  %v1264_v24 = vmul.f32 -1.442695, %v415_v58  ;;  %v1915_v13 = vadd.f32 %v1629_v40, %v362_v22  ;;  %v956_v40 = vpop.f32.mrf.mxu0 }
 0x2e0   :  { %504 = vrot.lane.b32.xlu1 %v1881_v1, %s1420_s1  ;;  %1373 = vpow2.f32 %v1264_v24  ;;  %v417_v36 = vadd.f32 %v1881_v1, %v1915_v13  ;;  %v1922_v1 = vadd.f32 %v1646_v52, %v956_v40 }
 0x2e1   :  { %1375 = vrcp.f32 %v430_v31 }
 0x2e2   :  { %v1266_v60 = vmul.f32 -1.442695, %v417_v36 }
 0x2e5   :  { %v830_v28 = vpop.permute.xlu0 %829 }
 0x2e6   :  { %1286 = vmatmul.msk.f32.gmra.mxu2 %vm65_vm0, %v830_v28  ;;  %1302 = vmatmul.msk.f32.gmra.mxu1 %vm65_vm0, %v830_v28  ;;  %v1374_v32 = vpop.eup %1373  ;;  %v959_v62 = vpop.f32.mrf.mxu0 }
 0x2e7   :  { %v431_v41 = vadd.f32 1.0, %v1374_v32  ;;  %v1376_v35 = vpop.eup %1375  ;;  %v1931_v5 = vadd.f32 %v1646_v52, %v959_v62 }
 0x2e8   :  { %v435_v18 = vmul.f32 %v1376_v35, %v430_v31  ;;  %vm440_vm3 = vweird.f32 %v1376_v35 }
 0x2e9   :  { %1377 = vrcp.f32 %v431_v41  ;;  %vm441_vm5 = vmor %vm439_vm4, %vm440_vm3  ;;  %v460_v7 = vand.u32 2147483648, %v431_v41  ;;  %vm454_vm8 = vweird.f32 %v431_v41  ;;  %v458_v19 = vand.u32 2147483647, %v431_v41 }
 0x2ea   :  { %v436_v9 = vsub.f32 1.0, %v435_v18  ;;  %1379 = vpow2.f32 %v1265_v63 }
 0x2eb   :  { %v461_v55 = vor.u32 1.1754944e-38, %v460_v7  ;;  %vm459_vm10 = vcmp.eq.f32.partialorder %v458_v19, 8.507059e+37 }
 0x2ec   :  { %v437_v48 = vmul.f32 %v1376_v35, %v436_v9 }
 0x2ee   :  { %v438_v61 = vadd.f32 %v1376_v35, %v437_v48 }
 0x2ef   :  { %v1378_v38 = vpop.eup %1377 }
 0x2f0   :  { %v450_v50 = vmul.f32 %v1378_v38, %v431_v41  ;;  %v442_v0 = vsel %vm441_vm5, %v1376_v35, %v438_v61  ;;  %vm455_vm7 = vweird.f32 %v1378_v38  ;;  %v1380_v3 = vpop.eup %1379 }
 0x2f1   :  { %v1906_v49 = vsel %vm444_vm6, %v446_v27, %v442_v0  ;;  %vm456_vm9 = vmor %vm454_vm8, %vm455_vm7  ;;  %v432_v21 = vadd.f32 1.0, %v1380_v3  ;;  %v962_v3 = vpop.f32.mrf.mxu0 }
 0x2f2   :  { %v451_v59 = vsub.f32 1.0, %v450_v50 }
 0x2f3   :  { %1381 = vrcp.f32 %v432_v21  ;;  %v475_v35 = vand.u32 2147483648, %v432_v21  ;;  %vm469_vm12 = vweird.f32 %v432_v21  ;;  %v473_v18 = vand.u32 2147483647, %v432_v21 }
 0x2f4   :  { %v452_v2 = vmul.f32 %v1378_v38, %v451_v59  ;;  %1383 = vpow2.f32 %v1266_v60 }
 0x2f5   :  { %v476_v9 = vor.u32 1.1754944e-38, %v475_v35  ;;  %vm474_vm14 = vcmp.eq.f32.partialorder %v473_v18, 8.507059e+37 }
 0x2f6   :  { %v453_v57 = vadd.f32 %v1378_v38, %v452_v2 }
 0x2f7   :  { %v985_v34 = vpop.f32.mrf.mxu1 }
 0x2f8   :  { %v1893_v15 = vadd.f32 %v1620_v33, %v985_v34  ;;  %v457_v8 = vsel %vm456_vm9, %v1378_v38, %v453_v57 }
 0x2f9   :  { %v1910_v11 = vsel %vm459_vm10, %v461_v55, %v457_v8  ;;  %v1382_v25 = vpop.eup %1381 }
 0x2fa   :  { %1081 = vrot.lane.b32.xlu2 %v1893_v15, %s1420_s1  ;;  %v465_v28 = vmul.f32 %v1382_v25, %v432_v21  ;;  %v1384_v32 = vpop.eup %1383  ;;  %vm470_vm11 = vweird.f32 %v1382_v25  ;;  %v997_v48 = vadd.f32 %v1893_v15, %v1922_v1 }
 0x2fb   :  { %v433_v34 = vadd.f32 1.0, %v1384_v32  ;;  %vm471_vm13 = vmor %vm469_vm12, %vm470_vm11 }
 0x2fc   :  { %v466_v58 = vsub.f32 1.0, %v465_v28  ;;  %v1303_v61 = vmul.f32 -1.442695, %v997_v48 }
 0x2fd   :  { %1385 = vrcp.f32 %v433_v34  ;;  %vm484_vm1 = vweird.f32 %v433_v34  ;;  %v488_v7 = vand.u32 2147483647, %v433_v34 }
 0x2fe   :  { %v467_v31 = vmul.f32 %v1382_v25, %v466_v58  ;;  %1387 = vpow2.f32 %v1303_v61 }
 0x2ff   :  { %vm489_vm3 = vcmp.eq.f32.partialorder %v488_v7, 8.507059e+37 }
 0x300   :  { %v468_v41 = vadd.f32 %v1382_v25, %v467_v31 }
 0x302   :  { %v472_v37 = vsel %vm471_vm13, %v1382_v25, %v468_v41 }
 0x303   :  { %v1386_v45 = vpop.eup %1385 }
 0x304   :  { %v480_v59 = vmul.f32 %v1386_v45, %v433_v34  ;;  %v1388_v2 = vpop.eup %1387  ;;  %vm485_vm15 = vweird.f32 %v1386_v45 }
 0x305   :  { %vm486_vm2 = vmor %vm484_vm1, %vm485_vm15 }
 0x306   :  { %v988_v46 = vpop.f32.mrf.mxu1  ;;  %v481_v63 = vsub.f32 1.0, %v480_v59 }
 0x307   :  { %v1901_v39 = vadd.f32 %v1620_v33, %v988_v46  ;;  %v1924_v46 = vsel %vm474_vm14, %v476_v9, %v472_v37 }
 0x308   :  { %v482_v0 = vmul.f32 %v1386_v45, %v481_v63 }
 0x309   :  { %1083 = vrot.lane.b32.xlu0 %v1901_v39, %s1420_s1  ;;  %v998_v27 = vadd.f32 %v1901_v39, %v1931_v5 }
 0x30a   :  { %v483_v15 = vadd.f32 %v1386_v45, %v482_v0 }
 0x30b   :  { %v1304_v57 = vmul.f32 -1.442695, %v998_v27 }
 0x30c   :  { %v487_v19 = vsel %vm486_vm2, %v1386_v45, %v483_v15 }
 0x311   :  { %v499_v4 = vpop.permute.xlu1 %498 }
 0x312   :  { %v510_v6 = vmul.f32 %v499_v4, %v1906_v49  ;;  %v1013_v4 = vadd.f32 1.0, %v1388_v2 }
 0x314   :  { %518 = vrot.lane.b32.xlu1 %v510_v6, %s1421_s24  ;;  %v490_v6 = vand.u32 2147483648, %v433_v34  ;;  %1389 = vrcp.f32 %v1013_v4  ;;  %v1028_v40 = vand.u32 2147483648, %v1013_v4  ;;  %vm1022_vm5 = vweird.f32 %v1013_v4 }
 0x315   :  { %1391 = vpow2.f32 %v1304_v57  ;;  %v1026_v35 = vand.u32 2147483647, %v1013_v4 }
 0x316   :  { %v491_v8 = vor.u32 1.1754944e-38, %v490_v6  ;;  %v1029_v9 = vor.u32 1.1754944e-38, %v1028_v40  ;;  %v1419_v40 = vld [vmem:[%s2082_s8] ss:$0 sm:$0xff] }
 0x317   :  { %vm1027_vm7 = vcmp.eq.f32.partialorder %v1026_v35, 8.507059e+37 }
 0x318   :  { %v1935_v21 = vsel %vm489_vm3, %v491_v8, %v487_v19 }
 0x319   :  { %v501_v14 = vpop.permute.xlu2 %500 }
 0x31a   :  { %v511_v23 = vmul.f32 %v501_v14, %v1910_v11  ;;  %v1938_v14 = vadd.f32 %v1646_v52, %v962_v3  ;;  %v1390_v22 = vpop.eup %1389 }
 0x31b   :  { %v1018_v25 = vmul.f32 %v1390_v22, %v1013_v4  ;;  %vm1023_vm4 = vweird.f32 %v1390_v22 }
 0x31c   :  { %520 = vrot.lane.b32.xlu0 %v511_v23, %s1421_s24  ;;  %v1392_v23 = vpop.eup %1391  ;;  %vm1024_vm6 = vmor %vm1022_vm5, %vm1023_vm4  ;;  %vm918_vm5 = vcmask 97280  }
 0x31d   :  { %v1014_v60 = vadd.f32 1.0, %v1392_v23  ;;  %v1019_v58 = vsub.f32 1.0, %v1018_v25 }
 0x31f   :  { %1393 = vrcp.f32 %v1014_v60  ;;  %v1043_v62 = vand.u32 2147483648, %v1014_v60  ;;  %vm1037_vm9 = vweird.f32 %v1014_v60  ;;  %v1041_v0 = vand.u32 2147483647, %v1014_v60 }
 0x321   :  { %v1044_v27 = vor.u32 1.1754944e-38, %v1043_v62  ;;  %vm1042_vm11 = vcmp.eq.f32.partialorder %v1041_v0, 8.507059e+37 }
 0x325   :  { %v1394_v32 = vpop.eup %1393 }
 0x326   :  { %v1033_v37 = vmul.f32 %v1394_v32, %v1014_v60  ;;  %vm1038_vm8 = vweird.f32 %v1394_v32 }
 0x327   :  { %vm1039_vm10 = vmor %vm1037_vm9, %vm1038_vm8 }
 0x32b   :  { %v991_v24 = vpop.f32.mrf.mxu1 }
 0x32c   :  { %v992_v30 = vadd.f32 %v1620_v33, %v991_v24  ;;  %v1020_v24 = vmul.f32 %v1390_v22, %v1019_v58 }
 0x32e   :  { %1085 = vrot.lane.b32.xlu2 %v992_v30, %s1420_s1  ;;  %v999_v36 = vadd.f32 %v992_v30, %v1938_v14  ;;  %v1021_v34 = vadd.f32 %v1390_v22, %v1020_v24 }
 0x330   :  { %v1305_v28 = vmul.f32 -1.442695, %v999_v36  ;;  %v1025_v18 = vsel %vm1024_vm6, %v1390_v22, %v1021_v34 }
 0x331   :  { %v1948_v48 = vsel %vm1027_vm7, %v1029_v9, %v1025_v18 }
 0x332   :  { %1395 = vpow2.f32 %v1305_v28 }
 0x338   :  { %v1396_v41 = vpop.eup %1395 }
 0x339   :  { %v503_v38 = vpop.permute.xlu0 %502  ;;  %v1015_v30 = vadd.f32 1.0, %v1396_v41  ;;  %v965_v41 = vpop.f32.mrf.mxu0 }
 0x33a   :  { %v512_v50 = vmul.f32 %v503_v38, %v1924_v46  ;;  %v1969_v35 = vadd.f32 %v1419_v40, %v965_v41 }
 0x33b   :  { %1397 = vrcp.f32 %v1015_v30  ;;  %v1058_v3 = vand.u32 2147483648, %v1015_v30  ;;  %vm1052_vm13 = vweird.f32 %v1015_v30  ;;  %v1056_v8 = vand.u32 2147483647, %v1015_v30 }
 0x33c   :  { %522 = vrot.lane.b32.xlu2 %v512_v50, %s1421_s24  ;;  %v1034_v50 = vsub.f32 1.0, %v1033_v37 }
 0x33d   :  { %v1059_v22 = vor.u32 1.1754944e-38, %v1058_v3  ;;  %vm1057_vm15 = vcmp.eq.f32.partialorder %v1056_v8, 8.507059e+37  ;;  %v539_v8 = vsub.f32 1.0, %v1910_v11 }
 0x33e   :  { %v1035_v45 = vmul.f32 %v1394_v32, %v1034_v50 }
 0x340   :  { %v1036_v59 = vadd.f32 %v1394_v32, %v1035_v45 }
 0x341   :  { %v1398_v61 = vpop.eup %1397 }
 0x342   :  { %v1048_v63 = vmul.f32 %v1398_v61, %v1015_v30  ;;  %v1040_v2 = vsel %vm1039_vm10, %v1394_v32, %v1036_v59  ;;  %vm1053_vm12 = vweird.f32 %v1398_v61 }
 0x343   :  { %v1952_v15 = vsel %vm1042_vm11, %v1044_v27, %v1040_v2  ;;  %vm1054_vm14 = vmor %vm1052_vm13, %vm1053_vm12 }
 0x344   :  { %v1049_v4 = vsub.f32 1.0, %v1048_v63 }
 0x346   :  { %v1050_v7 = vmul.f32 %v1398_v61, %v1049_v4 }
 0x348   :  { %v1051_v19 = vadd.f32 %v1398_v61, %v1050_v7 }
 0x352   :  { %v505_v55 = vpop.permute.xlu1 %504 }
 0x353   :  { %v513_v39 = vmul.f32 %v505_v55, %v1935_v21  ;;  %v1055_v55 = vsel %vm1054_vm14, %v1398_v61, %v1051_v19 }
 0x354   :  { %v1082_v38 = vpop.permute.xlu2 %1081  ;;  %v1957_v36 = vsel %vm1057_vm15, %v1059_v22, %v1055_v55 }
 0x355   :  { %524 = vrot.lane.b32.xlu0 %v513_v39, %s1421_s24 }
 0x363   :  { %v994_v31 = vpop.f32.mrf.mxu1 }
 0x364   :  { %v1944_v52 = vadd.f32 %v1620_v33, %v994_v31  ;;  %v1093_v33 = vmul.f32 %v1082_v38, %v1948_v48 }
 0x366   :  { %1087 = vrot.lane.b32.xlu1 %v1944_v52, %s1420_s1 }
 0x36e   :  { %1101 = vrot.lane.b32.xlu1 %v1093_v33, %s1421_s24 }
 0x37b   :  { %v1084_v6 = vpop.permute.xlu0 %1083 }
 0x37c   :  { %v1094_v57 = vmul.f32 %v1084_v6, %v1952_v15 }
 0x37e   :  { %1103 = vrot.lane.b32.xlu2 %v1094_v57, %s1421_s24 }
 0x386   :  { %v519_v39 = vpop.permute.xlu1 %518 }
 0x387   :  { %v530_v23 = vadd.f32 %v519_v39, %v1878_v17  ;;  %v563_v39 = vmul.f32 %v1910_v11, %v1800_v20  ;;  %v540_v20 = vsub.f32 1.0, %v1924_v46 }
 0x388   :  { %v1086_v25 = vpop.permute.xlu2 %1085 }
 0x389   :  { %1399 = vtanh.f32 %v530_v23  ;;  %v1095_v60 = vmul.f32 %v1086_v25, %v1957_v36 }
 0x38b   :  { %1105 = vrot.lane.b32.xlu1 %v1095_v60, %s1421_s24 }
 0x38e   :  { %v521_v28 = vpop.permute.xlu0 %520 }
 0x38f   :  { %v1400_v58 = vpop.eup %1399  ;;  %v531_v24 = vadd.f32 %v521_v28, %v1887_v26  ;;  %v1000_v26 = vadd.f32 %v1944_v52, %v1969_v35  ;;  %v562_v28 = vmul.f32 %v1906_v49, %v1793_v10 }
 0x390   :  { %546 = vrot.lane.b32.xlu0 %v1400_v58, %s1423_s25 }
 0x391   :  { %1401 = vtanh.f32 %v531_v24  ;;  %v1306_v30 = vmul.f32 -1.442695, %v1000_v26  ;;  %v51_v26 = vld [vmem:[%s2083_s10 + $0x8] sm:$0xff] }
 0x392   :  { %902 = vmatpush.msrb.mxu3 %v51_v26 }
 0x396   :  { %v523_v31 = vpop.permute.xlu2 %522 }
 0x397   :  { %v1402_v32 = vpop.eup %1401  ;;  %v532_v17 = vadd.f32 %v523_v31, %v1898_v43 }
 0x398   :  { %548 = vrot.lane.b32.xlu2 %v1402_v32, %s1423_s25 }
 0x399   :  { %1403 = vtanh.f32 %v532_v17 }
 0x39a   :  { %1405 = vpow2.f32 %v1306_v30 }
 0x39f   :  { %v1404_v34 = vpop.eup %1403 }
 0x3a0   :  { %550 = vrot.lane.b32.xlu1 %v1404_v34, %s1423_s25  ;;  %v1406_v18 = vpop.eup %1405  ;;  %v541_v34 = vsub.f32 1.0, %v1935_v21 }
 0x3a1   :  { %v1016_v43 = vadd.f32 1.0, %v1406_v18  ;;  %v1146_v18 = vmul.f32 %v1952_v15, %v1827_v51 }
 0x3a3   :  { %1407 = vrcp.f32 %v1016_v43  ;;  %v1073_v62 = vand.u32 2147483648, %v1016_v43  ;;  %vm1067_vm2 = vweird.f32 %v1016_v43  ;;  %v1071_v52 = vand.u32 2147483647, %v1016_v43 }
 0x3a5   :  { %v1074_v0 = vor.u32 1.1754944e-38, %v1073_v62  ;;  %vm1072_vm4 = vcmp.eq.f32.partialorder %v1071_v52, 8.507059e+37  ;;  %v1147_v62 = vmul.f32 %v1957_v36, %v1845_v44 }
 0x3a9   :  { %v1408_v37 = vpop.eup %1407 }
 0x3aa   :  { %v1063_v9 = vmul.f32 %v1408_v37, %v1016_v43  ;;  %vm1068_vm1 = vweird.f32 %v1408_v37 }
 0x3ab   :  { %vm1069_vm3 = vmor %vm1067_vm2, %vm1068_vm1 }
 0x3ac   :  { %v1064_v50 = vsub.f32 1.0, %v1063_v9 }
 0x3ae   :  { %v1065_v45 = vmul.f32 %v1408_v37, %v1064_v50 }
 0x3b0   :  { %v1066_v59 = vadd.f32 %v1408_v37, %v1065_v45 }
 0x3b2   :  { %v1070_v63 = vsel %vm1069_vm3, %v1408_v37, %v1066_v59 }
 0x3b3   :  { %v1975_v27 = vsel %vm1072_vm4, %v1074_v0, %v1070_v63 }
 0x3b4   :  { %v1124_v0 = vsub.f32 1.0, %v1975_v27 }
 0x3c7   :  { %v525_v38 = vpop.permute.xlu0 %524 }
 0x3c8   :  { %v533_v33 = vadd.f32 %v525_v38, %v1915_v13  ;;  %v1121_v38 = vsub.f32 1.0, %v1948_v48 }
 0x3ca   :  { %1409 = vtanh.f32 %v533_v33 }
 0x3d0   :  { %v1410_v61 = vpop.eup %1409 }
 0x3d1   :  { %552 = vrot.lane.b32.xlu2 %v1410_v61, %s1423_s25 }
 0x3d8   :  { %v1088_v2 = vpop.permute.xlu1 %1087  ;;  %v1104_v4 = vpop.permute.xlu2 %1103 }
 0x3d9   :  { %v1096_v13 = vmul.f32 %v1088_v2, %v1975_v27  ;;  %v1114_v6 = vadd.f32 %v1104_v4, %v1931_v5  ;;  %v1148_v4 = vmul.f32 %v1975_v27, %v1861_v16  ;;  %v856_v16 = vpop.f32.mrf.mxu2 }
 0x3db   :  { %1411 = vtanh.f32 %v1114_v6  ;;  %1107 = vrot.lane.b32.xlu0 %v1096_v13, %s1421_s24 }
 0x3e0   :  { %v1102_v57 = vpop.permute.xlu1 %1101 }
 0x3e1   :  { %v1412_v7 = vpop.eup %1411  ;;  %v1113_v19 = vadd.f32 %v1102_v57, %v1922_v1  ;;  %v538_v1 = vsub.f32 1.0, %v1906_v49  ;;  %v565_v49 = vmul.f32 %v1935_v21, %v1815_v12  ;;  %v1122_v12 = vsub.f32 1.0, %v1952_v15 }
 0x3e2   :  { %1131 = vrot.lane.b32.xlu1 %v1412_v7, %s1423_s25  ;;  %v1123_v15 = vsub.f32 1.0, %v1957_v36 }
 0x3e3   :  { %1413 = vtanh.f32 %v1113_v19 }
 0x3e9   :  { %v1414_v3 = vpop.eup %1413 }
 0x3ea   :  { %1129 = vrot.lane.b32.xlu0 %v1414_v3, %s1423_s25 }
 0x3f2   :  { %v549_v55 = vpop.permute.xlu2 %548 }
 0x3f3   :  { %v559_v5 = vmul.f32 %v549_v55, %v539_v8 }
 0x3f5   :  { %v567_v22 = vadd.f32 %v563_v39, %v559_v5 }
 0x3f7   :  { %874 = vrot.lane.b32.xlu1 %v567_v22, %s1423_s25 }
 0x3fd   :  { %v1106_v23 = vpop.permute.xlu1 %1105 }
 0x3fe   :  { %v1115_v25 = vadd.f32 %v1106_v23, %v1938_v14  ;;  %v564_v14 = vmul.f32 %v1924_v46, %v1807_v29  ;;  %v50_v29 = vld [vmem:[%s2083_s10] sm:$0xff] }
 0x3ff   :  { %903 = vmatpush.msrb.mxu3 %v50_v29 }
 0x400   :  { %1415 = vtanh.f32 %v1115_v25 }
 0x401   :  { %1216 = vmatpush.msra.mxu3 %v51_v26 }
 0x402   :  { %v547_v60 = vpop.permute.xlu0 %546 }
 0x403   :  { %v558_v58 = vmul.f32 %v547_v60, %v538_v1  ;;  %1217 = vmatpush.msra.mxu3 %v50_v29 }
 0x405   :  { %v566_v24 = vadd.f32 %v562_v28, %v558_v58 }
 0x406   :  { %v1416_v31 = vpop.eup %1415 }
 0x407   :  { %872 = vrot.lane.b32.xlu2 %v566_v24, %s1423_s25  ;;  %1133 = vrot.lane.b32.xlu0 %v1416_v31, %s1423_s25 }
 0x412   :  { %v551_v11 = vpop.permute.xlu1 %550 }
 0x413   :  { %v560_v32 = vmul.f32 %v551_v11, %v540_v20 }
 0x415   :  { %v568_v17 = vadd.f32 %v564_v14, %v560_v32 }
 0x417   :  { %876 = vrot.lane.b32.xlu0 %v568_v17, %s1423_s25 }
 0x42b   :  { %v553_v10 = vpop.permute.xlu2 %552 }
 0x42c   :  { %v561_v41 = vmul.f32 %v553_v10, %v541_v34 }
 0x42e   :  { %v569_v40 = vadd.f32 %v565_v49, %v561_v41 }
 0x430   :  { %878 = vrot.lane.b32.xlu1 %v569_v40, %s1423_s25 }
 0x44d   :  { %v1108_v46 = vpop.permute.xlu0 %1107 }
 0x44e   :  { %v1116_v30 = vadd.f32 %v1108_v46, %v1969_v35  ;;  %v1145_v35 = vmul.f32 %v1948_v48, %v1821_v47 }
 0x450   :  { %1417 = vtanh.f32 %v1116_v30 }
 0x454   :  { %v1132_v21 = vpop.permute.xlu1 %1131 }
 0x455   :  { %v1142_v43 = vmul.f32 %v1132_v21, %v1122_v12 }
 0x456   :  { %v1418_v37 = vpop.eup %1417 }
 0x457   :  { %v1150_v9 = vadd.f32 %v1146_v18, %v1142_v43  ;;  %1135 = vrot.lane.b32.xlu2 %v1418_v37, %s1423_s25 }
 0x459   :  { %1159 = vrot.lane.b32.xlu0 %v1150_v9, %s1423_s25 }
 0x45c   :  { %v1130_v33 = vpop.permute.xlu0 %1129 }
 0x45d   :  { %v1141_v50 = vmul.f32 %v1130_v33, %v1121_v38 }
 0x45f   :  { %v1149_v45 = vadd.f32 %v1145_v35, %v1141_v50 }
 0x461   :  { %1157 = vrot.lane.b32.xlu2 %v1149_v45, %s1423_s25  ;;  %v873_v61 = vpop.permute.xlu2 %872 }
 0x462   :  { %1287 = vmatmul.msk.f32.vlgmr.msrb.gmra.mxu3 %vm65_vm0, %v873_v61 }
 0x469   :  { %v875_v51 = vpop.permute.xlu1 %874 }
 0x46a   :  { %1288 = vmatmul.msk.f32.gmra.mxu3 %vm65_vm0, %v875_v51 }
 0x479   :  { %v1134_v59 = vpop.permute.xlu0 %1133 }
 0x47a   :  { %v1143_v52 = vmul.f32 %v1134_v59, %v1123_v15 }
 0x47c   :  { %v1151_v63 = vadd.f32 %v1147_v62, %v1143_v52 }
 0x47e   :  { %1161 = vrot.lane.b32.xlu1 %v1151_v63, %s1423_s25 }
 0x489   :  { %v877_v47 = vpop.permute.xlu0 %876 }
 0x48a   :  { %1289 = vmatmul.msk.f32.gmra.mxu3 %vm65_vm0, %v877_v47 }
 0x4a2   :  { %v879_v48 = vpop.permute.xlu1 %878 }
 0x4a3   :  { %1290 = vmatmul.msk.f32.gmra.mxu3 %vm65_vm0, %v879_v48 }
 0x4ab   :  { %1311 = vmatmul.msk.f32.vlgmr.msra.gmra.mxu3 %vm65_vm0, %v1831_v53 }
 0x4b1   :  { %v1136_v2 = vpop.permute.xlu2 %1135 }
 0x4b2   :  { %v1144_v44 = vmul.f32 %v1136_v2, %v1124_v0 }
 0x4b3   :  { %1312 = vmatmul.msk.f32.gmra.mxu3 %vm65_vm0, %v1835_v42  ;;  %v859_v42 = vpop.f32.mrf.mxu2 }
 0x4b4   :  { %v1152_v36 = vadd.f32 %v1148_v4, %v1144_v44 }
 0x4b6   :  { %1163 = vrot.lane.b32.xlu2 %v1152_v36, %s1423_s25 }
 0x4bb   :  { %1313 = vmatmul.msk.f32.gmra.mxu3 %vm65_vm0, %v1839_v54  ;;  %v1158_v13 = vpop.permute.xlu2 %1157  ;;  %v862_v7 = vpop.f32.mrf.mxu2 }
 0x4bc   :  { %1307 = vmatmul.msk.f32.vlgmr.msra.gmra.mxu2 %vm65_vm0, %v1158_v13 }
 0x4c3   :  { %1314 = vmatmul.msk.f32.gmra.mxu3 %vm65_vm0, %v1855_v56  ;;  %v865_v55 = vpop.f32.mrf.mxu2 }
 0x4cb   :  { %v1160_v53 = vpop.permute.xlu0 %1159 }
 0x4cc   :  { %1308 = vmatmul.msk.f32.gmra.mxu2 %vm65_vm0, %v1160_v53 }
 0x4e5   :  { %v905_v27 = vpop.f32.mrf.mxu3 }
 0x4e6   :  { %v906_v6 = vadd.f32 %v905_v27, %v856_v16 }
 0x4e8   :  { %1291 = vst.msk [vmem:[%s2084_s11 + $0x20] sm:$0xff] %vm918_vm5, %v906_v6 }
 0x4ed   :  { %v908_v54 = vpop.f32.mrf.mxu3 }
 0x4ee   :  { %v909_v57 = vadd.f32 %v908_v54, %v859_v42 }
 0x4f0   :  { %1292 = vst.msk [vmem:[%s2084_s11 + $0x28] sm:$0xff] %vm918_vm5, %v909_v57  ;;  %v1162_v56 = vpop.permute.xlu1 %1161 }
 0x4f1   :  { %1309 = vmatmul.msk.f32.gmra.mxu2 %vm65_vm0, %v1162_v56 }
 0x50d   :  { %v911_v19 = vpop.f32.mrf.mxu3 }
 0x50e   :  { %v912_v3 = vadd.f32 %v911_v19, %v862_v7 }
 0x510   :  { %1293 = vst.msk [vmem:[%s2084_s11 + $0x30] sm:$0xff] %vm918_vm5, %v912_v3  ;;  %v1164_v8 = vpop.permute.xlu2 %1163 }
 0x511   :  { %1310 = vmatmul.msk.f32.gmra.mxu2 %vm65_vm0, %v1164_v8 }
 0x526   :  { %v914_v39 = vpop.f32.mrf.mxu3 }
 0x527   :  { %v915_v5 = vadd.f32 %v914_v39, %v865_v55 }
 0x529   :  { %1294 = vst.msk [vmem:[%s2084_s11 + $0x38] sm:$0xff] %vm918_vm5, %v915_v5 }
 0x52e   :  { %v1219_v22 = vpop.f32.mrf.mxu3 }
 0x536   :  { %v1222_v1 = vpop.f32.mrf.mxu3 }
 0x53e   :  { %v1225_v58 = vpop.f32.mrf.mxu3 }
 0x53f   :  { %v1190_v23 = vpop.f32.mrf.mxu2 }
 0x540   :  { %v1220_v25 = vadd.f32 %v1219_v22, %v1190_v23 }
 0x542   :  { %1231 = vst.msk [vmem:[%s2084_s11] sm:$0xff] %vm918_vm5, %v1220_v25 }
 0x546   :  { %v1228_v20 = vpop.f32.mrf.mxu3 }
 0x54f   :  { %v1193_v60 = vpop.f32.mrf.mxu2 }
 0x550   :  { %v1223_v28 = vadd.f32 %v1222_v1, %v1193_v60 }
 0x552   :  { %1232 = vst.msk [vmem:[%s2084_s11 + $0x8] sm:$0xff] %vm918_vm5, %v1223_v28 }
 0x574   :  { %v1196_v24 = vpop.f32.mrf.mxu2 }
 0x575   :  { %v1226_v31 = vadd.f32 %v1225_v58, %v1196_v24 }
 0x577   :  { %1233 = vst.msk [vmem:[%s2084_s11 + $0x10] sm:$0xff] %vm918_vm5, %v1226_v31 }
 0x594   :  { %v1199_v11 = vpop.f32.mrf.mxu2 }
 0x595   :  { %v1229_v14 = vadd.f32 %v1228_v20, %v1199_v11 }
 0x597   :  { %1234 = vst.msk [vmem:[%s2084_s11 + $0x18] sm:$0xff] %vm918_vm5, %v1229_v14 }

// kernel: my_input_forward.2
= control target key start
LH: loop header
LB: loop body
LE: loop exit
PB: predicated region body
PF: predicated region fallthrough
CT: control target
= control target key end

     0   :  { %s4129_s18 = smov 0   ;;  %s6082_s0 = inlined_call_operand.vmem [shape: s32[2,32,1], index: 0, kind: input, shape index: {}]   ;;  %s6083_s1 = inlined_call_operand.vmem [shape: f32[20,32], index: 1, kind: input, shape index: {}]   ;;  %s6084_s2 = inlined_call_operand.vmem [shape: f32[32,32], index: 2, kind: input, shape index: {}]   ;;  %s6085_s3 = inlined_call_operand.vmem [shape: f32[1,32], index: 3, kind: input, shape index: {}]   ;;  %s6086_s4 = inlined_call_operand.vmem [shape: f32[32,16], index: 4, kind: input, shape index: {}]   ;;  %s6087_s5 = inlined_call_operand.vmem [shape: f32[1,16], index: 5, kind: input, shape index: {}]   ;;  %s6088_s6 = inlined_call_operand.vmem [shape: f32[16,16,256], index: 6, kind: input, shape index: {}]   ;;  %s6089_s7 = inlined_call_operand.vmem [shape: f32[1,256], index: 7, kind: input, shape index: {}]   ;;  %s6090_s8 = inlined_call_operand.vmem [shape: f32[5,256,16], index: 8, kind: input, shape index: {}]   ;;  %s6091_s9 = inlined_call_operand.vmem [shape: f32[1,16], index: 9, kind: input, shape index: {}]   ;;  %s6092_s10 = inlined_call_operand.vmem [shape: f32[5,16,16], index: 10, kind: input, shape index: {}]   ;;  %s6093_s11 = inlined_call_operand.vmem [shape: f32[1,16], index: 11, kind: input, shape index: {}]   ;;  %s6094_s12 = inlined_call_operand.vmem [shape: f32[1,16], index: 12, kind: input, shape index: {}]   ;;  %s6095_s13 = inlined_call_operand.vmem [shape: f32[16,16], index: 13, kind: input, shape index: {}]   ;;  %s6096_s14 = inlined_call_operand.vmem [shape: f32[1,16], index: 14, kind: input, shape index: {}]   ;;  %s6097_s15 = inlined_call_operand.vmem [shape: f32[2,32,16], index: 15, kind: output, shape index: {}]  }
   0x1 LB: > { %s3544_s19 = sadd.s32 4294967295, %s4045_s18   ;;  %p3548_p0 = scmp.ge.s32.totalorder %s4045_s18, 1  ;;  %s4045_s18 = sphi %s4129_s18, %s25_s18  }
   0x2   : > { %p437_p1 = scmp.lt.s32.totalorder %s4045_s18, 3 }
   0x4   : > { %p438_p2 = pnand %p3548_p0, %p437_p1 }
   0x6   : > { %441 = sbr.rel (%p438_p2) target bundleno = 1996 (0x7cc), region = 80 }
   0xb   : > { %p485_p3 = scmp.lt.s32.totalorder %s3544_s19, 1  ;;  %v527_v0 = vld [vmem:[%s6083_s1 + $0x10] sm:$0xf]  ;;  %vm541_vm0 = vcmask 1043456   ;;  %v4047_v1 = vmov 0   ;;  %v526_v2 = vld [vmem:[%s6083_s1 + $0x8] sm:$0xff]  ;;  %v499_v12 = vlaneseq }
   0xc   : > { %3967 = vset.pattern.permute.xlu0 %v4047_v1  ;;  %3968 = vset.pattern.permute.xlu1 %v4047_v1  ;;  %v525_v7 = vld [vmem:[%s6083_s1] sm:$0xff]  ;;  %v577_v8 = vld [vmem:[%s6084_s2 + $0x18] sm:$0xff]  ;;  %v576_v9 = vld [vmem:[%s6084_s2 + $0x10] sm:$0xff]  ;;  %vm528_vm1 = vcmask 162816   ;;  %v4048_v16 = vmov 0.0   ;;  %vm582_vm6 = vcmask 261120  }
   0xd   : > { %s6171_s19 = smov (!%p485_p3, %s3544_s19), 1  ;;  %3557 = vmatpush.msk.msra.mxu0 %vm541_vm0, %v527_v0  ;;  %3952 = vmatpush.msk.msra.mxu1 %vm541_vm0, %v527_v0  ;;  %v575_v10 = vld [vmem:[%s6084_s2 + $0x8] sm:$0xff]  ;;  %v574_v11 = vld [vmem:[%s6084_s2] sm:$0xff]  ;;  %v500_v13 = vand.u32 127, %v499_v12  ;;  %v631_v23 = vld [vmem:[%s6086_s4 + $0x18] sm:$0xff]  ;;  %vm685_vm7 = vcmask 1046528  }
   0xe   : > { %s3950_s24 = sshll.u32 %s6171_s19, 5  ;;  %660 = vmatpush.msra.mxu2 %v631_v23  ;;  %v630_v28 = vld [vmem:[%s6086_s4 + $0x10] sm:$0xff]  ;;  %v629_v29 = vld [vmem:[%s6086_s4 + $0x8] sm:$0xff]  ;;  %v628_v30 = vld [vmem:[%s6086_s4] sm:$0xff]  ;;  %vm707_vm8 = vcmask 130048   ;;  %vm877_vm9 = vcmask 1045504  }
   0xf   : > { %559 = vmatpush.msra.mxu0 %v526_v2  ;;  %3953 = vmatpush.msra.mxu1 %v526_v2  ;;  %s489_s27 = scalar_lea.vmem %s6082_s0, %s3950_s24  ;;  %v3969_v31 = vld [vmem:[%s6085_s3] ss:$0 sm:$0xff]  ;;  %v705_v44 = vld [vmem:[%s6088_s6 + $0x10] sm:$0xff]  ;;  %v3581_v47 = vld [vmem:[%s6088_s6 + $0x38] sm:$0xff]  ;;  %vm1143_vm10 = vcmask 1042432   ;;  %vm1321_vm11 = vcmask 1040384   ;;  %s6062_s30 = scalar_lea.vmem %s6097_s15, %s3950_s24 }
  0x10   : > { %v495_v3 = vld [vmem:[%s489_s27] sm:$0xff]  ;;  %v497_v4 = vld [vmem:[%s489_s27 + $0x10] sm:$0xff]  ;;  %v496_v5 = vld [vmem:[%s489_s27 + $0x8] sm:$0xff]  ;;  %661 = vmatpush.msra.mxu2 %v630_v28  ;;  %3955 = vmatpush.msra.mxu3 %v705_v44  ;;  %vm966_vm12 = vcmask 1044480   ;;  %vm1232_vm13 = vcmask 1041408  }
  0x11   : > { %502 = vperm.xlu0 %3967, %v495_v3   ;;  %508 = vperm.xlu1 %3968, %v497_v4   ;;  %v498_v6 = vld [vmem:[%s489_s27 + $0x18] sm:$0xff]  ;;  %v703_v45 = vld [vmem:[%s6088_s6] sm:$0xff]  ;;  %v3580_v46 = vld [vmem:[%s6088_s6 + $0x30] sm:$0xff] }
  0x12   : > { %560 = vmatpush.msra.mxu0 %v525_v7  ;;  %3954 = vmatpush.msra.mxu1 %v525_v7  ;;  %v3592_v48 = vld [vmem:[%s6088_s6 + $0x50] sm:$0xff]  ;;  %v3578_v49 = vld [vmem:[%s6088_s6 + $0x20] sm:$0xff]  ;;  %v3579_v50 = vld [vmem:[%s6088_s6 + $0x28] sm:$0xff] }
  0x13   : > { %662 = vmatpush.msra.mxu2 %v629_v29  ;;  %3956 = vmatpush.msra.mxu3 %v703_v45  ;;  %v3590_v51 = vld [vmem:[%s6088_s6 + $0x40] sm:$0xff]  ;;  %v706_v52 = vld [vmem:[%s6088_s6 + $0x18] sm:$0xff]  ;;  %v704_v54 = vld [vmem:[%s6088_s6 + $0x8] sm:$0xff] }
  0x14   : > { %607 = vmatpush.msrb.mxu1 %v577_v8  ;;  %820 = vmatpush.msrb.mxu0 %v3580_v46  ;;  %v3970_v53 = vld [vmem:[%s6087_s5] ss:$0 sm:$0xff]  ;;  %v3593_v0 = vld [vmem:[%s6088_s6 + $0x58] sm:$0xff]  ;;  %v3604_v7 = vld [vmem:[%s6088_s6 + $0x70] sm:$0xff] }
  0x15   : > { %663 = vmatpush.msra.mxu2 %v628_v30  ;;  %760 = vmatpush.msrb.mxu3 %v706_v52  ;;  %v3605_v8 = vld [vmem:[%s6088_s6 + $0x78] sm:$0xff]  ;;  %v3591_v23 = vld [vmem:[%s6088_s6 + $0x48] sm:$0xff] }
  0x16   : > { %608 = vmatpush.msrb.mxu1 %v576_v9  ;;  %821 = vmatpush.msrb.mxu0 %v3578_v49  ;;  %v3616_v9 = vld [vmem:[%s6088_s6 + $0x90] sm:$0xff] }
  0x17   : > { %731 = vmatpush.msrb.mxu2 %v705_v44  ;;  %761 = vmatpush.msrb.mxu3 %v704_v54  ;;  %v3628_v49 = vld [vmem:[%s6088_s6 + $0xb0] sm:$0xff] }
  0x18   : > { %609 = vmatpush.msrb.mxu1 %v575_v10 }
  0x19   : > { %505 = vperm.xlu0 %3967, %v496_v5   ;;  %511 = vperm.xlu1 %3968, %v498_v6  }
  0x1a   : > { %610 = vmatpush.msrb.mxu1 %v574_v11  ;;  %732 = vmatpush.msrb.mxu2 %v703_v45  ;;  %v3602_v11 = vld [vmem:[%s6088_s6 + $0x60] sm:$0xff] }
  0x83   : > { %v503_v14 = vpop.permute.xlu0 %502  ;;  %v509_v15 = vpop.permute.xlu1 %508 }
  0x84   : > { %vm513_vm2 = vcmp.eq.s32.totalorder %v503_v14, %v500_v13  ;;  %vm515_vm3 = vcmp.eq.s32.totalorder %v509_v15, %v500_v13  ;;  %v3603_v14 = vld [vmem:[%s6088_s6 + $0x68] sm:$0xff]  ;;  %v3614_v15 = vld [vmem:[%s6088_s6 + $0x80] sm:$0xff] }
  0x85   : > { %v3553_v17 = vsel %vm513_vm2, 1.0, %v4048_v16  ;;  %v3555_v18 = vsel %vm515_vm3, 1.0, %v4048_v16 }
  0x86   : > { %3558 = vmatmul.msk.f32.vlgmr.msra.gmra.mxu0 %vm528_vm1, %v3553_v17  ;;  %3560 = vmatmul.msk.f32.vlgmr.msra.gmra.mxu1 %vm528_vm1, %v3555_v18 }
  0x87   : > { %849 = vmatpush.msra.mxu1 %v3581_v47  ;;  %998 = vmatpush.msra.mxu0 %v3604_v7 }
  0x89   : > { %850 = vmatpush.msra.mxu1 %v3579_v50  ;;  %999 = vmatpush.msra.mxu0 %v3602_v11  ;;  %v3629_v50 = vld [vmem:[%s6088_s6 + $0xb8] sm:$0xff] }
  0x8b   : > { %v506_v19 = vpop.permute.xlu0 %505  ;;  %v512_v20 = vpop.permute.xlu1 %511 }
  0x8c   : > { %vm514_vm4 = vcmp.eq.s32.totalorder %v506_v19, %v500_v13  ;;  %vm516_vm5 = vcmp.eq.s32.totalorder %v512_v20, %v500_v13 }
  0x8d   : > { %v3554_v21 = vsel %vm514_vm4, 1.0, %v4048_v16  ;;  %v3556_v22 = vsel %vm516_vm5, 1.0, %v4048_v16 }
  0x8e   : > { %3559 = vmatmul.msk.f32.gmra.mxu0 %vm528_vm1, %v3554_v21  ;;  %3561 = vmatmul.msk.f32.gmra.mxu1 %vm528_vm1, %v3556_v22 }
 0x103   : > { %v562_v24 = vpop.f32.mrf.mxu0  ;;  %v568_v26 = vpop.f32.mrf.mxu1 }
 0x104   : > { %3562 = vmatmul.msk.f32.vlgmr.msrb.gmra.mxu1 %vm582_vm6, %v562_v24 }
 0x105   : > { %1027 = vmatpush.msrb.mxu1 %v3605_v8 }
 0x107   : > { %1028 = vmatpush.msrb.mxu1 %v3603_v14 }
 0x10b   : > { %v565_v25 = vpop.f32.mrf.mxu0  ;;  %v571_v27 = vpop.f32.mrf.mxu1 }
 0x10c   : > { %3563 = vmatmul.msk.f32.gmra.mxu1 %vm582_vm6, %v565_v25 }
 0x114   : > { %3564 = vmatmul.msk.f32.gmra.mxu1 %vm582_vm6, %v568_v26 }
 0x11c   : > { %3565 = vmatmul.msk.f32.gmra.mxu1 %vm582_vm6, %v571_v27 }
 0x181   : > { %v612_v32 = vpop.f32.mrf.mxu1 }
 0x182   : > { %v613_v33 = vadd.f32 %v3969_v31, %v612_v32 }
 0x184   : > { %v624_v34 = vmax.f32 %v613_v33, 0.0 }
 0x186   : > { %3566 = vmatmul.msk.f32.vlgmr.msra.gmra.mxu2 %vm582_vm6, %v624_v34 }
 0x187   : > { %909 = vmatpush.msra.mxu2 %v3592_v48 }
 0x189   : > { %v615_v35 = vpop.f32.mrf.mxu1  ;;  %910 = vmatpush.msra.mxu2 %v3590_v51  ;;  %v3640_v51 = vld [vmem:[%s6088_s6 + $0xd0] sm:$0xff] }
 0x18a   : > { %v616_v36 = vadd.f32 %v3969_v31, %v615_v35 }
 0x18c   : > { %v625_v37 = vmax.f32 %v616_v36, 0.0  ;;  %v1784_v36 = vrot.slane %v4048_v16, 5 }
 0x18e   : > { %3567 = vmatmul.msk.f32.gmra.mxu2 %vm582_vm6, %v625_v37  ;;  %v1934_v37 = vrot.slane %v4048_v16, 7 }
 0x191   : > { %v618_v38 = vpop.f32.mrf.mxu1 }
 0x192   : > { %v619_v39 = vadd.f32 %v3969_v31, %v618_v38 }
 0x194   : > { %v626_v40 = vmax.f32 %v619_v39, 0.0 }
 0x196   : > { %3568 = vmatmul.msk.f32.gmra.mxu2 %vm582_vm6, %v626_v40 }
 0x199   : > { %v621_v41 = vpop.f32.mrf.mxu1 }
 0x19a   : > { %v622_v42 = vadd.f32 %v3969_v31, %v621_v41  ;;  %v3617_v41 = vld [vmem:[%s6088_s6 + $0x98] sm:$0xff] }
 0x19c   : > { %v627_v43 = vmax.f32 %v622_v42, 0.0 }
 0x19e   : > { %3569 = vmatmul.msk.f32.gmra.mxu2 %vm582_vm6, %v627_v43 }
 0x209   : > { %v665_v55 = vpop.f32.mrf.mxu2 }
 0x20a   : > { %v4232_v56 = vadd.f32 %v3970_v53, %v665_v55  ;;  %v3627_v55 = vld [vmem:[%s6088_s6 + $0xa8] sm:$0xff] }
 0x20c   : > { %6106 = vst [vmem:[#allocation2_spill] sm:$0xff] %v4232_v56  ;;  %v6101_v57 = vmax.f32 %v4232_v56, 0.0 }
 0x20e   : > { %v686_v58 = vrot.slane %v6101_v57, 1 }
 0x210   : > { %v4238_v59 = vsel %vm685_vm7, 0.0, %v686_v58 }
 0x211   : > { %v668_v60 = vpop.f32.mrf.mxu2  ;;  %3570 = vmatmul.msk.f32.vlgmr.msrb.gmra.mxu2 %vm707_vm8, %v4238_v59  ;;  %v789_v2 = vrot.slane %v4238_v59, 1  ;;  %v878_v5 = vrot.slane %v4238_v59, 2  ;;  %v967_v48 = vrot.slane %v4238_v59, 3  ;;  %v1055_v52 = vrot.slane %v4238_v59, 4 }
 0x212   : > { %v4242_v61 = vadd.f32 %v3970_v53, %v668_v60  ;;  %1086 = vmatpush.msrb.mxu2 %v3616_v9 }
 0x214   : > { %6107 = vst [vmem:[#allocation3_spill] sm:$0xff] %v4242_v61  ;;  %v6100_v62 = vmax.f32 %v4242_v61, 0.0  ;;  %1087 = vmatpush.msrb.mxu2 %v3614_v15 }
 0x216   : > { %v687_v63 = vrot.slane %v6100_v62, 1 }
 0x218   : > { %v4251_v1 = vsel %vm685_vm7, %v686_v58, %v687_v63  ;;  %v3638_v58 = vld [vmem:[%s6088_s6 + $0xc0] sm:$0xff] }
 0x219   : > { %v671_v3 = vpop.f32.mrf.mxu2  ;;  %3571 = vmatmul.msk.f32.vlgmr.msra.gmra.mxu3 %vm707_vm8, %v4251_v1  ;;  %v790_v4 = vrot.slane %v4251_v1, 1  ;;  %v879_v6 = vrot.slane %v4251_v1, 2  ;;  %v968_v46 = vrot.slane %v4251_v1, 3  ;;  %v1056_v47 = vrot.slane %v4251_v1, 4 }
 0x21a   : > { %v4268_v10 = vadd.f32 %v3970_v53, %v671_v3  ;;  %938 = vmatpush.msra.mxu3 %v3593_v0  ;;  %v1145_v15 = vrot.slane %v4251_v1, 5 }
 0x21b   : > { %v791_v12 = vsel %vm685_vm7, %v789_v2, %v790_v4  ;;  %v4275_v13 = vsel %vm877_vm9, %v878_v5, %v879_v6  ;;  %v969_v54 = vsel %vm966_vm12, %v967_v48, %v968_v46  ;;  %v4404_v60 = vsel %vm541_vm0, %v1055_v52, %v1056_v47  ;;  %v3615_v2 = vld [vmem:[%s6088_s6 + $0x88] sm:$0xff] }
 0x21c   : > { %6108 = vst [vmem:[#allocation4_spill] sm:$0xff] %v4268_v10  ;;  %v6099_v17 = vmax.f32 %v4268_v10, 0.0  ;;  %3582 = vmatmul.msk.f32.vlgmr.msrb.gmra.mxu0 %vm707_vm8, %v791_v12  ;;  %3586 = vmatmul.msk.f32.vlgmr.msra.gmra.mxu1 %vm707_vm8, %v791_v12  ;;  %v3641_v12 = vld [vmem:[%s6088_s6 + $0xd8] sm:$0xff]  ;;  %v3639_v48 = vld [vmem:[%s6088_s6 + $0xc8] sm:$0xff] }
 0x21d   : > { %3594 = vmatmul.msk.f32.vlgmr.msra.gmra.mxu2 %vm707_vm8, %v4275_v13  ;;  %939 = vmatpush.msra.mxu3 %v3591_v23  ;;  %v3664_v23 = vld [vmem:[%s6088_s6 + $0x110] sm:$0xff] }
 0x21e   : > { %v689_v18 = vrot.slane %v6099_v17, 1  ;;  %1175 = vmatpush.msrb.mxu0 %v3628_v49  ;;  %1204 = vmatpush.msra.mxu1 %v3629_v50 }
 0x21f   : > { %1264 = vmatpush.msra.mxu2 %v3640_v51 }
 0x220   : > { %v4291_v19 = vsel %vm685_vm7, %v687_v63, %v689_v18  ;;  %1205 = vmatpush.msra.mxu1 %v3627_v55 }
 0x221   : > { %v674_v20 = vpop.f32.mrf.mxu2  ;;  %3572 = vmatmul.msk.f32.gmra.mxu3 %vm707_vm8, %v4291_v19  ;;  %v792_v21 = vrot.slane %v4291_v19, 1  ;;  %v881_v22 = vrot.slane %v4291_v19, 2  ;;  %1265 = vmatpush.msra.mxu2 %v3638_v58  ;;  %v970_v63 = vrot.slane %v4291_v19, 3  ;;  %v1058_v0 = vrot.slane %v4291_v19, 4  ;;  %v3665_v58 = vld [vmem:[%s6088_s6 + $0x118] sm:$0xff] }
 0x222   : > { %v4300_v24 = vadd.f32 %v3970_v53, %v674_v20  ;;  %v3626_v53 = vld [vmem:[%s6088_s6 + $0xa0] sm:$0xff]  ;;  %v1144_v20 = vrot.slane %v4238_v59, 5 }
 0x223   : > { %v4303_v25 = vsel %vm685_vm7, %v790_v4, %v792_v21  ;;  %v4306_v26 = vsel %vm877_vm9, %v879_v6, %v881_v22  ;;  %1176 = vmatpush.msrb.mxu0 %v3626_v53  ;;  %v4416_v3 = vsel %vm966_vm12, %v968_v46, %v970_v63  ;;  %v4423_v4 = vsel %vm541_vm0, %v1056_v47, %v1058_v0 }
 0x224   : > { %6109 = vst [vmem:[#allocation5_spill] sm:$0xff] %v4300_v24  ;;  %v6098_v27 = vmax.f32 %v4300_v24, 0.0  ;;  %3583 = vmatmul.msk.f32.gmra.mxu0 %vm707_vm8, %v4303_v25  ;;  %3587 = vmatmul.msk.f32.gmra.mxu1 %vm707_vm8, %v4303_v25  ;;  %v1147_v46 = vrot.slane %v4291_v19, 5  ;;  %v1236_v47 = vrot.slane %v4291_v19, 6 }
 0x225   : > { %3595 = vmatmul.msk.f32.gmra.mxu2 %vm707_vm8, %v4306_v26 }
 0x226   : > { %v691_v28 = vrot.slane %v6098_v27, 1  ;;  %v4506_v49 = vsel %vm1143_vm10, %v1145_v15, %v1147_v46 }
 0x228   : > { %v4318_v29 = vsel %vm685_vm7, %v689_v18, %v691_v28  ;;  %v4325_v32 = vsel %vm685_vm7, %v691_v28, 0.0  ;;  %v1234_v18 = vrot.slane %v4251_v1, 6  ;;  %v1233_v28 = vrot.slane %v4238_v59, 6 }
 0x229   : > { %3573 = vmatmul.msk.f32.gmra.mxu3 %vm707_vm8, %v4318_v29  ;;  %v794_v30 = vrot.slane %v4318_v29, 1  ;;  %v883_v31 = vrot.slane %v4318_v29, 2  ;;  %v1151_v35 = vrot.slane %v4325_v32, 5  ;;  %v1329_v38 = vrot.slane %v4325_v32, 7 }
 0x22a   : > { %v796_v39 = vrot.slane %v4325_v32, 1  ;;  %v885_v40 = vrot.slane %v4325_v32, 2  ;;  %v972_v5 = vrot.slane %v4318_v29, 3  ;;  %v1060_v6 = vrot.slane %v4318_v29, 4 }
 0x22b   : > { %v4328_v33 = vsel %vm685_vm7, %v792_v21, %v794_v30  ;;  %v4331_v34 = vsel %vm877_vm9, %v881_v22, %v883_v31  ;;  %v4353_v42 = vsel %vm1143_vm10, %v1151_v35, %v1784_v36  ;;  %v4358_v43 = vsel %vm1321_vm11, %v1329_v38, %v1934_v37  ;;  %v3652_v21 = vld [vmem:[%s6088_s6 + $0xf0] sm:$0xff]  ;;  %v3653_v22 = vld [vmem:[%s6088_s6 + $0xf8] sm:$0xff]  ;;  %v3651_v36 = vld [vmem:[%s6088_s6 + $0xe8] sm:$0xff] }
 0x22c   : > { %3584 = vmatmul.msk.f32.gmra.mxu0 %vm707_vm8, %v4328_v33  ;;  %3588 = vmatmul.msk.f32.gmra.mxu1 %vm707_vm8, %v4328_v33  ;;  %v4363_v44 = vsel %vm685_vm7, %v794_v30, %v796_v39  ;;  %v4372_v45 = vsel %vm877_vm9, %v883_v31, %v885_v40  ;;  %v4432_v7 = vsel %vm966_vm12, %v970_v63, %v972_v5  ;;  %v974_v9 = vrot.slane %v4325_v32, 3  ;;  %v3650_v30 = vld [vmem:[%s6088_s6 + $0xe0] sm:$0xff] }
 0x22d   : > { %3596 = vmatmul.msk.f32.gmra.mxu2 %vm707_vm8, %v4331_v34  ;;  %v4439_v8 = vsel %vm541_vm0, %v1058_v0, %v1060_v6  ;;  %v1062_v11 = vrot.slane %v4325_v32, 4  ;;  %v1146_v31 = vsel %vm1143_vm10, %v1144_v20, %v1145_v15  ;;  %v3662_v37 = vld [vmem:[%s6088_s6 + $0x100] sm:$0xff]  ;;  %v4513_v50 = vsel %vm1232_vm13, %v1234_v18, %v1236_v47  ;;  %v3675_v15 = vld [vmem:[%s6088_s6 + $0x128] sm:$0xff] }
 0x22e   : > { %v4453_v14 = vsel %vm966_vm12, %v972_v5, %v974_v9  ;;  %v1149_v51 = vrot.slane %v4318_v29, 5  ;;  %v1238_v52 = vrot.slane %v4318_v29, 6  ;;  %v1240_v55 = vrot.slane %v4325_v32, 6  ;;  %v3677_v5 = vld [vmem:[%s6088_s6 + $0x138] sm:$0xff] }
 0x22f   : > { %v1323_v0 = vrot.slane %v4251_v1, 7  ;;  %v1325_v20 = vrot.slane %v4291_v19, 7 }
 0x230   : > { %v4522_v53 = vsel %vm1143_vm10, %v1147_v46, %v1149_v51  ;;  %v4542_v63 = vsel %vm1143_vm10, %v1149_v51, %v1151_v35  ;;  %v1322_v35 = vrot.slane %v4238_v59, 7  ;;  %v3712_v51 = vld [vmem:[%s6088_s6 + $0x190] sm:$0xff] }
 0x231   : > { %3574 = vmatmul.msk.f32.vlgmr.msrb.gmra.mxu3 %vm707_vm8, %v4238_v59  ;;  %v3674_v59 = vld [vmem:[%s6088_s6 + $0x120] sm:$0xff] }
 0x232   : > { %1115 = vmatpush.msrb.mxu3 %v3617_v41  ;;  %v4494_v41 = vsel %vm1232_vm13, %v1233_v28, %v1234_v18  ;;  %v3686_v18 = vld [vmem:[%s6088_s6 + $0x140] sm:$0xff] }
 0x234   : > { %3585 = vmatmul.msk.f32.gmra.mxu0 %vm707_vm8, %v4363_v44  ;;  %3589 = vmatmul.msk.f32.gmra.mxu1 %vm707_vm8, %v4363_v44 }
 0x235   : > { %3597 = vmatmul.msk.f32.gmra.mxu2 %vm707_vm8, %v4372_v45  ;;  %1116 = vmatpush.msrb.mxu3 %v3615_v2  ;;  %v3676_v2 = vld [vmem:[%s6088_s6 + $0x130] sm:$0xff] }
 0x239   : > { %3575 = vmatmul.msk.f32.gmra.mxu3 %vm707_vm8, %v4251_v1 }
 0x23c   : > { %3606 = vmatmul.msk.f32.vlgmr.msra.gmra.mxu0 %vm707_vm8, %v969_v54  ;;  %3610 = vmatmul.msk.f32.vlgmr.msrb.gmra.mxu1 %vm707_vm8, %v969_v54  ;;  %v4529_v54 = vsel %vm1232_vm13, %v1236_v47, %v1238_v52 }
 0x23d   : > { %3618 = vmatmul.msk.f32.vlgmr.msrb.gmra.mxu2 %vm707_vm8, %v4404_v60  ;;  %1353 = vmatpush.msra.mxu0 %v3652_v21  ;;  %v3663_v21 = vld [vmem:[%s6088_s6 + $0x108] sm:$0xff] }
 0x23e   : > { %1382 = vmatpush.msrb.mxu1 %v3653_v22  ;;  %1426 = vmatpush.msrb.mxu2 %v3664_v23  ;;  %v4589_v22 = vsel %vm1321_vm11, %v1323_v0, %v1325_v20  ;;  %v1327_v23 = vrot.slane %v4318_v29, 7 }
 0x23f   : > { %1354 = vmatpush.msra.mxu0 %v3650_v30  ;;  %v3689_v30 = vld [vmem:[%s6088_s6 + $0x158] sm:$0xff] }
 0x240   : > { %1383 = vmatpush.msrb.mxu1 %v3651_v36  ;;  %1427 = vmatpush.msrb.mxu2 %v3662_v37  ;;  %v4601_v28 = vsel %vm1321_vm11, %v1325_v20, %v1327_v23  ;;  %v697_v36 = vld [vmem:[%s6089_s7] sm:$0x3] }
 0x241   : > { %3576 = vmatmul.msk.f32.gmra.mxu3 %vm707_vm8, %v4291_v19 }
 0x244   : > { %3607 = vmatmul.msk.f32.gmra.mxu0 %vm707_vm8, %v4416_v3  ;;  %3611 = vmatmul.msk.f32.gmra.mxu1 %vm707_vm8, %v4416_v3 }
 0x245   : > { %3619 = vmatmul.msk.f32.gmra.mxu2 %vm707_vm8, %v4423_v4 }
 0x249   : > { %3577 = vmatmul.msk.f32.gmra.mxu3 %vm707_vm8, %v4318_v29 }
 0x24c   : > { %3608 = vmatmul.msk.f32.gmra.mxu0 %vm707_vm8, %v4432_v7  ;;  %3612 = vmatmul.msk.f32.gmra.mxu1 %vm707_vm8, %v4432_v7 }
 0x24d   : > { %3620 = vmatmul.msk.f32.gmra.mxu2 %vm707_vm8, %v4439_v8 }
 0x251   : > { %3598 = vmatmul.msk.f32.vlgmr.msra.gmra.mxu3 %vm707_vm8, %v4275_v13  ;;  %v4462_v13 = vsel %vm541_vm0, %v1060_v6, %v1062_v11  ;;  %v1324_v6 = vsel %vm1321_vm11, %v1322_v35, %v1323_v0 }
 0x252   : > { %1293 = vmatpush.msra.mxu3 %v3641_v12  ;;  %v3688_v12 = vld [vmem:[%s6088_s6 + $0x150] sm:$0xff] }
 0x254   : > { %3609 = vmatmul.msk.f32.gmra.mxu0 %vm707_vm8, %v4453_v14  ;;  %3613 = vmatmul.msk.f32.gmra.mxu1 %vm707_vm8, %v4453_v14 }
 0x255   : > { %3621 = vmatmul.msk.f32.gmra.mxu2 %vm707_vm8, %v4462_v13  ;;  %1294 = vmatpush.msra.mxu3 %v3639_v48  ;;  %v3701_v48 = vld [vmem:[%s6088_s6 + $0x178] sm:$0xff] }
 0x259   : > { %3599 = vmatmul.msk.f32.gmra.mxu3 %vm707_vm8, %v4306_v26 }
 0x25c   : > { %3630 = vmatmul.msk.f32.vlgmr.msrb.gmra.mxu0 %vm707_vm8, %v1146_v31  ;;  %3634 = vmatmul.msk.f32.vlgmr.msra.gmra.mxu1 %vm707_vm8, %v1146_v31  ;;  %v4617_v31 = vsel %vm1321_vm11, %v1327_v23, %v1329_v38  ;;  %v3700_v38 = vld [vmem:[%s6088_s6 + $0x170] sm:$0xff] }
 0x25d   : > { %3642 = vmatmul.msk.f32.vlgmr.msra.gmra.mxu2 %vm707_vm8, %v4494_v41  ;;  %1502 = vmatpush.msrb.mxu0 %v3676_v2  ;;  %v3710_v2 = vld [vmem:[%s6088_s6 + $0x180] sm:$0xff] }
 0x25e   : > { %1531 = vmatpush.msra.mxu1 %v3677_v5  ;;  %1577 = vmatpush.msra.mxu2 %v3688_v12 }
 0x25f   : > { %1503 = vmatpush.msrb.mxu0 %v3674_v59 }
 0x260   : > { %1532 = vmatpush.msra.mxu1 %v3675_v15  ;;  %1578 = vmatpush.msra.mxu2 %v3686_v18 }
 0x261   : > { %3600 = vmatmul.msk.f32.gmra.mxu3 %vm707_vm8, %v4331_v34 }
 0x264   : > { %3631 = vmatmul.msk.f32.gmra.mxu0 %vm707_vm8, %v4506_v49  ;;  %3635 = vmatmul.msk.f32.gmra.mxu1 %vm707_vm8, %v4506_v49 }
 0x265   : > { %3643 = vmatmul.msk.f32.gmra.mxu2 %vm707_vm8, %v4513_v50 }
 0x269   : > { %3601 = vmatmul.msk.f32.gmra.mxu3 %vm707_vm8, %v4372_v45 }
 0x26c   : > { %3632 = vmatmul.msk.f32.gmra.mxu0 %vm707_vm8, %v4522_v53  ;;  %3636 = vmatmul.msk.f32.gmra.mxu1 %vm707_vm8, %v4522_v53 }
 0x26d   : > { %3644 = vmatmul.msk.f32.gmra.mxu2 %vm707_vm8, %v4529_v54 }
 0x271   : > { %3622 = vmatmul.msk.f32.vlgmr.msrb.gmra.mxu3 %vm707_vm8, %v4404_v60  ;;  %v4551_v60 = vsel %vm1232_vm13, %v1238_v52, %v1240_v55  ;;  %v3698_v52 = vld [vmem:[%s6088_s6 + $0x160] sm:$0xff] }
 0x272   : > { %1455 = vmatpush.msrb.mxu3 %v3665_v58  ;;  %v3699_v58 = vld [vmem:[%s6088_s6 + $0x168] sm:$0xff] }
 0x274   : > { %3633 = vmatmul.msk.f32.gmra.mxu0 %vm707_vm8, %v4542_v63  ;;  %3637 = vmatmul.msk.f32.gmra.mxu1 %vm707_vm8, %v4542_v63 }
 0x275   : > { %3645 = vmatmul.msk.f32.gmra.mxu2 %vm707_vm8, %v4551_v60  ;;  %1456 = vmatpush.msrb.mxu3 %v3663_v21 }
 0x279   : > { %3623 = vmatmul.msk.f32.gmra.mxu3 %vm707_vm8, %v4423_v4 }
 0x27c   : > { %3654 = vmatmul.msk.f32.vlgmr.msra.gmra.mxu0 %vm707_vm8, %v1324_v6  ;;  %3658 = vmatmul.msk.f32.vlgmr.msrb.gmra.mxu1 %vm707_vm8, %v1324_v6 }
 0x27d   : > { %3666 = vmatmul.msk.f32.vlgmr.msrb.gmra.mxu2 %vm707_vm8, %v4251_v1  ;;  %1652 = vmatpush.msra.mxu0 %v3700_v38 }
 0x27e   : > { %1681 = vmatpush.msrb.mxu1 %v3701_v48  ;;  %1727 = vmatpush.msrb.mxu2 %v3712_v51  ;;  %v1484_v51 = vrot.slane %v4048_v16, 1 }
 0x27f   : > { %1653 = vmatpush.msra.mxu0 %v3698_v52 }
 0x280   : > { %1682 = vmatpush.msrb.mxu1 %v3699_v58  ;;  %1728 = vmatpush.msrb.mxu2 %v3710_v2  ;;  %v1559_v58 = vrot.slane %v4048_v16, 2 }
 0x281   : > { %3624 = vmatmul.msk.f32.gmra.mxu3 %vm707_vm8, %v4439_v8 }
 0x284   : > { %3655 = vmatmul.msk.f32.gmra.mxu0 %vm707_vm8, %v4589_v22  ;;  %3659 = vmatmul.msk.f32.gmra.mxu1 %vm707_vm8, %v4589_v22 }
 0x285   : > { %3667 = vmatmul.msk.f32.gmra.mxu2 %vm707_vm8, %v4291_v19 }
 0x289   : > { %3625 = vmatmul.msk.f32.gmra.mxu3 %vm707_vm8, %v4462_v13 }
 0x28c   : > { %3656 = vmatmul.msk.f32.gmra.mxu0 %vm707_vm8, %v4601_v28  ;;  %3660 = vmatmul.msk.f32.gmra.mxu1 %vm707_vm8, %v4601_v28 }
 0x28d   : > { %3668 = vmatmul.msk.f32.gmra.mxu2 %vm707_vm8, %v4318_v29 }
 0x291   : > { %3646 = vmatmul.msk.f32.vlgmr.msra.gmra.mxu3 %vm707_vm8, %v4494_v41  ;;  %v699_v41 = vperm.slane %v697_v36, 0 }
 0x292   : > { %1606 = vmatpush.msra.mxu3 %v3689_v30 }
 0x294   : > { %3657 = vmatmul.msk.f32.gmra.mxu0 %vm707_vm8, %v4617_v31  ;;  %3661 = vmatmul.msk.f32.gmra.mxu1 %vm707_vm8, %v4617_v31  ;;  %v734_v37 = vpop.f32.mrf.mxu2 }
 0x295   : > { %3669 = vmatmul.msk.f32.gmra.mxu2 %vm707_vm8, %v4325_v32  ;;  %v775_v35 = vadd.f32 %v734_v37, %v699_v41 }
 0x299   : > { %v823_v46 = vpop.f32.mrf.mxu0  ;;  %v4628_v47 = vpop.f32.mrf.mxu1  ;;  %3647 = vmatmul.msk.f32.gmra.mxu3 %vm707_vm8, %v4513_v50 }
 0x29a   : > { %v864_v5 = vadd.f32 %v823_v46, %v775_v35 }
 0x29c   : > { %v737_v0 = vpop.f32.mrf.mxu3  ;;  %3678 = vmatmul.msk.f32.vlgmr.msrb.gmra.mxu0 %vm707_vm8, %v4303_v25  ;;  %3682 = vmatmul.msk.f32.vlgmr.msra.gmra.mxu1 %vm707_vm8, %v4303_v25  ;;  %v3687_v25 = vld [vmem:[%s6088_s6 + $0x148] sm:$0xff] }
 0x29d   : > { %3690 = vmatmul.msk.f32.vlgmr.msra.gmra.mxu2 %vm707_vm8, %v4306_v26  ;;  %1607 = vmatpush.msra.mxu3 %v3687_v25  ;;  %v777_v20 = vadd.f32 %v737_v0, %v699_v41  ;;  %v4696_v25 = vsel %vm877_vm9, %v885_v40, %v1559_v58  ;;  %v3724_v40 = vld [vmem:[%s6088_s6 + $0x1b0] sm:$0xff] }
 0x29e   : > { %1802 = vmatpush.msrb.mxu0 %v3724_v40 }
 0x2a0   : > { %v912_v6 = vpop.f32.mrf.mxu2 }
 0x2a1   : > { %v4656_v12 = vadd.f32 %v912_v6, %v864_v5  ;;  %v826_v59 = vpop.f32.mrf.mxu0  ;;  %v855_v15 = vpop.f32.mrf.mxu1  ;;  %3648 = vmatmul.msk.f32.gmra.mxu3 %vm707_vm8, %v4529_v54  ;;  %v700_v5 = vperm.slane %v697_v36, 1  ;;  %v1485_v6 = vsel %vm685_vm7, %v796_v39, %v1484_v51  ;;  %v3734_v51 = vld [vmem:[%s6088_s6 + $0x1c0] sm:$0xff] }
 0x2a2   : > { %v866_v21 = vadd.f32 %v826_v59, %v777_v20 }
 0x2a4   : > { %v740_v18 = vpop.f32.mrf.mxu3  ;;  %3679 = vmatmul.msk.f32.gmra.mxu0 %vm707_vm8, %v4328_v33  ;;  %3683 = vmatmul.msk.f32.gmra.mxu1 %vm707_vm8, %v4328_v33 }
 0x2a5   : > { %3691 = vmatmul.msk.f32.gmra.mxu2 %vm707_vm8, %v4331_v34  ;;  %v779_v33 = vadd.f32 %v740_v18, %v699_v41 }
 0x2a8   : > { %v915_v23 = vpop.f32.mrf.mxu2 }
 0x2a9   : > { %v4669_v30 = vadd.f32 %v915_v23, %v866_v21  ;;  %v829_v37 = vpop.f32.mrf.mxu0  ;;  %v858_v46 = vpop.f32.mrf.mxu1  ;;  %3649 = vmatmul.msk.f32.gmra.mxu3 %vm707_vm8, %v4551_v60 }
 0x2aa   : > { %v868_v48 = vadd.f32 %v829_v37, %v779_v33 }
 0x2ac   : > { %v743_v38 = vpop.f32.mrf.mxu3  ;;  %3680 = vmatmul.msk.f32.gmra.mxu0 %vm707_vm8, %v4363_v44  ;;  %3684 = vmatmul.msk.f32.gmra.mxu1 %vm707_vm8, %v4363_v44  ;;  %v3713_v44 = vld [vmem:[%s6088_s6 + $0x198] sm:$0xff] }
 0x2ad   : > { %3692 = vmatmul.msk.f32.gmra.mxu2 %vm707_vm8, %v4372_v45 }
 0x2b0   : > { %v918_v52 = vpop.f32.mrf.mxu2 }
 0x2b1   : > { %v4681_v0 = vadd.f32 %v918_v52, %v868_v48  ;;  %v832_v35 = vpop.f32.mrf.mxu0  ;;  %v861_v2 = vpop.f32.mrf.mxu1  ;;  %3670 = vmatmul.msk.f32.vlgmr.msrb.gmra.mxu3 %vm707_vm8, %v4251_v1  ;;  %v781_v1 = vadd.f32 %v743_v38, %v699_v41  ;;  %v3725_v41 = vld [vmem:[%s6088_s6 + $0x1b8] sm:$0xff]  ;;  %v3722_v38 = vld [vmem:[%s6088_s6 + $0x1a0] sm:$0xff] }
 0x2b2   : > { %1756 = vmatpush.msrb.mxu3 %v3713_v44  ;;  %1831 = vmatpush.msra.mxu1 %v3725_v41  ;;  %v1709_v41 = vrot.slane %v4048_v16, 4 }
 0x2b3   : > { %v870_v18 = vadd.f32 %v832_v35, %v781_v1  ;;  %1803 = vmatpush.msrb.mxu0 %v3722_v38 }
 0x2b4   : > { %v763_v59 = vpop.f32.mrf.mxu3  ;;  %3681 = vmatmul.msk.f32.gmra.mxu0 %vm707_vm8, %v1485_v6  ;;  %3685 = vmatmul.msk.f32.gmra.mxu1 %vm707_vm8, %v1485_v6 }
 0x2b5   : > { %v776_v36 = vadd.f32 %v763_v59, %v700_v5  ;;  %3693 = vmatmul.msk.f32.gmra.mxu2 %vm707_vm8, %v4696_v25 }
 0x2b7   : > { %v865_v20 = vadd.f32 %v4628_v47, %v776_v36  ;;  %v3736_v47 = vld [vmem:[%s6088_s6 + $0x1d0] sm:$0xff] }
 0x2b8   : > { %v921_v39 = vpop.f32.mrf.mxu2  ;;  %1877 = vmatpush.msra.mxu2 %v3736_v47 }
 0x2b9   : > { %v4701_v21 = vadd.f32 %v921_v39, %v870_v18  ;;  %v4703_v23 = vpop.f32.mrf.mxu0  ;;  %v1030_v37 = vpop.f32.mrf.mxu1  ;;  %3671 = vmatmul.msk.f32.gmra.mxu3 %vm707_vm8, %v4291_v19  ;;  %v3723_v19 = vld [vmem:[%s6088_s6 + $0x1a8] sm:$0xff] }
 0x2ba   : > { %1832 = vmatpush.msra.mxu1 %v3723_v19  ;;  %1878 = vmatpush.msra.mxu2 %v3734_v51  ;;  %v4777_v19 = vsel %vm541_vm0, %v1062_v11, %v1709_v41  ;;  %v3748_v11 = vld [vmem:[%s6088_s6 + $0x1f0] sm:$0xff] }
 0x2bc   : > { %v766_v33 = vpop.f32.mrf.mxu3  ;;  %3702 = vmatmul.msk.f32.vlgmr.msra.gmra.mxu0 %vm707_vm8, %v4416_v3  ;;  %3706 = vmatmul.msk.f32.vlgmr.msrb.gmra.mxu1 %vm707_vm8, %v4416_v3  ;;  %v3711_v3 = vld [vmem:[%s6088_s6 + $0x188] sm:$0xff] }
 0x2bd   : > { %v778_v48 = vadd.f32 %v766_v33, %v700_v5  ;;  %3714 = vmatmul.msk.f32.vlgmr.msrb.gmra.mxu2 %vm707_vm8, %v4423_v4  ;;  %1757 = vmatpush.msrb.mxu3 %v3711_v3  ;;  %v3747_v3 = vld [vmem:[%s6088_s6 + $0x1e8] sm:$0xff] }
 0x2be   : > { %1952 = vmatpush.msra.mxu0 %v3748_v11 }
 0x2bf   : > { %v867_v52 = vadd.f32 %v855_v15, %v778_v48 }
 0x2c0   : > { %v4731_v58 = vpop.f32.mrf.mxu2 }
 0x2c1   : > { %v4733_v35 = vpop.f32.mrf.mxu0  ;;  %v1033_v44 = vpop.f32.mrf.mxu1  ;;  %3672 = vmatmul.msk.f32.gmra.mxu3 %vm707_vm8, %v4318_v29 }
 0x2c4   : > { %v769_v6 = vpop.f32.mrf.mxu3  ;;  %3703 = vmatmul.msk.f32.gmra.mxu0 %vm707_vm8, %v4432_v7  ;;  %3707 = vmatmul.msk.f32.gmra.mxu1 %vm707_vm8, %v4432_v7 }
 0x2c5   : > { %v780_v15 = vadd.f32 %v769_v6, %v700_v5  ;;  %3715 = vmatmul.msk.f32.gmra.mxu2 %vm707_vm8, %v4439_v8 }
 0x2c7   : > { %v869_v59 = vadd.f32 %v858_v46, %v780_v15  ;;  %v1634_v46 = vrot.slane %v4048_v16, 3 }
 0x2c8   : > { %v4746_v1 = vpop.f32.mrf.mxu2 }
 0x2c9   : > { %v4748_v29 = vpop.f32.mrf.mxu0  ;;  %v1036_v36 = vpop.f32.mrf.mxu1  ;;  %3673 = vmatmul.msk.f32.gmra.mxu3 %vm707_vm8, %v4325_v32 }
 0x2cc   : > { %v772_v18 = vpop.f32.mrf.mxu3  ;;  %3704 = vmatmul.msk.f32.gmra.mxu0 %vm707_vm8, %v4453_v14  ;;  %3708 = vmatmul.msk.f32.gmra.mxu1 %vm707_vm8, %v4453_v14  ;;  %v3737_v14 = vld [vmem:[%s6088_s6 + $0x1d8] sm:$0xff] }
 0x2cd   : > { %v782_v7 = vadd.f32 %v772_v18, %v700_v5  ;;  %3716 = vmatmul.msk.f32.gmra.mxu2 %vm707_vm8, %v4462_v13  ;;  %v1635_v5 = vsel %vm966_vm12, %v974_v9, %v1634_v46 }
 0x2cf   : > { %v871_v39 = vadd.f32 %v861_v2, %v782_v7 }
 0x2d0   : > { %v4759_v40 = vpop.f32.mrf.mxu2 }
 0x2d1   : > { %v4762_v47 = vpop.f32.mrf.mxu0  ;;  %v1039_v38 = vpop.f32.mrf.mxu1  ;;  %3694 = vmatmul.msk.f32.vlgmr.msra.gmra.mxu3 %vm707_vm8, %v4306_v26 }
 0x2d2   : > { %1906 = vmatpush.msra.mxu3 %v3737_v14 }
 0x2d4   : > { %v941_v2 = vpop.f32.mrf.mxu3  ;;  %3705 = vmatmul.msk.f32.gmra.mxu0 %vm707_vm8, %v1635_v5  ;;  %3709 = vmatmul.msk.f32.gmra.mxu1 %vm707_vm8, %v1635_v5 }
 0x2d5   : > { %v954_v26 = vadd.f32 %v941_v2, %v865_v20  ;;  %3717 = vmatmul.msk.f32.gmra.mxu2 %vm707_vm8, %v4777_v19  ;;  %v3749_v20 = vld [vmem:[%s6088_s6 + $0x1f8] sm:$0xff] }
 0x2d6   : > { %1981 = vmatpush.msrb.mxu1 %v3749_v20 }
 0x2d7   : > { %v4781_v33 = vadd.f32 %v1030_v37, %v954_v26  ;;  %v3746_v37 = vld [vmem:[%s6088_s6 + $0x1e0] sm:$0xff]  ;;  %v1859_v26 = vrot.slane %v4048_v16, 6 }
 0x2d8   : > { %v4783_v48 = vpop.f32.mrf.mxu2  ;;  %1953 = vmatpush.msra.mxu0 %v3746_v37  ;;  %1982 = vmatpush.msrb.mxu1 %v3747_v3 }
 0x2d9   : > { %v4785_v9 = vpop.f32.mrf.mxu0  ;;  %v4787_v51 = vpop.f32.mrf.mxu1  ;;  %3695 = vmatmul.msk.f32.gmra.mxu3 %vm707_vm8, %v4331_v34 }
 0x2dc   : > { %v944_v6 = vpop.f32.mrf.mxu3  ;;  %3726 = vmatmul.msk.f32.vlgmr.msrb.gmra.mxu0 %vm707_vm8, %v4506_v49  ;;  %3730 = vmatmul.msk.f32.vlgmr.msra.gmra.mxu1 %vm707_vm8, %v4506_v49  ;;  %v3735_v49 = vld [vmem:[%s6088_s6 + $0x1c8] sm:$0xff] }
 0x2dd   : > { %v956_v34 = vadd.f32 %v944_v6, %v867_v52  ;;  %3738 = vmatmul.msk.f32.vlgmr.msra.gmra.mxu2 %vm707_vm8, %v4513_v50  ;;  %1907 = vmatpush.msra.mxu3 %v3735_v49 }
 0x2df   : > { %v4809_v15 = vadd.f32 %v1033_v44, %v956_v34 }
 0x2e0   : > { %v4811_v18 = vpop.f32.mrf.mxu2 }
 0x2e1   : > { %v4813_v7 = vpop.f32.mrf.mxu0  ;;  %v4815_v46 = vpop.f32.mrf.mxu1  ;;  %3696 = vmatmul.msk.f32.gmra.mxu3 %vm707_vm8, %v4372_v45 }
 0x2e4   : > { %v947_v52 = vpop.f32.mrf.mxu3  ;;  %3727 = vmatmul.msk.f32.gmra.mxu0 %vm707_vm8, %v4522_v53  ;;  %3731 = vmatmul.msk.f32.gmra.mxu1 %vm707_vm8, %v4522_v53 }
 0x2e5   : > { %v958_v44 = vadd.f32 %v947_v52, %v869_v59  ;;  %3739 = vmatmul.msk.f32.gmra.mxu2 %vm707_vm8, %v4529_v54 }
 0x2e7   : > { %v4828_v41 = vadd.f32 %v1036_v36, %v958_v44 }
 0x2e8   : > { %v4830_v14 = vpop.f32.mrf.mxu2 }
 0x2e9   : > { %v4832_v45 = vpop.f32.mrf.mxu0  ;;  %v4834_v5 = vpop.f32.mrf.mxu1  ;;  %3697 = vmatmul.msk.f32.gmra.mxu3 %vm707_vm8, %v4696_v25 }
 0x2ea   : > { %6110 = vst [vmem:[#allocation6_spill] sm:$0xff] %v4834_v5  ;;  %v2061_v5 = vld [vmem:[%s6090_s8 + $0x20] sm:$0xff] }
 0x2ec   : > { %v950_v2 = vpop.f32.mrf.mxu3  ;;  %3728 = vmatmul.msk.f32.gmra.mxu0 %vm707_vm8, %v4542_v63  ;;  %3732 = vmatmul.msk.f32.gmra.mxu1 %vm707_vm8, %v4542_v63  ;;  %v1860_v63 = vsel %vm1232_vm13, %v1240_v55, %v1859_v26 }
 0x2ed   : > { %v960_v53 = vadd.f32 %v950_v2, %v871_v39  ;;  %3740 = vmatmul.msk.f32.gmra.mxu2 %vm707_vm8, %v4551_v60 }
 0x2ef   : > { %v4844_v59 = vadd.f32 %v1039_v38, %v960_v53 }
 0x2f0   : > { %v4846_v36 = vpop.f32.mrf.mxu2 }
 0x2f1   : > { %v4849_v11 = vpop.f32.mrf.mxu0  ;;  %v4851_v25 = vpop.f32.mrf.mxu1  ;;  %3718 = vmatmul.msk.f32.vlgmr.msrb.gmra.mxu3 %vm707_vm8, %v4423_v4 }
 0x2f2   : > { %6111 = vst [vmem:[#allocation7_spill] sm:$0xff] %v4851_v25 }
 0x2f4   : > { %v4855_v20 = vpop.f32.mrf.mxu3  ;;  %3729 = vmatmul.msk.f32.gmra.mxu0 %vm707_vm8, %v4353_v42  ;;  %3733 = vmatmul.msk.f32.gmra.mxu1 %vm707_vm8, %v4353_v42 }
 0x2f5   : > { %3741 = vmatmul.msk.f32.gmra.mxu2 %vm707_vm8, %v1860_v63 }
 0x2f8   : > { %v4865_v16 = vpop.f32.mrf.mxu2 }
 0x2f9   : > { %v4867_v39 = vpop.f32.mrf.mxu0  ;;  %v4869_v38 = vpop.f32.mrf.mxu1  ;;  %3719 = vmatmul.msk.f32.gmra.mxu3 %vm707_vm8, %v4439_v8 }
 0x2fc   : > { %v4873_v4 = vpop.f32.mrf.mxu3  ;;  %3750 = vmatmul.msk.f32.vlgmr.msra.gmra.mxu0 %vm707_vm8, %v4589_v22  ;;  %3754 = vmatmul.msk.f32.vlgmr.msrb.gmra.mxu1 %vm707_vm8, %v4589_v22 }
 0x300   : > { %v4879_v32 = vpop.f32.mrf.mxu2 }
 0x301   : > { %v4881_v42 = vpop.f32.mrf.mxu0  ;;  %v4883_v55 = vpop.f32.mrf.mxu1  ;;  %3720 = vmatmul.msk.f32.gmra.mxu3 %vm707_vm8, %v4462_v13 }
 0x302   : > { %6112 = vst [vmem:[#allocation8_spill] sm:$0xff] %v4883_v55 }
 0x304   : > { %v4887_v37 = vpop.f32.mrf.mxu3  ;;  %3751 = vmatmul.msk.f32.gmra.mxu0 %vm707_vm8, %v4601_v28  ;;  %3755 = vmatmul.msk.f32.gmra.mxu1 %vm707_vm8, %v4601_v28 }
 0x308   : > { %v4893_v8 = vpop.f32.mrf.mxu2 }
 0x309   : > { %v4895_v22 = vpop.f32.mrf.mxu0  ;;  %v4897_v3 = vpop.f32.mrf.mxu1  ;;  %3721 = vmatmul.msk.f32.gmra.mxu3 %vm707_vm8, %v4777_v19 }
 0x30a   : > { %6113 = vst [vmem:[#allocation9_spill] sm:$0xff] %v4897_v3 }
 0x30c   : > { %v4901_v6 = vpop.f32.mrf.mxu3  ;;  %3752 = vmatmul.msk.f32.gmra.mxu0 %vm707_vm8, %v4617_v31  ;;  %3756 = vmatmul.msk.f32.gmra.mxu1 %vm707_vm8, %v4617_v31 }
 0x310   : > { %v4907_v13 = vpop.f32.mrf.mxu2 }
 0x311   : > { %v4909_v28 = vpop.f32.mrf.mxu0  ;;  %v4911_v34 = vpop.f32.mrf.mxu1  ;;  %3742 = vmatmul.msk.f32.vlgmr.msra.gmra.mxu3 %vm707_vm8, %v4513_v50 }
 0x312   : > { %6114 = vst [vmem:[#allocation10_spill] sm:$0xff] %v4911_v34 }
 0x314   : > { %v4915_v49 = vpop.f32.mrf.mxu3  ;;  %3753 = vmatmul.msk.f32.gmra.mxu0 %vm707_vm8, %v4358_v43  ;;  %3757 = vmatmul.msk.f32.gmra.mxu1 %vm707_vm8, %v4358_v43 }
 0x318   : > { %v4921_v19 = vpop.f32.mrf.mxu2 }
 0x319   : > { %v4923_v31 = vpop.f32.mrf.mxu0  ;;  %v4925_v52 = vpop.f32.mrf.mxu1  ;;  %3743 = vmatmul.msk.f32.gmra.mxu3 %vm707_vm8, %v4529_v54 }
 0x31a   : > { %6115 = vst [vmem:[#allocation11_spill] sm:$0xff] %v4925_v52 }
 0x31c   : > { %v4929_v44 = vpop.f32.mrf.mxu3 }
 0x320   : > { %v4931_v50 = vpop.f32.mrf.mxu2 }
 0x321   : > { %v4933_v2 = vpop.f32.mrf.mxu0  ;;  %3744 = vmatmul.msk.f32.gmra.mxu3 %vm707_vm8, %v4551_v60  ;;  %v4937_v53 = vpop.f32.mrf.mxu1 }
 0x322   : > { %6116 = vst [vmem:[#allocation12_spill] sm:$0xff] %v4937_v53 }
 0x324   : > { %v4939_v43 = vpop.f32.mrf.mxu3 }
 0x325   : > { %6117 = vst [vmem:[#allocation13_spill] sm:$0xff] %v4939_v43  ;;  %v3773_v43 = vld [vmem:[%s6090_s8 + $0x168] sm:$0xff] }
 0x328   : > { %v4941_v26 = vpop.f32.mrf.mxu2 }
 0x329   : > { %v4943_v27 = vpop.f32.mrf.mxu0  ;;  %3745 = vmatmul.msk.f32.gmra.mxu3 %vm707_vm8, %v1860_v63  ;;  %v4946_v54 = vpop.f32.mrf.mxu1 }
 0x32a   : > { %6118 = vst [vmem:[#allocation14_spill] sm:$0xff] %v4946_v54 }
 0x32c   : > { %v4948_v17 = vpop.f32.mrf.mxu3 }
 0x32d   : > { %6119 = vst [vmem:[#allocation15_spill] sm:$0xff] %v4948_v17 }
 0x330   : > { %v4952_v57 = vpop.f32.mrf.mxu2 }
 0x331   : > { %v4950_v62 = vpop.f32.mrf.mxu0  ;;  %v4956_v60 = vpop.f32.mrf.mxu1 }
 0x332   : > { %6120 = vst [vmem:[#allocation16_spill] sm:$0xff] %v4950_v62 }
 0x333   : > { %6122 = vst [vmem:[#allocation18_spill] sm:$0xff] %v4956_v60  ;;  %v2072_v60 = vld [vmem:[%s6090_s8 + $0x78] sm:$0xff] }
 0x334   : > { %v4954_v24 = vpop.f32.mrf.mxu3  ;;  %2089 = vmatpush.msrb.mxu2 %v2072_v60  ;;  %v2067_v60 = vld [vmem:[%s6090_s8 + $0x50] sm:$0xff] }
 0x335   : > { %6121 = vst [vmem:[#allocation17_spill] sm:$0xff] %v4954_v24 }
 0x338   : > { %v4962_v56 = vpop.f32.mrf.mxu2 }
 0x339   : > { %v4958_v10 = vpop.f32.mrf.mxu0  ;;  %6124 = vst [vmem:[#allocation20_spill] sm:$0xff] %v4962_v56  ;;  %v4964_v34 = vpop.f32.mrf.mxu1 }
 0x33a   : > { %6125 = vst [vmem:[#allocation21_spill] sm:$0xff] %v4964_v34  ;;  %v2071_v34 = vld [vmem:[%s6090_s8 + $0x70] sm:$0xff] }
 0x33b   : > { %2090 = vmatpush.msrb.mxu2 %v2071_v34  ;;  %v2068_v34 = vld [vmem:[%s6090_s8 + $0x58] sm:$0xff] }
 0x33c   : > { %v4960_v61 = vpop.f32.mrf.mxu3 }
 0x33d   : > { %6123 = vst [vmem:[#allocation19_spill] sm:$0xff] %v4960_v61 }
 0x340   : > { %v4970_v53 = vpop.f32.mrf.mxu2 }
 0x341   : > { %v4966_v63 = vpop.f32.mrf.mxu0  ;;  %v4974_v17 = vpop.f32.mrf.mxu1 }
 0x342   : > { %6127 = vst [vmem:[#allocation23_spill] sm:$0xff] %v4974_v17  ;;  %v2070_v17 = vld [vmem:[%s6090_s8 + $0x68] sm:$0xff] }
 0x343   : > { %2091 = vmatpush.msrb.mxu2 %v2070_v17 }
 0x344   : > { %v4968_v54 = vpop.f32.mrf.mxu3 }
 0x345   : > { %6126 = vst [vmem:[#allocation22_spill] sm:$0xff] %v4968_v54 }
 0x348   : > { %v4984_v61 = vpop.f32.mrf.mxu2 }
 0x349   : > { %v4972_v3 = vpop.f32.mrf.mxu0  ;;  %v4994_v25 = vpop.f32.mrf.mxu1 }
 0x34a   : > { %6130 = vst [vmem:[#allocation26_spill] sm:$0xff] %v4994_v25 }
 0x34c   : > { %v4976_v52 = vpop.f32.mrf.mxu3 }
 0x34d   : > { %6128 = vst [vmem:[#allocation24_spill] sm:$0xff] %v4976_v52  ;;  %v2069_v52 = vld [vmem:[%s6090_s8 + $0x60] sm:$0xff] }
 0x34e   : > { %2092 = vmatpush.msrb.mxu2 %v2069_v52  ;;  %v2066_v52 = vld [vmem:[%s6090_s8 + $0x48] sm:$0xff] }
 0x350   : > { %2093 = vmatpush.msrb.mxu2 %v2068_v34  ;;  %v5012_v25 = vpop.f32.mrf.mxu2  ;;  %v3774_v34 = vld [vmem:[%s6090_s8 + $0x170] sm:$0xff] }
 0x351   : > { %v4986_v54 = vpop.f32.mrf.mxu0  ;;  %v5016_v55 = vpop.f32.mrf.mxu1 }
 0x352   : > { %6129 = vst [vmem:[#allocation25_spill] sm:$0xff] %v4986_v54  ;;  %2094 = vmatpush.msrb.mxu2 %v2067_v60  ;;  %v3775_v54 = vld [vmem:[%s6090_s8 + $0x178] sm:$0xff]  ;;  %v2065_v60 = vld [vmem:[%s6090_s8 + $0x40] sm:$0xff] }
 0x353   : > { %2214 = vmatpush.msrb.mxu0 %v3775_v54  ;;  %6133 = vst [vmem:[#allocation29_spill] sm:$0xff] %v5016_v55  ;;  %v2064_v54 = vld [vmem:[%s6090_s8 + $0x38] sm:$0xff]  ;;  %v2063_v55 = vld [vmem:[%s6090_s8 + $0x30] sm:$0xff] }
 0x354   : > { %v4996_v56 = vpop.f32.mrf.mxu3  ;;  %2095 = vmatpush.msrb.mxu2 %v2066_v52  ;;  %v3772_v52 = vld [vmem:[%s6090_s8 + $0x160] sm:$0xff] }
 0x355   : > { %6131 = vst [vmem:[#allocation27_spill] sm:$0xff] %v4996_v56  ;;  %2215 = vmatpush.msrb.mxu0 %v3774_v34  ;;  %v3771_v34 = vld [vmem:[%s6090_s8 + $0x158] sm:$0xff] }
 0x356   : > { %2096 = vmatpush.msrb.mxu2 %v2065_v60  ;;  %v2062_v60 = vld [vmem:[%s6090_s8 + $0x28] sm:$0xff] }
 0x357   : > { %2216 = vmatpush.msrb.mxu0 %v3773_v43  ;;  %v1042_v43 = vadd.f32 %v4703_v23, %v4656_v12  ;;  %v2060_v12 = vld [vmem:[%s6090_s8 + $0x18] sm:$0xff]  ;;  %v3768_v23 = vld [vmem:[%s6090_s8 + $0x140] sm:$0xff] }
 0x358   : > { %2097 = vmatpush.msrb.mxu2 %v2064_v54  ;;  %v5046_v24 = vpop.f32.mrf.mxu2  ;;  %v3770_v54 = vld [vmem:[%s6090_s8 + $0x150] sm:$0xff] }
 0x359   : > { %v5004_v17 = vpop.f32.mrf.mxu0  ;;  %2217 = vmatpush.msrb.mxu0 %v3772_v52  ;;  %v5057_v52 = vpop.f32.mrf.mxu1 }
 0x35a   : > { %2098 = vmatpush.msrb.mxu2 %v2063_v55  ;;  %v1130_v55 = vadd.f32 %v4731_v58, %v1042_v43  ;;  %6135 = vst [vmem:[#allocation31_spill] sm:$0xff] %v5057_v52  ;;  %v2059_v58 = vld [vmem:[%s6090_s8 + $0x10] sm:$0xff] }
 0x35b   : > { %2218 = vmatpush.msrb.mxu0 %v3771_v34  ;;  %v3769_v34 = vld [vmem:[%s6090_s8 + $0x148] sm:$0xff] }
 0x35c   : > { %v5014_v56 = vpop.f32.mrf.mxu3  ;;  %2099 = vmatpush.msrb.mxu2 %v2062_v60  ;;  %v1219_v43 = vadd.f32 %v4785_v9, %v1130_v55 }
 0x35d   : > { %6132 = vst [vmem:[#allocation28_spill] sm:$0xff] %v5014_v56  ;;  %2219 = vmatpush.msrb.mxu0 %v3770_v54  ;;  %v3767_v54 = vld [vmem:[%s6090_s8 + $0x138] sm:$0xff] }
 0x35e   : > { %2100 = vmatpush.msrb.mxu2 %v2061_v5  ;;  %v1044_v5 = vadd.f32 %v4733_v35, %v4669_v30  ;;  %v1308_v30 = vadd.f32 %v4811_v18, %v1219_v43 }
 0x35f   : > { %2220 = vmatpush.msrb.mxu0 %v3769_v34  ;;  %v2088_v34 = vld [vmem:[%s6090_s8 + $0xf8] sm:$0xff] }
 0x360   : > { %2101 = vmatpush.msrb.mxu2 %v2060_v12  ;;  %2118 = vmatpush.msrb.mxu3 %v2088_v34  ;;  %v1132_v52 = vadd.f32 %v4746_v1, %v1044_v5  ;;  %v1397_v55 = vadd.f32 %v4867_v39, %v1308_v30  ;;  %v3766_v12 = vld [vmem:[%s6090_s8 + $0x130] sm:$0xff]  ;;  %v2057_v1 = vld [vmem:[%s6090_s8] sm:$0xff]  ;;  %v1046_v5 = vadd.f32 %v4748_v29, %v4681_v0  ;;  %v3805_v0 = vld [vmem:[%s6090_s8 + $0x268] sm:$0xff] }
 0x361   : > { %v5036_v56 = vpop.f32.mrf.mxu0  ;;  %2221 = vmatpush.msrb.mxu0 %v3768_v23  ;;  %v5094_v23 = vpop.f32.mrf.mxu2  ;;  %v2085_v30 = vld [vmem:[%s6090_s8 + $0xe0] sm:$0xff] }
 0x362   : > { %2102 = vmatpush.msrb.mxu2 %v2059_v58  ;;  %v1221_v9 = vadd.f32 %v4813_v7, %v1132_v52  ;;  %v1470_v58 = vadd.f32 %v4879_v32, %v1397_v55  ;;  %v3765_v7 = vld [vmem:[%s6090_s8 + $0x128] sm:$0xff]  ;;  %v3764_v32 = vld [vmem:[%s6090_s8 + $0x120] sm:$0xff]  ;;  %v5122_v34 = vpop.f32.mrf.mxu1  ;;  %v3763_v55 = vld [vmem:[%s6090_s8 + $0x118] sm:$0xff]  ;;  %v1134_v29 = vadd.f32 %v4759_v40, %v1046_v5 }
 0x363   : > { %2222 = vmatpush.msrb.mxu0 %v3767_v54  ;;  %v2086_v52 = vld [vmem:[%s6090_s8 + $0xe8] sm:$0xff]  ;;  %v3762_v40 = vld [vmem:[%s6090_s8 + $0x110] sm:$0xff] }
 0x364   : > { %v5044_v62 = vpop.f32.mrf.mxu3  ;;  %v1310_v18 = vadd.f32 %v4830_v14, %v1221_v9  ;;  %v3807_v14 = vld [vmem:[%s6090_s8 + $0x278] sm:$0xff]  ;;  %v1546_v54 = vadd.f32 %v4923_v31, %v1470_v58  ;;  %v3806_v9 = vld [vmem:[%s6090_s8 + $0x270] sm:$0xff] }
 0x365   : > { %6134 = vst [vmem:[#allocation30_spill] sm:$0xff] %v5044_v62  ;;  %v2058_v62 = vld [vmem:[%s6090_s8 + $0x8] sm:$0xff]  ;;  %2223 = vmatpush.msrb.mxu0 %v3766_v12 }
 0x366   : > { %2103 = vmatpush.msrb.mxu2 %v2058_v62  ;;  %v2087_v62 = vld [vmem:[%s6090_s8 + $0xf0] sm:$0xff]  ;;  %v1399_v43 = vadd.f32 %v4881_v42, %v1310_v18  ;;  %v1621_v31 = vadd.f32 %v4931_v50, %v1546_v54  ;;  %v1223_v18 = vadd.f32 %v4832_v45, %v1134_v29  ;;  %v2080_v29 = vld [vmem:[%s6090_s8 + $0xb8] sm:$0xff] }
 0x367   : > { %2119 = vmatpush.msrb.mxu3 %v2087_v62  ;;  %2224 = vmatpush.msrb.mxu0 %v3765_v7 }
 0x368   : > { %2104 = vmatpush.msrb.mxu2 %v2057_v1  ;;  %v1472_v42 = vadd.f32 %v4893_v8, %v1399_v43  ;;  %v2084_v1 = vld [vmem:[%s6090_s8 + $0xd8] sm:$0xff]  ;;  %v1696_v62 = vadd.f32 %v4958_v10, %v1621_v31  ;;  %v3804_v8 = vld [vmem:[%s6090_s8 + $0x260] sm:$0xff]  ;;  %v1312_v50 = vadd.f32 %v4846_v36, %v1223_v18  ;;  %v2083_v10 = vld [vmem:[%s6090_s8 + $0xd0] sm:$0xff] }
 0x369   : > { %v5062_v60 = vpop.f32.mrf.mxu0  ;;  %2120 = vmatpush.msrb.mxu3 %v2086_v52  ;;  %2225 = vmatpush.msrb.mxu0 %v3764_v32  ;;  %v1048_v52 = vadd.f32 %v4762_v47, %v4701_v21  ;;  %v1883_v36 = vpop.f32.mrf.mxu2  ;;  %v2082_v47 = vld [vmem:[%s6090_s8 + $0xc8] sm:$0xff]  ;;  %v2079_v18 = vld [vmem:[%s6090_s8 + $0xb0] sm:$0xff] }
 0x36a   : > { %2331 = vmatpush.msra.mxu2 %v3807_v14  ;;  %v1548_v58 = vadd.f32 %v4933_v2, %v1472_v42  ;;  %v1771_v45 = vadd.f32 %v4970_v53, %v1696_v62  ;;  %v3761_v2 = vld [vmem:[%s6090_s8 + $0x108] sm:$0xff]  ;;  %v1131_v14 = vadd.f32 %v4855_v20, %v4781_v33  ;;  %v3791_v53 = vld [vmem:[%s6090_s8 + $0x1f8] sm:$0xff]  ;;  %v1401_v5 = vadd.f32 %v4895_v22, %v1312_v50  ;;  %v3760_v33 = vld [vmem:[%s6090_s8 + $0x100] sm:$0xff] }
 0x36b   : > { %2121 = vmatpush.msrb.mxu3 %v2085_v30  ;;  %2226 = vmatpush.msrb.mxu0 %v3763_v55  ;;  %v1136_v20 = vadd.f32 %v4783_v48, %v1048_v52  ;;  %v2081_v22 = vld [vmem:[%s6090_s8 + $0xc0] sm:$0xff]  ;;  %v3801_v31 = vld [vmem:[%s6090_s8 + $0x248] sm:$0xff]  ;;  %v1135_v50 = vadd.f32 %v4887_v37, %v4828_v41 }
 0x36c   : > { %v5087_v35 = vpop.f32.mrf.mxu3  ;;  %2332 = vmatpush.msra.mxu2 %v3806_v9  ;;  %v1623_v7 = vadd.f32 %v4941_v26, %v1548_v58  ;;  %v3803_v26 = vld [vmem:[%s6090_s8 + $0x258] sm:$0xff]  ;;  %v1846_v21 = vadd.f32 %v5004_v17, %v1771_v45  ;;  %2243 = vmatpush.msra.mxu1 %v3791_v53  ;;  %v3802_v17 = vld [vmem:[%s6090_s8 + $0x250] sm:$0xff]  ;;  %v1474_v54 = vadd.f32 %v4907_v13, %v1401_v5  ;;  %v5194_v9 = vpop.f32.mrf.mxu1  ;;  %v3800_v58 = vld [vmem:[%s6090_s8 + $0x240] sm:$0xff] }
 0x36d   : > { %2122 = vmatpush.msrb.mxu3 %v2084_v1  ;;  %2227 = vmatpush.msrb.mxu0 %v3762_v40  ;;  %v1225_v13 = vadd.f32 %v4849_v11, %v1136_v20  ;;  %v1220_v42 = vadd.f32 %v4787_v51, %v1131_v14  ;;  %v3838_v1 = vld [vmem:[%s6090_s8 + $0x370] sm:$0xff]  ;;  %v3788_v51 = vld [vmem:[%s6090_s8 + $0x1e0] sm:$0xff]  ;;  %v3837_v62 = vld [vmem:[%s6090_s8 + $0x368] sm:$0xff] }
 0x36e   : > { %2333 = vmatpush.msra.mxu2 %v3805_v0  ;;  %v1698_v43 = vadd.f32 %v4966_v63, %v1623_v7  ;;  %v3790_v63 = vld [vmem:[%s6090_s8 + $0x1f0] sm:$0xff]  ;;  %v1921_v48 = vadd.f32 %v5094_v23, %v1846_v21  ;;  %v3839_v0 = vld [vmem:[%s6090_s8 + $0x378] sm:$0xff]  ;;  %v1133_v23 = vadd.f32 %v4873_v4, %v4809_v15  ;;  %v1550_v11 = vadd.f32 %v4943_v27, %v1474_v54  ;;  %v3836_v37 = vld [vmem:[%s6090_s8 + $0x360] sm:$0xff] }
 0x36f   : > { %2123 = vmatpush.msrb.mxu3 %v2083_v10  ;;  %2228 = vmatpush.msrb.mxu0 %v3761_v2  ;;  %v1309_v27 = vadd.f32 %v4915_v49, %v1220_v42  ;;  %v3787_v49 = vld [vmem:[%s6090_s8 + $0x1d8] sm:$0xff]  ;;  %v3797_v20 = vld [vmem:[%s6090_s8 + $0x228] sm:$0xff]  ;;  %v3796_v42 = vld [vmem:[%s6090_s8 + $0x220] sm:$0xff] }
 0x370   : > { %2334 = vmatpush.msra.mxu2 %v3804_v8  ;;  %v1773_v30 = vadd.f32 %v4984_v61, %v1698_v43  ;;  %2244 = vmatpush.msra.mxu1 %v3790_v63  ;;  %v3789_v61 = vld [vmem:[%s6090_s8 + $0x1e8] sm:$0xff]  ;;  %v1625_v40 = vadd.f32 %v4952_v57, %v1550_v11  ;;  %v1222_v7 = vadd.f32 %v4815_v46, %v1133_v23  ;;  %v3835_v5 = vld [vmem:[%s6090_s8 + $0x358] sm:$0xff]  ;;  %v3784_v23 = vld [vmem:[%s6090_s8 + $0x1c0] sm:$0xff] }
 0x371   : > { %v5107_v39 = vpop.f32.mrf.mxu0  ;;  %2124 = vmatpush.msrb.mxu3 %v2082_v47  ;;  %2229 = vmatpush.msrb.mxu0 %v3760_v33  ;;  %v2078_v46 = vld [vmem:[%s6090_s8 + $0xa8] sm:$0xff]  ;;  %v1886_v14 = vpop.f32.mrf.mxu2  ;;  %v1137_v43 = vadd.f32 %v4901_v6, %v4844_v59 }
 0x372   : > { %2335 = vmatpush.msra.mxu2 %v3803_v26  ;;  %v1848_v15 = vadd.f32 %v5036_v56, %v1773_v30  ;;  %2245 = vmatpush.msra.mxu1 %v3789_v61  ;;  %v1314_v56 = vadd.f32 %v4865_v16, %v1225_v13  ;;  %v3799_v16 = vld [vmem:[%s6090_s8 + $0x238] sm:$0xff]  ;;  %v1700_v10 = vadd.f32 %v4972_v3, %v1625_v40  ;;  %v3786_v3 = vld [vmem:[%s6090_s8 + $0x1d0] sm:$0xff]  ;;  %v3785_v33 = vld [vmem:[%s6090_s8 + $0x1c8] sm:$0xff] }
 0x373   : > { %2125 = vmatpush.msrb.mxu3 %v2081_v22  ;;  %2448 = vmatpush.msra.mxu0 %v3839_v0  ;;  %v1311_v52 = vadd.f32 %v4929_v44, %v1222_v7  ;;  %v6138_v22 = vld [vmem:[#allocation16_spill] sm:$0xff]  ;;  %v2076_v30 = vld [vmem:[%s6090_s8 + $0x98] sm:$0xff] }
 0x374   : > { %v5139_v12 = vpop.f32.mrf.mxu3  ;;  %2336 = vmatpush.msra.mxu2 %v3802_v17  ;;  %v1923_v8 = vadd.f32 %v1883_v36, %v1848_v15  ;;  %2246 = vmatpush.msra.mxu1 %v3788_v51  ;;  %v1403_v57 = vadd.f32 %v4909_v28, %v1314_v56  ;;  %v1398_v28 = vadd.f32 %v4869_v38, %v1309_v27  ;;  %v3798_v36 = vld [vmem:[%s6090_s8 + $0x230] sm:$0xff]  ;;  %v2077_v38 = vld [vmem:[%s6090_s8 + $0xa0] sm:$0xff]  ;;  %v5287_v54 = vpop.f32.mrf.mxu1  ;;  %v6139_v0 = vld [vmem:[#allocation13_spill] sm:$0xff] }
 0x375   : > { %2126 = vmatpush.msrb.mxu3 %v2080_v29  ;;  %2449 = vmatpush.msra.mxu0 %v3838_v1  ;;  %v1775_v53 = vadd.f32 %v5012_v25, %v1700_v10  ;;  %v6137_v25 = vld [vmem:[#allocation17_spill] sm:$0xff]  ;;  %v6140_v61 = vld [vmem:[#allocation8_spill] sm:$0xff]  ;;  %v3832_v10 = vld [vmem:[%s6090_s8 + $0x340] sm:$0xff] }
 0x376   : > { %2337 = vmatpush.msra.mxu2 %v3801_v31  ;;  %2247 = vmatpush.msra.mxu1 %v3787_v49  ;;  %v1471_v47 = vadd.f32 %v6137_v25, %v1398_v28  ;;  %v1400_v13 = vadd.f32 %v6140_v61, %v1311_v52  ;;  %v3833_v31 = vld [vmem:[%s6090_s8 + $0x348] sm:$0xff]  ;;  %v6141_v1 = vld [vmem:[#allocation20_spill] sm:$0xff]  ;;  %v3783_v40 = vld [vmem:[%s6090_s8 + $0x1b8] sm:$0xff] }
 0x377   : > { %2127 = vmatpush.msrb.mxu3 %v2079_v18  ;;  %2450 = vmatpush.msra.mxu0 %v3837_v62  ;;  %v1850_v17 = vadd.f32 %v5062_v60, %v1775_v53  ;;  %v2075_v60 = vld [vmem:[%s6090_s8 + $0x90] sm:$0xff]  ;;  %v6148_v28 = vld [vmem:[#allocation27_spill] sm:$0xff] }
 0x378   : > { %2338 = vmatpush.msra.mxu2 %v3800_v58  ;;  %2248 = vmatpush.msra.mxu1 %v3786_v3  ;;  %v6143_v58 = vld [vmem:[#allocation11_spill] sm:$0xff]  ;;  %v3782_v3 = vld [vmem:[%s6090_s8 + $0x1b0] sm:$0xff] }
 0x379   : > { %v1955_v32 = vpop.f32.mrf.mxu0  ;;  %2128 = vmatpush.msrb.mxu3 %v2078_v46  ;;  %2451 = vmatpush.msra.mxu0 %v3836_v37  ;;  %v1925_v11 = vadd.f32 %v1886_v14, %v1850_v17  ;;  %v1547_v62 = vadd.f32 %v6143_v58, %v1471_v47  ;;  %v6147_v37 = vld [vmem:[#allocation9_spill] sm:$0xff]  ;;  %v1889_v25 = vpop.f32.mrf.mxu2  ;;  %v3793_v47 = vld [vmem:[%s6090_s8 + $0x208] sm:$0xff]  ;;  %v3822_v61 = vld [vmem:[%s6090_s8 + $0x2f0] sm:$0xff] }
 0x37a   : > { %v5222_v4 = vadd.f32 %v1955_v32, %v1921_v48  ;;  %2339 = vmatpush.msra.mxu2 %v3799_v16  ;;  %v1476_v32 = vadd.f32 %v4921_v19, %v1403_v57  ;;  %v6136_v19 = vld [vmem:[#allocation6_spill] sm:$0xff]  ;;  %2249 = vmatpush.msra.mxu1 %v3785_v33  ;;  %v3834_v48 = vld [vmem:[%s6090_s8 + $0x350] sm:$0xff]  ;;  %v2074_v57 = vld [vmem:[%s6090_s8 + $0x88] sm:$0xff] }
 0x37b   : > { %v1224_v21 = vadd.f32 %v6136_v19, %v1135_v50  ;;  %2129 = vmatpush.msrb.mxu3 %v2077_v38  ;;  %2452 = vmatpush.msra.mxu0 %v3835_v5  ;;  %v6144_v50 = vld [vmem:[#allocation19_spill] sm:$0xff]  ;;  %v1622_v14 = vadd.f32 %v6148_v28, %v1547_v62  ;;  %v2073_v5 = vld [vmem:[%s6090_s8 + $0x80] sm:$0xff]  ;;  %v6150_v33 = vld [vmem:[#allocation12_spill] sm:$0xff] }
 0x37c   : > { %v5196_v55 = vpop.f32.mrf.mxu3  ;;  %v2004_v2 = vmax.f32 %v5222_v4, 0.0  ;;  %2340 = vmatpush.msra.mxu2 %v3798_v36  ;;  %v1552_v63 = vadd.f32 %v6138_v22, %v1476_v32  ;;  %2250 = vmatpush.msra.mxu1 %v3784_v23  ;;  %v6142_v4 = vld [vmem:[#allocation7_spill] sm:$0xff]  ;;  %v1473_v7 = vadd.f32 %v6144_v50, %v1400_v13  ;;  %v3794_v36 = vld [vmem:[%s6090_s8 + $0x210] sm:$0xff]  ;;  %v6149_v19 = vld [vmem:[#allocation22_spill] sm:$0xff] }
 0x37d   : > { %v1313_v29 = vadd.f32 %v6139_v0, %v1224_v21  ;;  %2130 = vmatpush.msrb.mxu3 %v2076_v30  ;;  %2453 = vmatpush.msra.mxu0 %v3834_v48  ;;  %v1226_v51 = vadd.f32 %v6142_v4, %v1137_v43  ;;  %v3831_v43 = vld [vmem:[%s6090_s8 + $0x338] sm:$0xff]  ;;  %v3780_v30 = vld [vmem:[%s6090_s8 + $0x1a0] sm:$0xff]  ;;  %v3829_v13 = vld [vmem:[%s6090_s8 + $0x328] sm:$0xff] }
 0x37e   : > { %v2020_v59 = vrot.slane %v2004_v2, 1  ;;  %2341 = vmatpush.msra.mxu2 %v3797_v20  ;;  %v1627_v18 = vadd.f32 %v6141_v1, %v1552_v63  ;;  %2251 = vmatpush.msra.mxu1 %v3783_v40  ;;  %v1549_v20 = vadd.f32 %v6150_v33, %v1473_v7  ;;  %v3823_v17 = vld [vmem:[%s6090_s8 + $0x2f8] sm:$0xff]  ;;  %v6151_v48 = vld [vmem:[#allocation10_spill] sm:$0xff]  ;;  %v6153_v23 = vld [vmem:[#allocation28_spill] sm:$0xff]  ;;  %v5390_v1 = vpop.f32.mrf.mxu1 }
 0x37f   : > { %2131 = vmatpush.msrb.mxu3 %v2075_v60  ;;  %2454 = vmatpush.msra.mxu0 %v3833_v31  ;;  %v1402_v52 = vadd.f32 %v6147_v37, %v1313_v29  ;;  %v6152_v60 = vld [vmem:[#allocation21_spill] sm:$0xff]  ;;  %v3792_v29 = vld [vmem:[%s6090_s8 + $0x200] sm:$0xff] }
 0x380   : > { %2342 = vmatpush.msra.mxu2 %v3796_v42  ;;  %2252 = vmatpush.msra.mxu1 %v3782_v3  ;;  %v1697_v0 = vadd.f32 %v6152_v60, %v1622_v14  ;;  %v1624_v42 = vadd.f32 %v6153_v23, %v1549_v20  ;;  %v3779_v62 = vld [vmem:[%s6090_s8 + $0x198] sm:$0xff]  ;;  %v3828_v50 = vld [vmem:[%s6090_s8 + $0x320] sm:$0xff]  ;;  %v3826_v20 = vld [vmem:[%s6090_s8 + $0x310] sm:$0xff] }
 0x381   : > { %v1958_v45 = vpop.f32.mrf.mxu0  ;;  %2132 = vmatpush.msrb.mxu3 %v2074_v57  ;;  %2455 = vmatpush.msra.mxu0 %v3832_v10  ;;  %v1475_v21 = vadd.f32 %v6149_v19, %v1402_v52  ;;  %v3870_v57 = vld [vmem:[%s6090_s8 + $0x470] sm:$0xff]  ;;  %v3820_v14 = vld [vmem:[%s6090_s8 + $0x2e0] sm:$0xff]  ;;  %v3827_v3 = vld [vmem:[%s6090_s8 + $0x318] sm:$0xff] }
 0x382   : > { %v5248_v41 = vadd.f32 %v1958_v45, %v1923_v8  ;;  %v3795_v8 = vld [vmem:[%s6090_s8 + $0x218] sm:$0xff]  ;;  %v1772_v4 = vadd.f32 %v5139_v12, %v1697_v0  ;;  %v3817_v23 = vld [vmem:[%s6090_s8 + $0x2c8] sm:$0xff] }
 0x383   : > { %v6145_v45 = vld [vmem:[#allocation25_spill] sm:$0xff]  ;;  %2343 = vmatpush.msra.mxu2 %v3795_v8  ;;  %2133 = vmatpush.msrb.mxu3 %v2073_v5  ;;  %v6157_v5 = vld [vmem:[#allocation31_spill] sm:$0xff] }
 0x384   : > { %v2006_v26 = vmax.f32 %v5248_v41, 0.0  ;;  %v5267_v44 = vpop.f32.mrf.mxu3  ;;  %v1702_v49 = vadd.f32 %v6145_v45, %v1627_v18  ;;  %2456 = vmatpush.msra.mxu0 %v3831_v43  ;;  %v1847_v43 = vadd.f32 %v6157_v5, %v1772_v4  ;;  %v3819_v33 = vld [vmem:[%s6090_s8 + $0x2d8] sm:$0xff] }
 0x385   : > { %2344 = vmatpush.msra.mxu2 %v3794_v36  ;;  %2360 = vmatpush.msra.mxu3 %v3823_v17 }
 0x386   : > { %v5291_v6 = vrot.slane %v2006_v26, 1  ;;  %v1777_v32 = vadd.f32 %v5046_v24, %v1702_v49  ;;  %v3781_v24 = vld [vmem:[%s6090_s8 + $0x1a8] sm:$0xff]  ;;  %v3778_v49 = vld [vmem:[%s6090_s8 + $0x190] sm:$0xff] }
 0x387   : > { %2253 = vmatpush.msra.mxu1 %v3781_v24  ;;  %2345 = vmatpush.msra.mxu2 %v3793_v47 }
 0x388   : > { %v2022_v15 = vsel %vm685_vm7, %v2020_v59, %v5291_v6  ;;  %v1852_v22 = vadd.f32 %v5107_v39, %v1777_v32  ;;  %v3830_v59 = vld [vmem:[%s6090_s8 + $0x330] sm:$0xff]  ;;  %2361 = vmatpush.msra.mxu3 %v3822_v61  ;;  %v3825_v61 = vld [vmem:[%s6090_s8 + $0x308] sm:$0xff] }
 0x389   : > { %v5318_v27 = vmax.f32 %v2004_v2, %v2022_v15  ;;  %v1961_v56 = vpop.f32.mrf.mxu0  ;;  %v6146_v2 = vld [vmem:[#allocation15_spill] sm:$0xff]  ;;  %2457 = vmatpush.msra.mxu0 %v3830_v59  ;;  %2254 = vmatpush.msra.mxu1 %v3780_v30  ;;  %v3776_v59 = vld [vmem:[%s6090_s8 + $0x180] sm:$0xff]  ;;  %v3818_v30 = vld [vmem:[%s6090_s8 + $0x2d0] sm:$0xff] }
 0x38a   : > { %v5328_v16 = vadd.f32 %v1961_v56, %v1925_v11  ;;  %v1315_v46 = vadd.f32 %v6146_v2, %v1226_v51  ;;  %v1927_v31 = vadd.f32 %v1889_v25, %v1852_v22  ;;  %v6154_v11 = vld [vmem:[#allocation14_spill] sm:$0xff]  ;;  %2346 = vmatpush.msra.mxu2 %v3792_v29  ;;  %v6155_v56 = vld [vmem:[#allocation24_spill] sm:$0xff]  ;;  %v3777_v25 = vld [vmem:[%s6090_s8 + $0x188] sm:$0xff] }
 0x38b   : > { %2105 = vmatmul.f32.vlgmr.msrb.gmra.mxu2 %v5318_v27  ;;  %v1551_v15 = vadd.f32 %v6154_v11, %v1475_v21  ;;  %v2192_v12 = vrot.slane %v5318_v27, 1  ;;  %v2309_v41 = vrot.slane %v5318_v27, 2  ;;  %2458 = vmatpush.msra.mxu0 %v3829_v13  ;;  %v2426_v36 = vrot.slane %v5318_v27, 3 }
 0x38c   : > { %v2008_v53 = vmax.f32 %v5328_v16, 0.0  ;;  %v5348_v38 = vpop.f32.mrf.mxu3  ;;  %v1404_v39 = vadd.f32 %v6151_v48, %v1315_v46  ;;  %2255 = vmatpush.msra.mxu1 %v3779_v62  ;;  %v6156_v46 = vld [vmem:[#allocation23_spill] sm:$0xff]  ;;  %v2543_v32 = vrot.slane %v5318_v27, 4  ;;  %v3868_v48 = vld [vmem:[%s6090_s8 + $0x460] sm:$0xff] }
 0x38d   : > { %v1699_v37 = vadd.f32 %v6156_v46, %v1624_v42  ;;  %2459 = vmatpush.msra.mxu0 %v3828_v50  ;;  %v3869_v27 = vld [vmem:[%s6090_s8 + $0x468] sm:$0xff]  ;;  %v6159_v42 = vld [vmem:[#allocation18_spill] sm:$0xff] }
 0x38e   : > { %v5367_v63 = vrot.slane %v2008_v53, 1  ;;  %v1477_v40 = vadd.f32 %v6155_v56, %v1404_v39  ;;  %2256 = vmatpush.msra.mxu1 %v3778_v49  ;;  %v6158_v39 = vld [vmem:[#allocation30_spill] sm:$0xff] }
 0x38f   : > { %v1774_v24 = vadd.f32 %v5196_v55, %v1699_v37  ;;  %2460 = vmatpush.msra.mxu0 %v3827_v3  ;;  %v1626_v60 = vadd.f32 %v6158_v39, %v1551_v15  ;;  %v3866_v37 = vld [vmem:[%s6090_s8 + $0x450] sm:$0xff]  ;;  %v3812_v39 = vld [vmem:[%s6090_s8 + $0x2a0] sm:$0xff] }
 0x390   : > { %v2027_v18 = vsel %vm685_vm7, %v5291_v6, %v5367_v63  ;;  %v3871_v6 = vld [vmem:[%s6090_s8 + $0x478] sm:$0xff]  ;;  %2257 = vmatpush.msra.mxu1 %v3777_v25 }
 0x391   : > { %v5399_v51 = vmax.f32 %v2006_v26, %v2027_v18  ;;  %v1964_v58 = vpop.f32.mrf.mxu0  ;;  %v3821_v26 = vld [vmem:[%s6090_s8 + $0x2e8] sm:$0xff]  ;;  %2565 = vmatpush.msrb.mxu2 %v3871_v6  ;;  %2461 = vmatpush.msra.mxu0 %v3826_v20  ;;  %v1987_v18 = vpop.f32.mrf.mxu1  ;;  %v1849_v16 = vadd.f32 %v5122_v34, %v1774_v24  ;;  %v3816_v6 = vld [vmem:[%s6090_s8 + $0x2c0] sm:$0xff] }
 0x392   : > { %v2002_v8 = vadd.f32 %v1964_v58, %v1927_v31  ;;  %2362 = vmatpush.msra.mxu3 %v3821_v26  ;;  %2258 = vmatpush.msra.mxu1 %v3776_v59  ;;  %v1553_v31 = vadd.f32 %v6159_v42, %v1477_v40  ;;  %v6160_v34 = vld [vmem:[#allocation26_spill] sm:$0xff]  ;;  %v3863_v59 = vld [vmem:[%s6090_s8 + $0x438] sm:$0xff]  ;;  %v3849_v42 = vld [vmem:[%s6090_s8 + $0x3c8] sm:$0xff] }
 0x393   : > { %2108 = vmatmul.f32.gmra.mxu2 %v5399_v51  ;;  %v2193_v7 = vrot.slane %v5399_v51, 1  ;;  %v2310_v45 = vrot.slane %v5399_v51, 2  ;;  %v2427_v10 = vrot.slane %v5399_v51, 3  ;;  %v2544_v2 = vrot.slane %v5399_v51, 4  ;;  %2462 = vmatpush.msra.mxu0 %v3825_v61 }
 0x394   : > { %v2010_v52 = vmax.f32 %v2002_v8, 0.0  ;;  %v1909_v28 = vpop.f32.mrf.mxu3  ;;  %2363 = vmatpush.msra.mxu3 %v3820_v14  ;;  %2566 = vmatpush.msrb.mxu2 %v3870_v57  ;;  %v1701_v56 = vadd.f32 %v6160_v34, %v1626_v60  ;;  %v3854_v8 = vld [vmem:[%s6090_s8 + $0x3f0] sm:$0xff] }
 0x395   : > { %v2194_v19 = vsel %vm685_vm7, %v2192_v12, %v2193_v7  ;;  %v5443_v21 = vsel %vm877_vm9, %v2309_v41, %v2310_v45  ;;  %v5461_v22 = vsel %vm966_vm12, %v2426_v36, %v2427_v10  ;;  %v5466_v55 = vsel %vm541_vm0, %v2543_v32, %v2544_v2  ;;  %v3850_v60 = vld [vmem:[%s6090_s8 + $0x3d0] sm:$0xff] }
 0x396   : > { %v2030_v47 = vrot.slane %v2010_v52, 1  ;;  %2230 = vmatmul.f32.vlgmr.msrb.gmra.mxu0 %v2194_v19  ;;  %v1922_v17 = vadd.f32 %v1909_v28, %v1847_v43  ;;  %2364 = vmatpush.msra.mxu3 %v3819_v33  ;;  %v1776_v36 = vadd.f32 %v5267_v44, %v1701_v56  ;;  %v3865_v43 = vld [vmem:[%s6090_s8 + $0x448] sm:$0xff]  ;;  %v3852_v44 = vld [vmem:[%s6090_s8 + $0x3e0] sm:$0xff]  ;;  %v3847_v56 = vld [vmem:[%s6090_s8 + $0x3b8] sm:$0xff] }
 0x397   : > { %2567 = vmatpush.msrb.mxu2 %v3869_v27  ;;  %v1628_v27 = vadd.f32 %v5087_v35, %v1553_v31  ;;  %v3813_v33 = vld [vmem:[%s6090_s8 + $0x2a8] sm:$0xff]  ;;  %v3851_v35 = vld [vmem:[%s6090_s8 + $0x3d8] sm:$0xff] }
 0x398   : > { %v2031_v0 = vsel %vm685_vm7, %v5367_v63, %v2030_v47  ;;  %v5480_v29 = vmax.f32 %v2010_v52, %v2030_v47  ;;  %v3855_v63 = vld [vmem:[%s6090_s8 + $0x3f8] sm:$0xff]  ;;  %2365 = vmatpush.msra.mxu3 %v3818_v30  ;;  %v5503_v15 = vadd.f32 %v5390_v1, %v1922_v17  ;;  %v3824_v1 = vld [vmem:[%s6090_s8 + $0x300] sm:$0xff]  ;;  %v1851_v17 = vadd.f32 %v5194_v9, %v1776_v36 }
 0x399   : > { %v2046_v13 = vmax.f32 %v2008_v53, %v2031_v0  ;;  %2568 = vmatpush.msrb.mxu2 %v3868_v48  ;;  %v3867_v53 = vld [vmem:[%s6090_s8 + $0x458] sm:$0xff]  ;;  %2477 = vmatpush.msrb.mxu1 %v3855_v63  ;;  %v3864_v47 = vld [vmem:[%s6090_s8 + $0x440] sm:$0xff]  ;;  %v1990_v30 = vpop.f32.mrf.mxu1 }
 0x39a   : > { %v5496_v11 = vsel %vm685_vm7, %v5480_v29, 0.0  ;;  %2366 = vmatpush.msra.mxu3 %v3817_v23  ;;  %v3815_v52 = vld [vmem:[%s6090_s8 + $0x2b8] sm:$0xff]  ;;  %v2005_v32 = vmax.f32 %v5503_v15, 0.0  ;;  %2463 = vmatpush.msra.mxu0 %v3824_v1 }
 0x39b   : > { %2111 = vmatmul.f32.gmra.mxu2 %v2046_v13  ;;  %v2198_v4 = vrot.slane %v2046_v13, 1  ;;  %v2202_v58 = vrot.slane %v5496_v11, 1  ;;  %v2315_v62 = vrot.slane %v2046_v13, 2  ;;  %v2319_v12 = vrot.slane %v5496_v11, 2  ;;  %2478 = vmatpush.msrb.mxu1 %v3854_v8  ;;  %v6161_v0 = vld [vmem:[#allocation29_spill] sm:$0xff]  ;;  %v3808_v8 = vld [vmem:[%s6090_s8 + $0x280] sm:$0xff] }
 0x39c   : > { %v1912_v40 = vpop.f32.mrf.mxu3  ;;  %v2432_v41 = vrot.slane %v2046_v13, 3  ;;  %v2436_v26 = vrot.slane %v5496_v11, 3  ;;  %2569 = vmatpush.msrb.mxu2 %v3867_v53  ;;  %2367 = vmatpush.msra.mxu3 %v3816_v6  ;;  %v2549_v3 = vrot.slane %v2046_v13, 4  ;;  %v2553_v19 = vrot.slane %v5496_v11, 4  ;;  %v3862_v13 = vld [vmem:[%s6090_s8 + $0x430] sm:$0xff]  ;;  %v3811_v63 = vld [vmem:[%s6090_s8 + $0x298] sm:$0xff] }
 0x39d   : > { %v1924_v50 = vadd.f32 %v1912_v40, %v1849_v16  ;;  %v2199_v49 = vsel %vm685_vm7, %v2193_v7, %v2198_v4  ;;  %v2203_v57 = vsel %vm685_vm7, %v2198_v4, %v2202_v58  ;;  %v5527_v46 = vsel %vm877_vm9, %v2310_v45, %v2315_v62  ;;  %v3853_v7 = vld [vmem:[%s6090_s8 + $0x3e8] sm:$0xff]  ;;  %v3810_v53 = vld [vmem:[%s6090_s8 + $0x290] sm:$0xff]  ;;  %v3860_v4 = vld [vmem:[%s6090_s8 + $0x420] sm:$0xff] }
 0x39e   : > { %2233 = vmatmul.f32.gmra.mxu0 %v2199_v49  ;;  %v5541_v45 = vsel %vm877_vm9, %v2315_v62, %v2319_v12  ;;  %v5546_v28 = vsel %vm966_vm12, %v2427_v10, %v2432_v41  ;;  %v5551_v14 = vsel %vm966_vm12, %v2432_v41, %v2436_v26  ;;  %v3814_v10 = vld [vmem:[%s6090_s8 + $0x2b0] sm:$0xff]  ;;  %2570 = vmatpush.msrb.mxu2 %v3866_v37  ;;  %v3861_v16 = vld [vmem:[%s6090_s8 + $0x428] sm:$0xff]  ;;  %v3859_v1 = vld [vmem:[%s6090_s8 + $0x418] sm:$0xff] }
 0x39f   : > { %v5555_v5 = vadd.f32 %v1987_v18, %v1924_v50  ;;  %2368 = vmatpush.msra.mxu3 %v3815_v52  ;;  %v5570_v25 = vsel %vm541_vm0, %v2544_v2, %v2549_v3  ;;  %2479 = vmatpush.msrb.mxu1 %v3853_v7  ;;  %v5583_v51 = vsel %vm541_vm0, %v2549_v3, %v2553_v19  ;;  %v2023_v2 = vrot.slane %v2005_v32, 1  ;;  %v3809_v62 = vld [vmem:[%s6090_s8 + $0x288] sm:$0xff]  ;;  %v3887_v37 = vld [vmem:[%s6090_s8 + $0x4f8] sm:$0xff] }
 0x3a0   : > { %2571 = vmatpush.msrb.mxu2 %v3865_v43 }
 0x3a1   : > { %v2007_v24 = vmax.f32 %v5555_v5, 0.0  ;;  %2369 = vmatpush.msra.mxu3 %v3814_v10  ;;  %2480 = vmatpush.msrb.mxu1 %v3852_v44  ;;  %v1993_v50 = vpop.f32.mrf.mxu1  ;;  %v3857_v44 = vld [vmem:[%s6090_s8 + $0x408] sm:$0xff] }
 0x3a2   : > { %2572 = vmatpush.msrb.mxu2 %v3864_v47 }
 0x3a3   : > { %v2024_v20 = vrot.slane %v2007_v24, 1  ;;  %3758 = vmatmul.msk.f32.gmra.mxu2 %vm685_vm7, %v5480_v29  ;;  %2370 = vmatpush.msra.mxu3 %v3813_v33  ;;  %v1703_v29 = vadd.f32 %v6161_v0, %v1628_v27  ;;  %v3844_v27 = vld [vmem:[%s6090_s8 + $0x3a0] sm:$0xff] }
 0x3a4   : > { %v1915_v48 = vpop.f32.mrf.mxu3  ;;  %2481 = vmatpush.msrb.mxu1 %v3851_v35  ;;  %2573 = vmatpush.msrb.mxu2 %v3863_v59  ;;  %v3856_v59 = vld [vmem:[%s6090_s8 + $0x400] sm:$0xff] }
 0x3a5   : > { %v2025_v9 = vsel %vm685_vm7, %v2023_v2, %v2024_v20  ;;  %v1926_v61 = vadd.f32 %v1915_v48, %v1851_v17  ;;  %v1778_v31 = vadd.f32 %v5348_v38, %v1703_v29  ;;  %2371 = vmatpush.msra.mxu3 %v3812_v39  ;;  %v3848_v38 = vld [vmem:[%s6090_s8 + $0x3c0] sm:$0xff]  ;;  %v3886_v2 = vld [vmem:[%s6090_s8 + $0x4f0] sm:$0xff]  ;;  %v3843_v48 = vld [vmem:[%s6090_s8 + $0x398] sm:$0xff] }
 0x3a6   : > { %v5605_v23 = vmax.f32 %v2005_v32, %v2025_v9  ;;  %2236 = vmatmul.f32.gmra.mxu0 %v2203_v57  ;;  %2482 = vmatpush.msrb.mxu1 %v3850_v60  ;;  %v3858_v57 = vld [vmem:[%s6090_s8 + $0x410] sm:$0xff]  ;;  %v3885_v39 = vld [vmem:[%s6090_s8 + $0x4e8] sm:$0xff]  ;;  %v3884_v9 = vld [vmem:[%s6090_s8 + $0x4e0] sm:$0xff] }
 0x3a7   : > { %v5614_v18 = vadd.f32 %v1990_v30, %v1926_v61  ;;  %2574 = vmatpush.msrb.mxu2 %v3862_v13  ;;  %2372 = vmatpush.msra.mxu3 %v3811_v63  ;;  %v1853_v34 = vadd.f32 %v5287_v54, %v1778_v31  ;;  %v3846_v54 = vld [vmem:[%s6090_s8 + $0x3b0] sm:$0xff]  ;;  %v3883_v31 = vld [vmem:[%s6090_s8 + $0x4d8] sm:$0xff] }
 0x3a8   : > { %2134 = vmatmul.f32.vlgmr.msrb.gmra.mxu3 %v5605_v23  ;;  %2483 = vmatpush.msrb.mxu1 %v3849_v42  ;;  %v2195_v7 = vrot.slane %v5605_v23, 1  ;;  %v2312_v3 = vrot.slane %v5605_v23, 2  ;;  %v2429_v5 = vrot.slane %v5605_v23, 3  ;;  %v3842_v29 = vld [vmem:[%s6090_s8 + $0x390] sm:$0xff]  ;;  %v3841_v42 = vld [vmem:[%s6090_s8 + $0x388] sm:$0xff] }
 0x3a9   : > { %v2009_v15 = vmax.f32 %v5614_v18, 0.0  ;;  %2575 = vmatpush.msrb.mxu2 %v3861_v16  ;;  %2373 = vmatpush.msra.mxu3 %v3810_v53 }
 0x3aa   : > { %2484 = vmatpush.msrb.mxu1 %v3848_v38 }
 0x3ab   : > { %v2028_v6 = vrot.slane %v2009_v15, 1  ;;  %2347 = vmatmul.f32.vlgmr.msra.gmra.mxu2 %v5443_v21  ;;  %2374 = vmatpush.msra.mxu3 %v3809_v62 }
 0x3ac   : > { %v1918_v40 = vpop.f32.mrf.mxu3  ;;  %2576 = vmatpush.msrb.mxu2 %v3860_v4  ;;  %2485 = vmatpush.msrb.mxu1 %v3847_v56 }
 0x3ad   : > { %v2029_v21 = vsel %vm685_vm7, %v2024_v20, %v2028_v6  ;;  %v1928_v41 = vadd.f32 %v1918_v40, %v1853_v34  ;;  %2375 = vmatpush.msra.mxu3 %v3808_v8  ;;  %v3840_v34 = vld [vmem:[%s6090_s8 + $0x380] sm:$0xff]  ;;  %v3882_v8 = vld [vmem:[%s6090_s8 + $0x4d0] sm:$0xff] }
 0x3ae   : > { %v5650_v49 = vmax.f32 %v2007_v24, %v2029_v21  ;;  %2239 = vmatmul.f32.gmra.mxu0 %v2202_v58  ;;  %2577 = vmatpush.msrb.mxu2 %v3859_v1  ;;  %v3845_v58 = vld [vmem:[%s6090_s8 + $0x3a8] sm:$0xff]  ;;  %v2546_v24 = vrot.slane %v5605_v23, 4 }
 0x3af   : > { %v2003_v52 = vadd.f32 %v1993_v50, %v1928_v41  ;;  %2486 = vmatpush.msrb.mxu1 %v3846_v54  ;;  %2594 = vmatpush.msrb.mxu3 %v3887_v37  ;;  %v3880_v41 = vld [vmem:[%s6090_s8 + $0x4c0] sm:$0xff]  ;;  %v3878_v54 = vld [vmem:[%s6090_s8 + $0x4b0] sm:$0xff]  ;;  %v3877_v50 = vld [vmem:[%s6090_s8 + $0x4a8] sm:$0xff] }
 0x3b0   : > { %2137 = vmatmul.f32.gmra.mxu3 %v5650_v49  ;;  %v2196_v36 = vrot.slane %v5650_v49, 1  ;;  %v2313_v32 = vrot.slane %v5650_v49, 2  ;;  %v2430_v43 = vrot.slane %v5650_v49, 3  ;;  %2578 = vmatpush.msrb.mxu2 %v3858_v57  ;;  %v2547_v47 = vrot.slane %v5650_v49, 4  ;;  %v3874_v49 = vld [vmem:[%s6090_s8 + $0x490] sm:$0xff] }
 0x3b1   : > { %v2011_v10 = vmax.f32 %v2003_v52, 0.0  ;;  %2487 = vmatpush.msrb.mxu1 %v3845_v58  ;;  %2595 = vmatpush.msrb.mxu3 %v3886_v2  ;;  %v3899_v2 = vld [vmem:[%s6092_s10 + $0x28] sm:$0xff] }
 0x3b2   : > { %v2197_v33 = vsel %vm685_vm7, %v2195_v7, %v2196_v36  ;;  %v5680_v35 = vsel %vm877_vm9, %v2312_v3, %v2313_v32  ;;  %v5686_v20 = vsel %vm966_vm12, %v2429_v5, %v2430_v43  ;;  %v5693_v30 = vsel %vm541_vm0, %v2546_v24, %v2547_v47  ;;  %2579 = vmatpush.msrb.mxu2 %v3857_v44 }
 0x3b3   : > { %v2032_v17 = vrot.slane %v2011_v10, 1  ;;  %2259 = vmatmul.f32.vlgmr.msra.gmra.mxu1 %v2197_v33  ;;  %2350 = vmatmul.f32.gmra.mxu2 %v5527_v46 }
 0x3b4   : > { %2488 = vmatpush.msrb.mxu1 %v3844_v27  ;;  %2580 = vmatpush.msrb.mxu2 %v3856_v59 }
 0x3b5   : > { %v2033_v60 = vsel %vm685_vm7, %v2028_v6, %v2032_v17  ;;  %v2049_v46 = vmax.f32 %v2011_v10, %v2032_v17  ;;  %2596 = vmatpush.msrb.mxu3 %v3885_v39  ;;  %v2655_v10 = vld [vmem:[%s6092_s10] sm:$0xff]  ;;  %v3893_v17 = vld [vmem:[%s6092_s10 + $0x18] sm:$0xff] }
 0x3b6   : > { %v2047_v0 = vmax.f32 %v2009_v15, %v2033_v60  ;;  %2464 = vmatmul.f32.vlgmr.msra.gmra.mxu0 %v5461_v22  ;;  %2489 = vmatpush.msrb.mxu1 %v3843_v48  ;;  %v3911_v60 = vld [vmem:[%s6092_s10 + $0x48] sm:$0xff] }
 0x3b7   : > { %v5712_v61 = vsel %vm685_vm7, %v2049_v46, 0.0  ;;  %2597 = vmatpush.msrb.mxu3 %v3884_v9  ;;  %2785 = vmatpush.msra.mxu2 %v3899_v2 }
 0x3b8   : > { %2140 = vmatmul.f32.gmra.mxu3 %v2047_v0  ;;  %v2200_v13 = vrot.slane %v2047_v0, 1  ;;  %v2204_v23 = vrot.slane %v5712_v61, 1  ;;  %v2317_v63 = vrot.slane %v2047_v0, 2  ;;  %v2321_v22 = vrot.slane %v5712_v61, 2  ;;  %2490 = vmatpush.msrb.mxu1 %v3842_v29  ;;  %v5815_v29 = vld [vmem:[%s6091_s9] ss:$0 sm:$0xff] }
 0x3b9   : > { %v2434_v18 = vrot.slane %v2047_v0, 3  ;;  %v2438_v16 = vrot.slane %v5712_v61, 3  ;;  %v2551_v53 = vrot.slane %v2047_v0, 4  ;;  %v2555_v15 = vrot.slane %v5712_v61, 4  ;;  %2598 = vmatpush.msrb.mxu3 %v3883_v31 }
 0x3ba   : > { %v2201_v38 = vsel %vm685_vm7, %v2196_v36, %v2200_v13  ;;  %v2205_v4 = vsel %vm685_vm7, %v2200_v13, %v2204_v23  ;;  %v2318_v62 = vsel %vm877_vm9, %v2313_v32, %v2317_v63  ;;  %v2322_v6 = vsel %vm877_vm9, %v2317_v63, %v2321_v22  ;;  %2491 = vmatpush.msrb.mxu1 %v3841_v42  ;;  %v3898_v13 = vld [vmem:[%s6092_s10 + $0x20] sm:$0xff]  ;;  %v3892_v63 = vld [vmem:[%s6092_s10 + $0x10] sm:$0xff] }
 0x3bb   : > { %2262 = vmatmul.f32.gmra.mxu1 %v2201_v38  ;;  %2353 = vmatmul.f32.gmra.mxu2 %v5541_v45  ;;  %v2435_v56 = vsel %vm966_vm12, %v2430_v43, %v2434_v18  ;;  %v2439_v40 = vsel %vm966_vm12, %v2434_v18, %v2438_v16  ;;  %v2552_v1 = vsel %vm541_vm0, %v2547_v47, %v2551_v53  ;;  %v3881_v45 = vld [vmem:[%s6090_s8 + $0x4c8] sm:$0xff] }
 0x3bc   : > { %v2556_v21 = vsel %vm541_vm0, %v2551_v53, %v2555_v15  ;;  %2492 = vmatpush.msrb.mxu1 %v3840_v34  ;;  %2599 = vmatpush.msrb.mxu3 %v3882_v8 }
 0x3bd   : > { %2786 = vmatpush.msra.mxu2 %v3898_v13 }
 0x3be   : > { %2467 = vmatmul.f32.gmra.mxu0 %v5546_v28  ;;  %2600 = vmatpush.msrb.mxu3 %v3881_v45  ;;  %v3879_v28 = vld [vmem:[%s6090_s8 + $0x4b8] sm:$0xff] }
 0x3bf   : > { %2734 = vmatpush.msra.mxu1 %v3893_v17 }
 0x3c0   : > { %3759 = vmatmul.msk.f32.gmra.mxu3 %vm685_vm7, %v2049_v46 }
 0x3c1   : > { %2601 = vmatpush.msrb.mxu3 %v3880_v41  ;;  %2735 = vmatpush.msra.mxu1 %v3892_v63  ;;  %v5836_v41 = vld [vmem:[%s6094_s12] ss:$0 sm:$0xff] }
 0x3c3   : > { %2265 = vmatmul.f32.gmra.mxu1 %v2205_v4  ;;  %2356 = vmatmul.f32.gmra.mxu2 %v2319_v12  ;;  %v3876_v12 = vld [vmem:[%s6090_s8 + $0x4a0] sm:$0xff] }
 0x3c4   : > { %2602 = vmatpush.msrb.mxu3 %v3879_v28 }
 0x3c6   : > { %2470 = vmatmul.f32.gmra.mxu0 %v5551_v14  ;;  %2603 = vmatpush.msrb.mxu3 %v3878_v54  ;;  %v3875_v14 = vld [vmem:[%s6090_s8 + $0x498] sm:$0xff] }
 0x3c8   : > { %2376 = vmatmul.f32.vlgmr.msra.gmra.mxu3 %v5680_v35 }
 0x3c9   : > { %2604 = vmatpush.msrb.mxu3 %v3877_v50 }
 0x3cb   : > { %2268 = vmatmul.f32.gmra.mxu1 %v2204_v23  ;;  %2581 = vmatmul.f32.vlgmr.msrb.gmra.mxu2 %v5466_v55  ;;  %v3873_v55 = vld [vmem:[%s6090_s8 + $0x488] sm:$0xff]  ;;  %v3904_v23 = vld [vmem:[%s6092_s10 + $0x30] sm:$0xff] }
 0x3cc   : > { %2605 = vmatpush.msrb.mxu3 %v3876_v12 }
 0x3ce   : > { %2473 = vmatmul.f32.gmra.mxu0 %v2436_v26  ;;  %2606 = vmatpush.msrb.mxu3 %v3875_v14  ;;  %v3872_v26 = vld [vmem:[%s6090_s8 + $0x480] sm:$0xff] }
 0x3d0   : > { %2379 = vmatmul.f32.gmra.mxu3 %v2318_v62 }
 0x3d1   : > { %2607 = vmatpush.msrb.mxu3 %v3874_v49 }
 0x3d3   : > { %2493 = vmatmul.f32.vlgmr.msrb.gmra.mxu1 %v5686_v20  ;;  %2584 = vmatmul.f32.gmra.mxu2 %v5570_v25  ;;  %v3905_v20 = vld [vmem:[%s6092_s10 + $0x38] sm:$0xff] }
 0x3d4   : > { %2608 = vmatpush.msrb.mxu3 %v3873_v55 }
 0x3d6   : > { %2609 = vmatpush.msrb.mxu3 %v3872_v26 }
 0x3d8   : > { %2382 = vmatmul.f32.gmra.mxu3 %v2322_v6 }
 0x3d9   : > { %2836 = vmatpush.msra.mxu3 %v3905_v20 }
 0x3db   : > { %2496 = vmatmul.f32.gmra.mxu1 %v2435_v56  ;;  %2587 = vmatmul.f32.gmra.mxu2 %v5583_v51  ;;  %v2656_v51 = vld [vmem:[%s6092_s10 + $0x8] sm:$0xff] }
 0x3dc   : > { %2683 = vmatpush.msrb.mxu0 %v2656_v51  ;;  %2837 = vmatpush.msra.mxu3 %v3904_v23 }
 0x3de   : > { %2684 = vmatpush.msrb.mxu0 %v2655_v10 }
 0x3e0   : > { %2385 = vmatmul.f32.gmra.mxu3 %v2321_v22  ;;  %2887 = vmatpush.msra.mxu0 %v3911_v60 }
 0x3e3   : > { %2499 = vmatmul.f32.gmra.mxu1 %v2439_v40  ;;  %2590 = vmatmul.f32.gmra.mxu2 %v2553_v19 }
 0x3e8   : > { %2610 = vmatmul.f32.vlgmr.msrb.gmra.mxu3 %v5693_v30 }
 0x3eb   : > { %2502 = vmatmul.f32.gmra.mxu1 %v2438_v16 }
 0x3f0   : > { %2613 = vmatmul.f32.gmra.mxu3 %v2552_v1  ;;  %v3910_v1 = vld [vmem:[%s6092_s10 + $0x40] sm:$0xff] }
 0x3f1   : > { %2888 = vmatpush.msra.mxu0 %v3910_v1 }
 0x3f8   : > { %2616 = vmatmul.f32.gmra.mxu3 %v2556_v21 }
 0x400   : > { %2619 = vmatmul.f32.gmra.mxu3 %v2555_v15 }
 0x40e   : > { %v2106_v25 = vpop.f32.mrf.mxu2 }
 0x413   : > { %v2231_v19 = vpop.f32.mrf.mxu0 }
 0x416   : > { %v2109_v57 = vpop.f32.mrf.mxu2 }
 0x41b   : > { %v2234_v5 = vpop.f32.mrf.mxu0 }
 0x41e   : > { %v5784_v37 = vpop.f32.mrf.mxu2 }
 0x423   : > { %v2237_v47 = vpop.f32.mrf.mxu0 }
 0x426   : > { %v5786_v7 = vpop.f32.mrf.mxu2 }
 0x42b   : > { %v2135_v52 = vpop.f32.mrf.mxu3  ;;  %v2240_v30 = vpop.f32.mrf.mxu0 }
 0x42c   : > { %v2136_v9 = vadd.f32 %v2135_v52, %v2106_v25 }
 0x42e   : > { %v2348_v36 = vpop.f32.mrf.mxu2  ;;  %v2147_v31 = vadd.f32 %v5815_v29, %v2136_v9 }
 0x430   : > { %v2260_v11 = vpop.f32.mrf.mxu1 }
 0x431   : > { %v2261_v22 = vadd.f32 %v2260_v11, %v2231_v19 }
 0x433   : > { %v2138_v3 = vpop.f32.mrf.mxu3  ;;  %v2465_v0 = vpop.f32.mrf.mxu0  ;;  %v2272_v16 = vadd.f32 %v2261_v22, %v2147_v31 }
 0x434   : > { %v2139_v38 = vadd.f32 %v2138_v3, %v2109_v57 }
 0x436   : > { %v2351_v44 = vpop.f32.mrf.mxu2  ;;  %v2148_v8 = vadd.f32 %v5815_v29, %v2139_v38 }
 0x438   : > { %v2263_v32 = vpop.f32.mrf.mxu1 }
 0x439   : > { %v2264_v34 = vadd.f32 %v2263_v32, %v2234_v5 }
 0x43b   : > { %v2141_v58 = vpop.f32.mrf.mxu3  ;;  %v2468_v62 = vpop.f32.mrf.mxu0  ;;  %v2273_v54 = vadd.f32 %v2264_v34, %v2148_v8 }
 0x43c   : > { %v2142_v14 = vadd.f32 %v2141_v58, %v5784_v37 }
 0x43e   : > { %v2354_v33 = vpop.f32.mrf.mxu2  ;;  %v2149_v19 = vadd.f32 %v5815_v29, %v2142_v14 }
 0x440   : > { %v2266_v27 = vpop.f32.mrf.mxu1 }
 0x441   : > { %v2267_v52 = vadd.f32 %v2266_v27, %v2237_v47 }
 0x443   : > { %v5791_v43 = vpop.f32.mrf.mxu3  ;;  %v2471_v11 = vpop.f32.mrf.mxu0  ;;  %v2274_v37 = vadd.f32 %v2267_v52, %v2149_v19 }
 0x446   : > { %v5807_v48 = vpop.f32.mrf.mxu2 }
 0x448   : > { %v5805_v59 = vpop.f32.mrf.mxu1 }
 0x449   : > { %v2270_v47 = vadd.f32 %v5805_v59, %v2240_v30 }
 0x44b   : > { %v2377_v24 = vpop.f32.mrf.mxu3  ;;  %v2474_v13 = vpop.f32.mrf.mxu0 }
 0x44c   : > { %v2378_v18 = vadd.f32 %v2377_v24, %v2348_v36 }
 0x44e   : > { %v2582_v42 = vpop.f32.mrf.mxu2  ;;  %v2389_v4 = vadd.f32 %v2378_v18, %v2272_v16 }
 0x450   : > { %v2494_v46 = vpop.f32.mrf.mxu1 }
 0x451   : > { %v2495_v53 = vadd.f32 %v2494_v46, %v2465_v0 }
 0x453   : > { %v2380_v35 = vpop.f32.mrf.mxu3  ;;  %v2506_v56 = vadd.f32 %v2495_v53, %v2389_v4 }
 0x454   : > { %v2381_v21 = vadd.f32 %v2380_v35, %v2351_v44  ;;  %v2145_v44 = vadd.f32 %v5791_v43, %v5786_v7 }
 0x456   : > { %v2585_v28 = vpop.f32.mrf.mxu2  ;;  %v2390_v49 = vadd.f32 %v2381_v21, %v2273_v54  ;;  %v2150_v30 = vadd.f32 %v5815_v29, %v2145_v44  ;;  %v3973_v44 = vld [vmem:[%s6093_s11] ss:$0 sm:$0xff] }
 0x458   : > { %v2497_v15 = vpop.f32.mrf.mxu1 }
 0x459   : > { %v2498_v50 = vadd.f32 %v2497_v15, %v2468_v62 }
 0x45b   : > { %v2383_v39 = vpop.f32.mrf.mxu3  ;;  %v2507_v3 = vadd.f32 %v2498_v50, %v2390_v49 }
 0x45c   : > { %v2384_v36 = vadd.f32 %v2383_v39, %v2354_v33 }
 0x45e   : > { %v2588_v10 = vpop.f32.mrf.mxu2  ;;  %v2391_v24 = vadd.f32 %v2384_v36, %v2274_v37  ;;  %v2931_v36 = vld [vmem:[%s6095_s13] sm:$0xff] }
 0x460   : > { %v2500_v26 = vpop.f32.mrf.mxu1 }
 0x461   : > { %v2501_v58 = vadd.f32 %v2500_v26, %v2471_v11 }
 0x463   : > { %v5817_v61 = vpop.f32.mrf.mxu3  ;;  %v2508_v20 = vadd.f32 %v2501_v58, %v2391_v24 }
 0x464   : > { %v2387_v0 = vadd.f32 %v5817_v61, %v5807_v48 }
 0x466   : > { %v2591_v61 = vpop.f32.mrf.mxu2 }
 0x468   : > { %v2503_v60 = vpop.f32.mrf.mxu1 }
 0x469   : > { %v2504_v31 = vadd.f32 %v2503_v60, %v2474_v13 }
 0x46b   : > { %v2611_v6 = vpop.f32.mrf.mxu3 }
 0x46c   : > { %v2612_v40 = vadd.f32 %v2611_v6, %v2582_v42  ;;  %v2275_v42 = vadd.f32 %v2270_v47, %v2150_v30 }
 0x46e   : > { %v2623_v45 = vadd.f32 %v2612_v40, %v2506_v56  ;;  %v2392_v29 = vadd.f32 %v2387_v0, %v2275_v42  ;;  %v6162_v42 = vld [vmem:[#allocation2_spill] sm:$0xff] }
 0x470   : > { %v2634_v12 = vrot.slane %v2623_v45, 6  ;;  %v2509_v15 = vadd.f32 %v2504_v31, %v2392_v29  ;;  %v6163_v31 = vmax.f32 %v6162_v42, 0.0 }
 0x472   : > { %v2645_v55 = vsel %vm1232_vm13, %v5836_v41, %v2634_v12 }
 0x473   : > { %v5841_v25 = vmax.f32 %v2645_v55, 0.0  ;;  %v2614_v57 = vpop.f32.mrf.mxu3 }
 0x474   : > { %v2615_v51 = vadd.f32 %v2614_v57, %v2585_v28 }
 0x475   : > { %3888 = vmatmul.msk.f32.vlgmr.msrb.gmra.mxu0 %vm707_vm8, %v5841_v25  ;;  %v2705_v33 = vrot.slane %v5841_v25, 1  ;;  %v2756_v39 = vrot.slane %v5841_v25, 2  ;;  %v2807_v46 = vrot.slane %v5841_v25, 3  ;;  %v2858_v57 = vrot.slane %v5841_v25, 4  ;;  %v2932_v25 = vld [vmem:[%s6095_s13 + $0x8] sm:$0xff] }
 0x476   : > { %v2624_v32 = vadd.f32 %v2615_v51, %v2507_v3  ;;  %2963 = vmatpush.msrb.mxu1 %v2932_v25  ;;  %3100 = vmatpush.msrb.mxu2 %v2932_v25 }
 0x477   : > { %3237 = vmatpush.msrb.mxu3 %v2932_v25  ;;  %3374 = vmatpush.msrb.mxu0 %v2932_v25 }
 0x478   : > { %v2635_v5 = vrot.slane %v2624_v32, 6  ;;  %2964 = vmatpush.msrb.mxu1 %v2931_v36  ;;  %3101 = vmatpush.msrb.mxu2 %v2931_v36 }
 0x479   : > { %3238 = vmatpush.msrb.mxu3 %v2931_v36  ;;  %3375 = vmatpush.msrb.mxu0 %v2931_v36 }
 0x47a   : > { %v2636_v27 = vsel %vm1232_vm13, %v2634_v12, %v2635_v5 }
 0x47b   : > { %v5850_v35 = vmax.f32 %v2636_v27, 0.0  ;;  %v2617_v2 = vpop.f32.mrf.mxu3 }
 0x47c   : > { %v2618_v17 = vadd.f32 %v2617_v2, %v2588_v10 }
 0x47d   : > { %3889 = vmatmul.msk.f32.gmra.mxu0 %vm707_vm8, %v5850_v35  ;;  %v2706_v7 = vrot.slane %v5850_v35, 1  ;;  %v2757_v43 = vrot.slane %v5850_v35, 2  ;;  %v2808_v59 = vrot.slane %v5850_v35, 3  ;;  %v2859_v26 = vrot.slane %v5850_v35, 4 }
 0x47e   : > { %v2625_v9 = vadd.f32 %v2618_v17, %v2508_v20 }
 0x47f   : > { %v2707_v23 = vsel %vm685_vm7, %v2705_v33, %v2706_v7  ;;  %v2758_v63 = vsel %vm877_vm9, %v2756_v39, %v2757_v43  ;;  %v2809_v22 = vsel %vm966_vm12, %v2807_v46, %v2808_v59  ;;  %v2860_v52 = vsel %vm541_vm0, %v2858_v57, %v2859_v26  ;;  %v6166_v57 = vld [vmem:[#allocation4_spill] sm:$0xff] }
 0x480   : > { %v2637_v18 = vrot.slane %v2625_v9, 6  ;;  %3894 = vmatmul.msk.f32.vlgmr.msra.gmra.mxu1 %vm707_vm8, %v2707_v23  ;;  %3900 = vmatmul.msk.f32.vlgmr.msra.gmra.mxu2 %vm707_vm8, %v2758_v63 }
 0x481   : > { %3906 = vmatmul.msk.f32.vlgmr.msra.gmra.mxu3 %vm707_vm8, %v2809_v22 }
 0x482   : > { %v2638_v48 = vsel %vm1232_vm13, %v2635_v5, %v2637_v18 }
 0x483   : > { %v2649_v16 = vmax.f32 %v2638_v48, 0.0  ;;  %v2620_v53 = vpop.f32.mrf.mxu3 }
 0x484   : > { %v2621_v38 = vadd.f32 %v2620_v53, %v2591_v61 }
 0x485   : > { %3890 = vmatmul.msk.f32.gmra.mxu0 %vm707_vm8, %v2649_v16  ;;  %v2708_v4 = vrot.slane %v2649_v16, 1  ;;  %v2759_v62 = vrot.slane %v2649_v16, 2  ;;  %v2810_v6 = vrot.slane %v2649_v16, 3  ;;  %v2861_v3 = vrot.slane %v2649_v16, 4 }
 0x486   : > { %v2626_v34 = vadd.f32 %v2621_v38, %v2509_v15 }
 0x487   : > { %v2709_v56 = vsel %vm685_vm7, %v2706_v7, %v2708_v4  ;;  %v2760_v40 = vsel %vm877_vm9, %v2757_v43, %v2759_v62  ;;  %v2811_v1 = vsel %vm966_vm12, %v2808_v59, %v2810_v6  ;;  %v2862_v51 = vsel %vm541_vm0, %v2859_v26, %v2861_v3 }
 0x488   : > { %v2639_v8 = vrot.slane %v2626_v34, 6  ;;  %3895 = vmatmul.msk.f32.gmra.mxu1 %vm707_vm8, %v2709_v56  ;;  %3901 = vmatmul.msk.f32.gmra.mxu2 %vm707_vm8, %v2760_v40 }
 0x489   : > { %3907 = vmatmul.msk.f32.gmra.mxu3 %vm707_vm8, %v2811_v1  ;;  %v6164_v1 = vld [vmem:[#allocation3_spill] sm:$0xff] }
 0x48a   : > { %v2640_v21 = vsel %vm1232_vm13, %v2637_v18, %v2639_v8  ;;  %v6165_v8 = vmax.f32 %v6164_v1, 0.0 }
 0x48b   : > { %v2646_v45 = vsel %vm877_vm9, %v2640_v21, %v5836_v41 }
 0x48c   : > { %v2650_v28 = vmax.f32 %v2646_v45, 0.0 }
 0x48e   : > { %3891 = vmatmul.msk.f32.gmra.mxu0 %vm707_vm8, %v2650_v28  ;;  %v2710_v54 = vrot.slane %v2650_v28, 1  ;;  %v2761_v50 = vrot.slane %v2650_v28, 2  ;;  %v2812_v12 = vrot.slane %v2650_v28, 3  ;;  %v2863_v11 = vrot.slane %v2650_v28, 4 }
 0x490   : > { %v2711_v14 = vsel %vm685_vm7, %v2708_v4, %v2710_v54  ;;  %v2762_v49 = vsel %vm877_vm9, %v2759_v62, %v2761_v50  ;;  %v2813_v55 = vsel %vm966_vm12, %v2810_v6, %v2812_v12  ;;  %v2864_v19 = vsel %vm541_vm0, %v2861_v3, %v2863_v11 }
 0x491   : > { %3896 = vmatmul.msk.f32.gmra.mxu1 %vm707_vm8, %v2711_v14  ;;  %3902 = vmatmul.msk.f32.gmra.mxu2 %vm707_vm8, %v2762_v49 }
 0x492   : > { %3908 = vmatmul.msk.f32.gmra.mxu3 %vm707_vm8, %v2813_v55 }
 0x496   : > { %3912 = vmatmul.msk.f32.vlgmr.msra.gmra.mxu0 %vm707_vm8, %v2860_v52  ;;  %v6167_v52 = vmax.f32 %v6166_v57, 0.0 }
 0x499   : > { %3897 = vmatmul.msk.f32.gmra.mxu1 %vm707_vm8, %v2710_v54  ;;  %3903 = vmatmul.msk.f32.gmra.mxu2 %vm707_vm8, %v2761_v50 }
 0x49a   : > { %3909 = vmatmul.msk.f32.gmra.mxu3 %vm707_vm8, %v2812_v12 }
 0x49e   : > { %3913 = vmatmul.msk.f32.gmra.mxu0 %vm707_vm8, %v2862_v51 }
 0x4a6   : > { %3914 = vmatmul.msk.f32.gmra.mxu0 %vm707_vm8, %v2864_v19 }
 0x4ae   : > { %3915 = vmatmul.msk.f32.gmra.mxu0 %vm707_vm8, %v2863_v11 }
 0x4f2   : > { %v2686_v32 = vpop.f32.mrf.mxu0 }
 0x4f3   : > { %v2698_v24 = vadd.f32 %v3973_v44, %v2686_v32  ;;  %v6168_v32 = vld [vmem:[#allocation5_spill] sm:$0xff] }
 0x4fa   : > { %v2689_v37 = vpop.f32.mrf.mxu0 }
 0x4fb   : > { %v2699_v33 = vadd.f32 %v3973_v44, %v2689_v37  ;;  %v6169_v37 = vmax.f32 %v6168_v32, 0.0 }
 0x4fd   : > { %v2737_v5 = vpop.f32.mrf.mxu1 }
 0x4fe   : > { %v2749_v35 = vadd.f32 %v2737_v5, %v2698_v24  ;;  %v5942_v5 = vld [vmem:[%s6096_s14] ss:$0 sm:$0xff] }
 0x502   : > { %v2692_v58 = vpop.f32.mrf.mxu0 }
 0x503   : > { %v2788_v10 = vpop.f32.mrf.mxu2  ;;  %v2700_v63 = vadd.f32 %v3973_v44, %v2692_v58 }
 0x504   : > { %v2839_v27 = vpop.f32.mrf.mxu3  ;;  %v2800_v20 = vadd.f32 %v2788_v10, %v2749_v35 }
 0x505   : > { %v2740_v2 = vpop.f32.mrf.mxu1 }
 0x506   : > { %v2851_v39 = vadd.f32 %v2839_v27, %v2800_v20  ;;  %v2750_v7 = vadd.f32 %v2740_v2, %v2699_v33 }
 0x50b   : > { %v2695_v47 = vpop.f32.mrf.mxu0  ;;  %v2791_v17 = vpop.f32.mrf.mxu2 }
 0x50c   : > { %v2842_v46 = vpop.f32.mrf.mxu3  ;;  %v2801_v59 = vadd.f32 %v2791_v17, %v2750_v7  ;;  %v2701_v6 = vadd.f32 %v3973_v44, %v2695_v47 }
 0x50e   : > { %v2743_v0 = vpop.f32.mrf.mxu1  ;;  %v2852_v22 = vadd.f32 %v2842_v46, %v2801_v59 }
 0x50f   : > { %v2751_v48 = vadd.f32 %v2743_v0, %v2700_v63 }
 0x513   : > { %v2890_v60 = vpop.f32.mrf.mxu0 }
 0x514   : > { %v2902_v43 = vadd.f32 %v2890_v60, %v2851_v39  ;;  %v2794_v23 = vpop.f32.mrf.mxu2 }
 0x515   : > { %v2802_v16 = vadd.f32 %v2794_v23, %v2751_v48  ;;  %v2845_v15 = vpop.f32.mrf.mxu3 }
 0x516   : > { %v2910_v30 = vrot.slane %v2902_v43, 6  ;;  %v2746_v4 = vpop.f32.mrf.mxu1 }
 0x517   : > { %v2853_v34 = vadd.f32 %v2845_v15, %v2802_v16  ;;  %v2752_v45 = vadd.f32 %v2746_v4, %v2701_v6 }
 0x518   : > { %v2921_v9 = vsel %vm1232_vm13, %v5836_v41, %v2910_v30 }
 0x519   : > { %v2923_v13 = vmax.f32 %v2921_v9, 0.0 }
 0x51b   : > { %v5912_v18 = vadd.f32 %v2923_v13, %v6163_v31  ;;  %v2893_v29 = vpop.f32.mrf.mxu0 }
 0x51c   : > { %v2903_v61 = vadd.f32 %v2893_v29, %v2852_v22  ;;  %v2797_v56 = vpop.f32.mrf.mxu2 }
 0x51d   : > { %3916 = vmatmul.msk.f32.vlgmr.msrb.gmra.mxu1 %vm707_vm8, %v5912_v18  ;;  %v2803_v54 = vadd.f32 %v2797_v56, %v2752_v45  ;;  %v2848_v14 = vpop.f32.mrf.mxu3 }
 0x51e   : > { %v2911_v53 = vrot.slane %v2903_v61, 6 }
 0x51f   : > { %v2854_v55 = vadd.f32 %v2848_v14, %v2803_v54 }
 0x520   : > { %v2912_v38 = vsel %vm1232_vm13, %v2910_v30, %v2911_v53 }
 0x521   : > { %v2924_v62 = vmax.f32 %v2912_v38, 0.0 }
 0x523   : > { %v2896_v40 = vpop.f32.mrf.mxu0  ;;  %v5919_v21 = vadd.f32 %v2924_v62, %v6165_v8 }
 0x524   : > { %v2904_v28 = vadd.f32 %v2896_v40, %v2853_v34 }
 0x525   : > { %3917 = vmatmul.msk.f32.gmra.mxu1 %vm707_vm8, %v5919_v21 }
 0x526   : > { %v2913_v50 = vrot.slane %v2904_v28, 6 }
 0x528   : > { %v2914_v12 = vsel %vm1232_vm13, %v2911_v53, %v2913_v50 }
 0x529   : > { %v2925_v49 = vmax.f32 %v2914_v12, 0.0 }
 0x52b   : > { %v2899_v26 = vpop.f32.mrf.mxu0  ;;  %v5926_v3 = vadd.f32 %v2925_v49, %v6167_v52 }
 0x52c   : > { %v2905_v51 = vadd.f32 %v2899_v26, %v2854_v55 }
 0x52d   : > { %3918 = vmatmul.msk.f32.gmra.mxu1 %vm707_vm8, %v5926_v3 }
 0x52e   : > { %v2915_v11 = vrot.slane %v2905_v51, 6 }
 0x530   : > { %v2916_v19 = vsel %vm1232_vm13, %v2913_v50, %v2915_v11 }
 0x531   : > { %v2922_v25 = vsel %vm877_vm9, %v2916_v19, %v5836_v41 }
 0x532   : > { %v2926_v36 = vmax.f32 %v2922_v25, 0.0 }
 0x534   : > { %v5935_v58 = vadd.f32 %v2926_v36, %v6169_v37 }
 0x536   : > { %3919 = vmatmul.msk.f32.gmra.mxu1 %vm707_vm8, %v5935_v58 }
 0x59a   : > { %v2966_v10 = vpop.f32.mrf.mxu1 }
 0x59b   : > { %v2967_v44 = vadd.f32 %v5942_v5, %v2966_v10 }
 0x59d   : > { %v3920_v24 = vmul.f32 -1.442695, %v2967_v44  ;;  %v2978_v53 = vmax.f32 %v2967_v44, 0.0 }
 0x59f   : > { %3975 = vpow2.f32 %v3920_v24 }
 0x5a2   : > { %v2969_v27 = vpop.f32.mrf.mxu1 }
 0x5a3   : > { %v5946_v41 = vadd.f32 %v5942_v5, %v2969_v27 }
 0x5a5   : > { %v3976_v47 = vpop.eup %3975  ;;  %v3921_v35 = vmul.f32 -1.442695, %v5946_v41  ;;  %v2979_v14 = vmax.f32 %v5946_v41, 0.0 }
 0x5a6   : > { %v2994_v2 = vadd.f32 1.0, %v3976_v47 }
 0x5a7   : > { %3977 = vpow2.f32 %v3921_v35 }
 0x5a8   : > { %3979 = vrcp.f32 %v2994_v2  ;;  %v3009_v59 = vand.u32 2147483648, %v2994_v2  ;;  %v3007_v0 = vand.u32 2147483647, %v2994_v2  ;;  %vm3003_vm15 = vweird.f32 %v2994_v2 }
 0x5aa   : > { %v2972_v20 = vpop.f32.mrf.mxu1  ;;  %v3010_v42 = vor.u32 1.1754944e-38, %v3009_v59  ;;  %vm3008_vm1 = vcmp.eq.f32.partialorder %v3007_v0, 8.507059e+37 }
 0x5ab   : > { %v5950_v17 = vadd.f32 %v5942_v5, %v2972_v20 }
 0x5ad   : > { %v3978_v33 = vpop.eup %3977  ;;  %v3922_v39 = vmul.f32 -1.442695, %v5950_v17  ;;  %v2980_v44 = vmax.f32 %v5950_v17, 0.0 }
 0x5ae   : > { %v3980_v60 = vpop.eup %3979  ;;  %v2995_v7 = vadd.f32 1.0, %v3978_v33 }
 0x5af   : > { %v2999_v43 = vmul.f32 %v3980_v60, %v2994_v2  ;;  %3981 = vpow2.f32 %v3922_v39  ;;  %vm3004_vm14 = vweird.f32 %v3980_v60 }
 0x5b0   : > { %3983 = vrcp.f32 %v2995_v7  ;;  %vm3005_vm0 = vmor %vm3003_vm15, %vm3004_vm14  ;;  %v3022_v4 = vand.u32 2147483647, %v2995_v7  ;;  %v3024_v62 = vand.u32 2147483648, %v2995_v7  ;;  %vm3018_vm3 = vweird.f32 %v2995_v7 }
 0x5b1   : > { %v3000_v46 = vsub.f32 1.0, %v2999_v43 }
 0x5b2   : > { %v3025_v45 = vor.u32 1.1754944e-38, %v3024_v62  ;;  %vm3023_vm5 = vcmp.eq.f32.partialorder %v3022_v4, 8.507059e+37 }
 0x5b3   : > { %v3001_v30 = vmul.f32 %v3980_v60, %v3000_v46  ;;  %v2975_v9 = vpop.f32.mrf.mxu1 }
 0x5b4   : > { %v5954_v13 = vadd.f32 %v5942_v5, %v2975_v9 }
 0x5b5   : > { %v3982_v23 = vpop.eup %3981  ;;  %v3002_v63 = vadd.f32 %v3980_v60, %v3001_v30 }
 0x5b6   : > { %v3984_v22 = vpop.eup %3983  ;;  %v2996_v31 = vadd.f32 1.0, %v3982_v23  ;;  %v3923_v29 = vmul.f32 -1.442695, %v5954_v13  ;;  %v2981_v43 = vmax.f32 %v5954_v13, 0.0 }
 0x5b7   : > { %v3006_v48 = vsel %vm3005_vm0, %v3980_v60, %v3002_v63  ;;  %v3014_v61 = vmul.f32 %v3984_v22, %v2995_v7  ;;  %vm3019_vm2 = vweird.f32 %v3984_v22 }
 0x5b8   : > { %v3011_v16 = vsel %vm3008_vm1, %v3010_v42, %v3006_v48  ;;  %3985 = vrcp.f32 %v2996_v31  ;;  %vm3020_vm4 = vmor %vm3018_vm3, %vm3019_vm2  ;;  %v3037_v26 = vand.u32 2147483647, %v2996_v31  ;;  %v3039_v57 = vand.u32 2147483648, %v2996_v31 }
 0x5b9   : > { %v3062_v15 = vsub.f32 1.0, %v3011_v16  ;;  %v3015_v38 = vsub.f32 1.0, %v3014_v61  ;;  %3987 = vpow2.f32 %v3923_v29  ;;  %v3058_v6 = vmul.f32 %v3011_v16, %v2978_v53 }
 0x5ba   : > { %vm3033_vm7 = vweird.f32 %v2996_v31  ;;  %v3040_v36 = vor.u32 1.1754944e-38, %v3039_v57  ;;  %vm3038_vm10 = vcmp.eq.f32.partialorder %v3037_v26, 8.507059e+37 }
 0x5bb   : > { %v3066_v34 = vmul.f32 %v3062_v15, %v5912_v18  ;;  %v3016_v56 = vmul.f32 %v3984_v22, %v3015_v38 }
 0x5bd   : > { %v5958_v40 = vadd.f32 %v3066_v34, %v3058_v6  ;;  %v3017_v1 = vadd.f32 %v3984_v22, %v3016_v56 }
 0x5be   : > { %v3986_v8 = vpop.eup %3985 }
 0x5bf   : > { %v3021_v28 = vsel %vm3020_vm4, %v3984_v22, %v3017_v1  ;;  %v3029_v54 = vmul.f32 %v3986_v8, %v2996_v31  ;;  %3924 = vmatmul.msk.f32.vlgmr.msrb.gmra.mxu2 %vm707_vm8, %v5958_v40  ;;  %v3988_v50 = vpop.eup %3987  ;;  %vm3034_vm6 = vweird.f32 %v3986_v8 }
 0x5c0   : > { %v3026_v12 = vsel %vm3023_vm5, %v3025_v45, %v3021_v28  ;;  %v2997_v55 = vadd.f32 1.0, %v3988_v50  ;;  %vm3035_vm9 = vmor %vm3033_vm7, %vm3034_vm6 }
 0x5c1   : > { %v3063_v18 = vsub.f32 1.0, %v3026_v12  ;;  %v3030_v49 = vsub.f32 1.0, %v3029_v54  ;;  %v3059_v52 = vmul.f32 %v3026_v12, %v2979_v14 }
 0x5c2   : > { %3989 = vrcp.f32 %v2997_v55  ;;  %v3054_v2 = vand.u32 2147483648, %v2997_v55  ;;  %v3052_v33 = vand.u32 2147483647, %v2997_v55  ;;  %vm3048_vm12 = vweird.f32 %v2997_v55 }
 0x5c3   : > { %v3067_v51 = vmul.f32 %v3063_v18, %v5919_v21  ;;  %v3031_v11 = vmul.f32 %v3986_v8, %v3030_v49 }
 0x5c4   : > { %v3055_v60 = vor.u32 1.1754944e-38, %v3054_v2  ;;  %vm3053_vm14 = vcmp.eq.f32.partialorder %v3052_v33, 8.507059e+37 }
 0x5c5   : > { %v5964_v19 = vadd.f32 %v3067_v51, %v3059_v52  ;;  %v3032_v25 = vadd.f32 %v3986_v8, %v3031_v11 }
 0x5c7   : > { %v3036_v32 = vsel %vm3035_vm9, %v3986_v8, %v3032_v25  ;;  %3925 = vmatmul.msk.f32.gmra.mxu2 %vm707_vm8, %v5964_v19 }
 0x5c8   : > { %v3041_v37 = vsel %vm3038_vm10, %v3040_v36, %v3036_v32  ;;  %v3990_v10 = vpop.eup %3989 }
 0x5c9   : > { %v3064_v24 = vsub.f32 1.0, %v3041_v37  ;;  %v3044_v27 = vmul.f32 %v3990_v10, %v2997_v55  ;;  %v3060_v21 = vmul.f32 %v3041_v37, %v2980_v44  ;;  %vm3049_vm11 = vweird.f32 %v3990_v10 }
 0x5ca   : > { %vm3050_vm13 = vmor %vm3048_vm12, %vm3049_vm11 }
 0x5cb   : > { %v3068_v41 = vmul.f32 %v3064_v24, %v5926_v3  ;;  %v3045_v47 = vsub.f32 1.0, %v3044_v27 }
 0x5cd   : > { %v5970_v35 = vadd.f32 %v3068_v41, %v3060_v21  ;;  %v3046_v20 = vmul.f32 %v3990_v10, %v3045_v47 }
 0x5cf   : > { %3926 = vmatmul.msk.f32.gmra.mxu2 %vm707_vm8, %v5970_v35  ;;  %v3047_v39 = vadd.f32 %v3990_v10, %v3046_v20 }
 0x5d1   : > { %v3051_v17 = vsel %vm3050_vm13, %v3990_v10, %v3047_v39 }
 0x5d2   : > { %v3056_v7 = vsel %vm3053_vm14, %v3055_v60, %v3051_v17 }
 0x5d3   : > { %v3065_v3 = vsub.f32 1.0, %v3056_v7  ;;  %v3061_v46 = vmul.f32 %v3056_v7, %v2981_v43 }
 0x5d5   : > { %v3069_v59 = vmul.f32 %v3065_v3, %v5935_v58 }
 0x5d7   : > { %v5976_v30 = vadd.f32 %v3069_v59, %v3061_v46 }
 0x5d9   : > { %3927 = vmatmul.msk.f32.gmra.mxu2 %vm707_vm8, %v5976_v30 }
 0x642   : > { %v3103_v0 = vpop.f32.mrf.mxu2 }
 0x643   : > { %v3104_v9 = vadd.f32 %v5942_v5, %v3103_v0 }
 0x645   : > { %v3928_v23 = vmul.f32 -1.442695, %v3104_v9  ;;  %v3115_v18 = vmax.f32 %v3104_v9, 0.0 }
 0x647   : > { %3991 = vpow2.f32 %v3928_v23 }
 0x64a   : > { %v3106_v63 = vpop.f32.mrf.mxu2 }
 0x64b   : > { %v5982_v22 = vadd.f32 %v5942_v5, %v3106_v63 }
 0x64d   : > { %v3992_v42 = vpop.eup %3991  ;;  %v3929_v13 = vmul.f32 -1.442695, %v5982_v22  ;;  %v3116_v21 = vmax.f32 %v5982_v22, 0.0 }
 0x64e   : > { %v3131_v31 = vadd.f32 1.0, %v3992_v42 }
 0x64f   : > { %3993 = vpow2.f32 %v3929_v13 }
 0x650   : > { %3995 = vrcp.f32 %v3131_v31  ;;  %v3146_v4 = vand.u32 2147483648, %v3131_v31  ;;  %v3144_v6 = vand.u32 2147483647, %v3131_v31  ;;  %vm3140_vm0 = vweird.f32 %v3131_v31 }
 0x652   : > { %v3109_v58 = vpop.f32.mrf.mxu2  ;;  %v3147_v45 = vor.u32 1.1754944e-38, %v3146_v4  ;;  %vm3145_vm2 = vcmp.eq.f32.partialorder %v3144_v6, 8.507059e+37 }
 0x653   : > { %v5986_v29 = vadd.f32 %v5942_v5, %v3109_v58 }
 0x655   : > { %v3994_v48 = vpop.eup %3993  ;;  %v3930_v61 = vmul.f32 -1.442695, %v5986_v29  ;;  %v3117_v0 = vmax.f32 %v5986_v29, 0.0 }
 0x656   : > { %v3996_v16 = vpop.eup %3995  ;;  %v3132_v53 = vadd.f32 1.0, %v3994_v48 }
 0x657   : > { %v3136_v15 = vmul.f32 %v3996_v16, %v3131_v31  ;;  %3997 = vpow2.f32 %v3930_v61  ;;  %vm3141_vm15 = vweird.f32 %v3996_v16 }
 0x658   : > { %3999 = vrcp.f32 %v3132_v53  ;;  %vm3142_vm1 = vmor %vm3140_vm0, %vm3141_vm15  ;;  %v3159_v26 = vand.u32 2147483647, %v3132_v53  ;;  %v3161_v57 = vand.u32 2147483648, %v3132_v53  ;;  %vm3155_vm4 = vweird.f32 %v3132_v53 }
 0x659   : > { %v3137_v38 = vsub.f32 1.0, %v3136_v15 }
 0x65a   : > { %v3162_v10 = vor.u32 1.1754944e-38, %v3161_v57  ;;  %vm3160_vm6 = vcmp.eq.f32.partialorder %v3159_v26, 8.507059e+37 }
 0x65b   : > { %v3138_v62 = vmul.f32 %v3996_v16, %v3137_v38 }
 0x65c   : > { %v3112_v1 = vpop.f32.mrf.mxu2 }
 0x65d   : > { %v3998_v34 = vpop.eup %3997  ;;  %v3139_v56 = vadd.f32 %v3996_v16, %v3138_v62  ;;  %v5990_v54 = vadd.f32 %v5942_v5, %v3112_v1 }
 0x65e   : > { %v4000_v8 = vpop.eup %3999  ;;  %v3133_v28 = vadd.f32 1.0, %v3998_v34 }
 0x65f   : > { %v3143_v50 = vsel %vm3142_vm1, %v3996_v16, %v3139_v56  ;;  %v3151_v12 = vmul.f32 %v4000_v8, %v3132_v53  ;;  %v3931_v52 = vmul.f32 -1.442695, %v5990_v54  ;;  %vm3156_vm3 = vweird.f32 %v4000_v8 }
 0x660   : > { %v3148_v14 = vsel %vm3145_vm2, %v3147_v45, %v3143_v50  ;;  %4001 = vrcp.f32 %v3133_v28  ;;  %vm3157_vm5 = vmor %vm3155_vm4, %vm3156_vm3  ;;  %v3174_v2 = vand.u32 2147483647, %v3133_v28  ;;  %v3176_v20 = vand.u32 2147483648, %v3133_v28 }
 0x661   : > { %v3199_v49 = vsub.f32 1.0, %v3148_v14  ;;  %v3152_v55 = vsub.f32 1.0, %v3151_v12  ;;  %v3195_v51 = vmul.f32 %v3148_v14, %v3115_v18  ;;  %4003 = vpow2.f32 %v3931_v52 }
 0x662   : > { %vm3170_vm9 = vweird.f32 %v3133_v28  ;;  %v3177_v3 = vor.u32 1.1754944e-38, %v3176_v20  ;;  %vm3175_vm11 = vcmp.eq.f32.partialorder %v3174_v2, 8.507059e+37 }
 0x663   : > { %v3203_v11 = vmul.f32 %v3199_v49, %v5958_v40  ;;  %v3153_v25 = vmul.f32 %v4000_v8, %v3152_v55 }
 0x665   : > { %v5994_v36 = vadd.f32 %v3203_v11, %v3195_v51  ;;  %v3154_v32 = vadd.f32 %v4000_v8, %v3153_v25 }
 0x666   : > { %v4002_v37 = vpop.eup %4001 }
 0x667   : > { %v3158_v44 = vsel %vm3157_vm5, %v4000_v8, %v3154_v32  ;;  %v3166_v24 = vmul.f32 %v4002_v37, %v3133_v28  ;;  %3932 = vmatmul.msk.f32.vlgmr.msrb.gmra.mxu3 %vm707_vm8, %v5994_v36  ;;  %v4004_v47 = vpop.eup %4003  ;;  %vm3171_vm7 = vweird.f32 %v4002_v37 }
 0x668   : > { %v3163_v27 = vsel %vm3160_vm6, %v3162_v10, %v3158_v44  ;;  %v3134_v17 = vadd.f32 1.0, %v4004_v47  ;;  %vm3172_vm10 = vmor %vm3170_vm9, %vm3171_vm7 }
 0x669   : > { %v3200_v40 = vsub.f32 1.0, %v3163_v27  ;;  %v3167_v41 = vsub.f32 1.0, %v3166_v24  ;;  %v3196_v33 = vmul.f32 %v3163_v27, %v3116_v21 }
 0x66a   : > { %4005 = vrcp.f32 %v3134_v17  ;;  %v3191_v31 = vand.u32 2147483648, %v3134_v17  ;;  %v3189_v48 = vand.u32 2147483647, %v3134_v17  ;;  %vm3185_vm13 = vweird.f32 %v3134_v17 }
 0x66b   : > { %v3204_v39 = vmul.f32 %v3200_v40, %v5964_v19  ;;  %v3168_v60 = vmul.f32 %v4002_v37, %v3167_v41 }
 0x66c   : > { %v3192_v29 = vor.u32 1.1754944e-38, %v3191_v31  ;;  %vm3190_vm15 = vcmp.eq.f32.partialorder %v3189_v48, 8.507059e+37 }
 0x66d   : > { %v6000_v7 = vadd.f32 %v3204_v39, %v3196_v33  ;;  %v3169_v43 = vadd.f32 %v4002_v37, %v3168_v60 }
 0x66f   : > { %v3173_v46 = vsel %vm3172_vm10, %v4002_v37, %v3169_v43  ;;  %3933 = vmatmul.msk.f32.gmra.mxu3 %vm707_vm8, %v6000_v7 }
 0x670   : > { %v3178_v59 = vsel %vm3175_vm11, %v3177_v3, %v3173_v46  ;;  %v4006_v23 = vpop.eup %4005 }
 0x671   : > { %v3201_v9 = vsub.f32 1.0, %v3178_v59  ;;  %v3197_v19 = vmul.f32 %v3178_v59, %v3117_v0  ;;  %v3181_v22 = vmul.f32 %v4006_v23, %v3134_v17  ;;  %vm3186_vm12 = vweird.f32 %v4006_v23 }
 0x672   : > { %vm3187_vm14 = vmor %vm3185_vm13, %vm3186_vm12 }
 0x673   : > { %v3205_v63 = vmul.f32 %v3201_v9, %v5970_v35  ;;  %v3182_v13 = vsub.f32 1.0, %v3181_v22  ;;  %v3118_v35 = vmax.f32 %v5990_v54, 0.0 }
 0x675   : > { %v6006_v42 = vadd.f32 %v3205_v63, %v3197_v19  ;;  %v3183_v58 = vmul.f32 %v4006_v23, %v3182_v13 }
 0x677   : > { %3934 = vmatmul.msk.f32.gmra.mxu3 %vm707_vm8, %v6006_v42  ;;  %v3184_v61 = vadd.f32 %v4006_v23, %v3183_v58 }
 0x679   : > { %v3188_v16 = vsel %vm3187_vm14, %v4006_v23, %v3184_v61 }
 0x67a   : > { %v3193_v53 = vsel %vm3190_vm15, %v3192_v29, %v3188_v16 }
 0x67b   : > { %v3202_v15 = vsub.f32 1.0, %v3193_v53  ;;  %v3198_v38 = vmul.f32 %v3193_v53, %v3118_v35 }
 0x67d   : > { %v3206_v4 = vmul.f32 %v3202_v15, %v5976_v30 }
 0x67f   : > { %v6012_v62 = vadd.f32 %v3206_v4, %v3198_v38 }
 0x681   : > { %3935 = vmatmul.msk.f32.gmra.mxu3 %vm707_vm8, %v6012_v62 }
 0x6ea   : > { %v3240_v6 = vpop.f32.mrf.mxu3 }
 0x6eb   : > { %v3241_v34 = vadd.f32 %v5942_v5, %v3240_v6 }
 0x6ed   : > { %v3936_v56 = vmul.f32 -1.442695, %v3241_v34  ;;  %v3252_v40 = vmax.f32 %v3241_v34, 0.0 }
 0x6ef   : > { %4007 = vpow2.f32 %v3936_v56 }
 0x6f2   : > { %v3243_v1 = vpop.f32.mrf.mxu3 }
 0x6f3   : > { %v3244_v8 = vadd.f32 %v5942_v5, %v3243_v1 }
 0x6f5   : > { %v4008_v45 = vpop.eup %4007  ;;  %v3937_v28 = vmul.f32 -1.442695, %v3244_v8  ;;  %v3253_v63 = vmax.f32 %v3244_v8, 0.0 }
 0x6f6   : > { %v3268_v54 = vadd.f32 1.0, %v4008_v45 }
 0x6f7   : > { %4009 = vpow2.f32 %v3937_v28 }
 0x6f8   : > { %4011 = vrcp.f32 %v3268_v54  ;;  %v3283_v57 = vand.u32 2147483648, %v3268_v54  ;;  %v3281_v51 = vand.u32 2147483647, %v3268_v54  ;;  %vm3277_vm1 = vweird.f32 %v3268_v54 }
 0x6fa   : > { %v3246_v50 = vpop.f32.mrf.mxu3  ;;  %v3284_v37 = vor.u32 1.1754944e-38, %v3283_v57  ;;  %vm3282_vm3 = vcmp.eq.f32.partialorder %v3281_v51, 8.507059e+37 }
 0x6fb   : > { %v6019_v30 = vadd.f32 %v5942_v5, %v3246_v50 }
 0x6fd   : > { %v4010_v12 = vpop.eup %4009  ;;  %v3938_v14 = vmul.f32 -1.442695, %v6019_v30  ;;  %v3254_v6 = vmax.f32 %v6019_v30, 0.0 }
 0x6fe   : > { %v4012_v18 = vpop.eup %4011  ;;  %v3269_v49 = vadd.f32 1.0, %v4010_v12 }
 0x6ff   : > { %v3273_v55 = vmul.f32 %v4012_v18, %v3268_v54  ;;  %4013 = vpow2.f32 %v3938_v14  ;;  %vm3278_vm0 = vweird.f32 %v4012_v18 }
 0x700   : > { %4015 = vrcp.f32 %v3269_v49  ;;  %vm3279_vm2 = vmor %vm3277_vm1, %vm3278_vm0  ;;  %v3296_v2 = vand.u32 2147483647, %v3269_v49  ;;  %v3298_v20 = vand.u32 2147483648, %v3269_v49  ;;  %vm3292_vm5 = vweird.f32 %v3269_v49 }
 0x701   : > { %v3274_v26 = vsub.f32 1.0, %v3273_v55 }
 0x702   : > { %v3299_v0 = vor.u32 1.1754944e-38, %v3298_v20  ;;  %vm3297_vm7 = vcmp.eq.f32.partialorder %v3296_v2, 8.507059e+37 }
 0x703   : > { %v3275_v52 = vmul.f32 %v4012_v18, %v3274_v26 }
 0x704   : > { %v3249_v27 = vpop.f32.mrf.mxu3 }
 0x705   : > { %v4014_v11 = vpop.eup %4013  ;;  %v3276_v25 = vadd.f32 %v4012_v18, %v3275_v52  ;;  %v3250_v33 = vadd.f32 %v5942_v5, %v3249_v27 }
 0x706   : > { %v4016_v32 = vpop.eup %4015  ;;  %v3270_v10 = vadd.f32 1.0, %v4014_v11 }
 0x707   : > { %v3280_v44 = vsel %vm3279_vm2, %v4012_v18, %v3276_v25  ;;  %v3288_v24 = vmul.f32 %v4016_v32, %v3269_v49  ;;  %vm3293_vm4 = vweird.f32 %v4016_v32  ;;  %v3939_v43 = vmul.f32 -1.442695, %v3250_v33 }
 0x708   : > { %v3285_v21 = vsel %vm3282_vm3, %v3284_v37, %v3280_v44  ;;  %4017 = vrcp.f32 %v3270_v10  ;;  %vm3294_vm6 = vmor %vm3292_vm5, %vm3293_vm4  ;;  %v3311_v13 = vand.u32 2147483647, %v3270_v10  ;;  %v3313_v31 = vand.u32 2147483648, %v3270_v10 }
 0x709   : > { %v3336_v41 = vsub.f32 1.0, %v3285_v21  ;;  %v3289_v47 = vsub.f32 1.0, %v3288_v24  ;;  %v3332_v39 = vmul.f32 %v3285_v21, %v3252_v40  ;;  %4019 = vpow2.f32 %v3939_v43 }
 0x70a   : > { %vm3307_vm10 = vweird.f32 %v3270_v10  ;;  %v3314_v15 = vor.u32 1.1754944e-38, %v3313_v31  ;;  %vm3312_vm12 = vcmp.eq.f32.partialorder %v3311_v13, 8.507059e+37 }
 0x70b   : > { %v3340_v60 = vmul.f32 %v3336_v41, %v5994_v36  ;;  %v3290_v17 = vmul.f32 %v4016_v32, %v3289_v47 }
 0x70d   : > { %v6024_v3 = vadd.f32 %v3340_v60, %v3332_v39  ;;  %v3291_v46 = vadd.f32 %v4016_v32, %v3290_v17 }
 0x70e   : > { %v4018_v59 = vpop.eup %4017 }
 0x70f   : > { %v3295_v9 = vsel %vm3294_vm6, %v4016_v32, %v3291_v46  ;;  %v3303_v23 = vmul.f32 %v4018_v59, %v3270_v10  ;;  %3940 = vmatmul.msk.f32.vlgmr.msrb.gmra.mxu0 %vm707_vm8, %v6024_v3  ;;  %vm3308_vm9 = vweird.f32 %v4018_v59  ;;  %v4020_v29 = vpop.eup %4019 }
 0x710   : > { %v3300_v19 = vsel %vm3297_vm7, %v3299_v0, %v3295_v9  ;;  %v3271_v35 = vadd.f32 1.0, %v4020_v29  ;;  %vm3309_vm11 = vmor %vm3307_vm10, %vm3308_vm9 }
 0x711   : > { %v3337_v36 = vsub.f32 1.0, %v3300_v19  ;;  %v3304_v22 = vsub.f32 1.0, %v3303_v23  ;;  %v3333_v58 = vmul.f32 %v3300_v19, %v3253_v63 }
 0x712   : > { %4021 = vrcp.f32 %v3271_v35  ;;  %v3328_v54 = vand.u32 2147483648, %v3271_v35  ;;  %v3326_v12 = vand.u32 2147483647, %v3271_v35  ;;  %vm3322_vm14 = vweird.f32 %v3271_v35 }
 0x713   : > { %v3341_v48 = vmul.f32 %v3337_v36, %v6000_v7  ;;  %v3305_v61 = vmul.f32 %v4018_v59, %v3304_v22 }
 0x714   : > { %v3329_v30 = vor.u32 1.1754944e-38, %v3328_v54  ;;  %vm3327_vm0 = vcmp.eq.f32.partialorder %v3326_v12, 8.507059e+37 }
 0x715   : > { %v6029_v16 = vadd.f32 %v3341_v48, %v3333_v58  ;;  %v3306_v53 = vadd.f32 %v4018_v59, %v3305_v61 }
 0x717   : > { %v3310_v38 = vsel %vm3309_vm11, %v4018_v59, %v3306_v53  ;;  %3941 = vmatmul.msk.f32.gmra.mxu0 %vm707_vm8, %v6029_v16 }
 0x718   : > { %v3315_v4 = vsel %vm3312_vm12, %v3314_v15, %v3310_v38  ;;  %v4022_v1 = vpop.eup %4021 }
 0x719   : > { %v3338_v7 = vsub.f32 1.0, %v3315_v4  ;;  %v3334_v34 = vmul.f32 %v3315_v4, %v3254_v6  ;;  %v3318_v45 = vmul.f32 %v4022_v1, %v3271_v35  ;;  %vm3323_vm13 = vweird.f32 %v4022_v1 }
 0x71a   : > { %vm3324_vm15 = vmor %vm3322_vm14, %vm3323_vm13 }
 0x71b   : > { %v3342_v56 = vmul.f32 %v3338_v7, %v6006_v42  ;;  %v3319_v28 = vsub.f32 1.0, %v3318_v45  ;;  %v3255_v42 = vmax.f32 %v3250_v33, 0.0 }
 0x71d   : > { %v6035_v8 = vadd.f32 %v3342_v56, %v3334_v34  ;;  %v3320_v50 = vmul.f32 %v4022_v1, %v3319_v28 }
 0x71f   : > { %3942 = vmatmul.msk.f32.gmra.mxu0 %vm707_vm8, %v6035_v8  ;;  %v3321_v14 = vadd.f32 %v4022_v1, %v3320_v50 }
 0x721   : > { %v3325_v18 = vsel %vm3324_vm15, %v4022_v1, %v3321_v14 }
 0x722   : > { %v3330_v49 = vsel %vm3327_vm0, %v3329_v30, %v3325_v18 }
 0x723   : > { %v3339_v55 = vsub.f32 1.0, %v3330_v49  ;;  %v3335_v26 = vmul.f32 %v3330_v49, %v3255_v42 }
 0x725   : > { %v3343_v57 = vmul.f32 %v3339_v55, %v6012_v62 }
 0x727   : > { %v6040_v52 = vadd.f32 %v3343_v57, %v3335_v26 }
 0x729   : > { %3943 = vmatmul.msk.f32.gmra.mxu0 %vm707_vm8, %v6040_v52 }
 0x78c   : > { %v3377_v51 = vpop.f32.mrf.mxu0 }
 0x78d   : > { %v3378_v11 = vadd.f32 %v5942_v5, %v3377_v51 }
 0x78f   : > { %v3944_v25 = vmul.f32 -1.442695, %v3378_v11  ;;  %v3389_v63 = vmax.f32 %v3378_v11, 0.0 }
 0x791   : > { %4023 = vpow2.f32 %v3944_v25 }
 0x794   : > { %v3380_v32 = vpop.f32.mrf.mxu0 }
 0x795   : > { %v6046_v37 = vadd.f32 %v5942_v5, %v3380_v32 }
 0x797   : > { %v4024_v10 = vpop.eup %4023  ;;  %v3945_v44 = vmul.f32 -1.442695, %v6046_v37  ;;  %v3390_v34 = vmax.f32 %v6046_v37, 0.0 }
 0x798   : > { %v3405_v24 = vadd.f32 1.0, %v4024_v10 }
 0x799   : > { %4025 = vpow2.f32 %v3945_v44 }
 0x79a   : > { %4027 = vrcp.f32 %v3405_v24  ;;  %v3420_v33 = vand.u32 2147483648, %v3405_v24  ;;  %v3418_v60 = vand.u32 2147483647, %v3405_v24  ;;  %vm3414_vm2 = vweird.f32 %v3405_v24 }
 0x79c   : > { %v3383_v62 = vpop.f32.mrf.mxu0  ;;  %v3421_v59 = vor.u32 1.1754944e-38, %v3420_v33  ;;  %vm3419_vm4 = vcmp.eq.f32.partialorder %v3418_v60, 8.507059e+37 }
 0x79d   : > { %v6050_v27 = vadd.f32 %v5942_v5, %v3383_v62 }
 0x79f   : > { %v4026_v21 = vpop.eup %4025  ;;  %v3946_v40 = vmul.f32 -1.442695, %v6050_v27  ;;  %v3391_v57 = vmax.f32 %v6050_v27, 0.0 }
 0x7a0   : > { %v4028_v41 = vpop.eup %4027  ;;  %v3406_v47 = vadd.f32 1.0, %v4026_v21 }
 0x7a1   : > { %v3410_v2 = vmul.f32 %v4028_v41, %v3405_v24  ;;  %4029 = vpow2.f32 %v3946_v40  ;;  %vm3415_vm1 = vweird.f32 %v4028_v41 }
 0x7a2   : > { %4031 = vrcp.f32 %v3406_v47  ;;  %vm3416_vm3 = vmor %vm3414_vm2, %vm3415_vm1  ;;  %v3433_v31 = vand.u32 2147483647, %v3406_v47  ;;  %v3435_v58 = vand.u32 2147483648, %v3406_v47  ;;  %vm3429_vm6 = vweird.f32 %v3406_v47 }
 0x7a3   : > { %v3411_v20 = vsub.f32 1.0, %v3410_v2 }
 0x7a4   : > { %vm3434_vm9 = vcmp.eq.f32.partialorder %v3433_v31, 8.507059e+37 }
 0x7a5   : > { %v3412_v39 = vmul.f32 %v4028_v41, %v3411_v20 }
 0x7a6   : > { %v3386_v13 = vpop.f32.mrf.mxu0 }
 0x7a7   : > { %v4030_v17 = vpop.eup %4029  ;;  %v3413_v43 = vadd.f32 %v4028_v41, %v3412_v39  ;;  %v6054_v48 = vadd.f32 %v5942_v5, %v3386_v13  ;;  %v3436_v5 = vor.u32 1.1754944e-38, %v3435_v58 }
 0x7a8   : > { %v4032_v46 = vpop.eup %4031  ;;  %v3407_v0 = vadd.f32 1.0, %v4030_v17 }
 0x7a9   : > { %v3417_v9 = vsel %vm3416_vm3, %v4028_v41, %v3413_v43  ;;  %v3425_v23 = vmul.f32 %v4032_v46, %v3406_v47  ;;  %vm3430_vm5 = vweird.f32 %v4032_v46  ;;  %v3947_v35 = vmul.f32 -1.442695, %v6054_v48 }
 0x7aa   : > { %v3422_v19 = vsel %vm3419_vm4, %v3421_v59, %v3417_v9  ;;  %4033 = vrcp.f32 %v3407_v0  ;;  %vm3431_vm7 = vmor %vm3429_vm6, %vm3430_vm5  ;;  %v3448_v45 = vand.u32 2147483647, %v3407_v0  ;;  %v3450_v28 = vand.u32 2147483648, %v3407_v0 }
 0x7ab   : > { %v3473_v36 = vsub.f32 1.0, %v3422_v19  ;;  %v3426_v22 = vsub.f32 1.0, %v3425_v23  ;;  %v3469_v61 = vmul.f32 %v3422_v19, %v3389_v63  ;;  %4035 = vpow2.f32 %v3947_v35 }
 0x7ac   : > { %vm3444_vm11 = vweird.f32 %v3407_v0  ;;  %v3451_v42 = vor.u32 1.1754944e-38, %v3450_v28  ;;  %vm3449_vm13 = vcmp.eq.f32.partialorder %v3448_v45, 8.507059e+37 }
 0x7ad   : > { %v3477_v29 = vmul.f32 %v3473_v36, %v6024_v3  ;;  %v3427_v53 = vmul.f32 %v4032_v46, %v3426_v22 }
 0x7af   : > { %v3481_v15 = vadd.f32 %v3477_v29, %v3469_v61  ;;  %v3428_v38 = vadd.f32 %v4032_v46, %v3427_v53 }
 0x7b0   : > { %v4034_v4 = vpop.eup %4033 }
 0x7b1   : > { %3485 = vst.msk [vmem:[%s6062_s30] sm:$0xff] %vm707_vm8, %v3481_v15  ;;  %v3432_v3 = vsel %vm3431_vm7, %v4032_v46, %v3428_v38  ;;  %v3440_v6 = vmul.f32 %v4034_v4, %v3407_v0  ;;  %vm3445_vm10 = vweird.f32 %v4034_v4  ;;  %v4036_v14 = vpop.eup %4035 }
 0x7b2   : > { %v3437_v7 = vsel %vm3434_vm9, %v3436_v5, %v3432_v3  ;;  %v3408_v49 = vadd.f32 1.0, %v4036_v14  ;;  %vm3446_vm12 = vmor %vm3444_vm11, %vm3445_vm10 }
 0x7b3   : > { %v3474_v56 = vsub.f32 1.0, %v3437_v7  ;;  %v3441_v1 = vsub.f32 1.0, %v3440_v6  ;;  %v3470_v54 = vmul.f32 %v3437_v7, %v3390_v34 }
 0x7b4   : > { %4037 = vrcp.f32 %v3408_v49  ;;  %v3465_v44 = vand.u32 2147483648, %v3408_v49  ;;  %v3463_v62 = vand.u32 2147483647, %v3408_v49  ;;  %vm3459_vm15 = vweird.f32 %v3408_v49 }
 0x7b5   : > { %v3478_v50 = vmul.f32 %v3474_v56, %v6029_v16  ;;  %v3442_v12 = vmul.f32 %v4034_v4, %v3441_v1 }
 0x7b6   : > { %v3466_v40 = vor.u32 1.1754944e-38, %v3465_v44  ;;  %vm3464_vm1 = vcmp.eq.f32.partialorder %v3463_v62, 8.507059e+37 }
 0x7b7   : > { %v3482_v30 = vadd.f32 %v3478_v50, %v3470_v54  ;;  %v3443_v18 = vadd.f32 %v4034_v4, %v3442_v12 }
 0x7b9   : > { %3486 = vst.msk [vmem:[%s6062_s30 + $0x8] sm:$0xff] %vm707_vm8, %v3482_v30  ;;  %v3447_v55 = vsel %vm3446_vm12, %v4034_v4, %v3443_v18 }
 0x7ba   : > { %v3452_v26 = vsel %vm3449_vm13, %v3451_v42, %v3447_v55  ;;  %v4038_v25 = vpop.eup %4037 }
 0x7bb   : > { %v3475_v51 = vsub.f32 1.0, %v3452_v26  ;;  %v3471_v16 = vmul.f32 %v3452_v26, %v3391_v57  ;;  %v3455_v37 = vmul.f32 %v4038_v25, %v3408_v49  ;;  %vm3460_vm14 = vweird.f32 %v4038_v25 }
 0x7bc   : > { %vm3461_vm0 = vmor %vm3459_vm15, %vm3460_vm14 }
 0x7bd   : > { %v3479_v11 = vmul.f32 %v3475_v51, %v6035_v8  ;;  %v3456_v10 = vsub.f32 1.0, %v3455_v37  ;;  %v3392_v8 = vmax.f32 %v6054_v48, 0.0 }
 0x7bf   : > { %v3483_v32 = vadd.f32 %v3479_v11, %v3471_v16  ;;  %v3457_v24 = vmul.f32 %v4038_v25, %v3456_v10 }
 0x7c1   : > { %3487 = vst.msk [vmem:[%s6062_s30 + $0x10] sm:$0xff] %vm707_vm8, %v3483_v32  ;;  %v3458_v21 = vadd.f32 %v4038_v25, %v3457_v24 }
 0x7c3   : > { %v3462_v27 = vsel %vm3461_vm0, %v4038_v25, %v3458_v21 }
 0x7c4   : > { %v3467_v41 = vsel %vm3464_vm1, %v3466_v40, %v3462_v27 }
 0x7c5   : > { %v3476_v47 = vsub.f32 1.0, %v3467_v41  ;;  %v3472_v2 = vmul.f32 %v3467_v41, %v3392_v8 }
 0x7c7   : > { %v3480_v20 = vmul.f32 %v3476_v47, %v6040_v52 }
 0x7c9   : > { %v3484_v33 = vadd.f32 %v3480_v20, %v3472_v2 }
 0x7cb   : > { %3488 = vst.msk [vmem:[%s6062_s30 + $0x18] sm:$0xff] %vm707_vm8, %v3484_v33 }
 0x7cc PF: > { %s25_s18 = sadd.s32 1, %s4045_s18  }
 0x7cd   : > { %p22_p4 = scmp.ge.s32.totalorder %s25_s18, 4  }
 0x7cf   :  { %24 = sbr.rel (!%p22_p4) target bundleno = 1 (0x1), region = 133 }

</bundles_post_ra>
